<compile_context>
chip_gen: v7x
topology: tpu7x:2x2x1
jax: 0.10.0
libtpu: 0.0.40
codegen_flags: <defaults>
</compile_context>

<pallas_src>
import functools

import jax
import jax.numpy as jnp
from jax.experimental import pallas as pl
from jax.experimental.pallas import tpu as pltpu

NEG_INF = -1e30


def _gat_layer(x, w, b, att_l, att_r, adj, negative_slope):
    """One GAT conv (lin_r shares weights with lin_l, per head-channel
    attention) fused with the GNNStack ReLU that follows every conv layer."""
    # x_l = lin_l(x) == lin_r(x)
    xl = jnp.dot(x, w, preferred_element_type=jnp.float32) + b           # [N, HC]
    al = xl * att_l                                                       # [N, HC]
    ar = xl * att_r                                                       # [N, HC]

    # e[i, j, hc] = leaky_relu(alpha_r[i] + alpha_l[j])   (edge j -> i)
    e = ar[:, None, :] + al[None, :, :]                                   # [N, N, HC]
    e = jnp.maximum(e, negative_slope * e)            # leaky_relu (0 < slope < 1)

    # masked softmax over source nodes j (matches pyg softmax(alpha, index));
    # normalization is deferred until after the aggregation reduction.
    e = jnp.where(adj[:, :, None] > 0.0, e, NEG_INF)                      # [N, N, HC]
    m = jnp.max(e, axis=1, keepdims=True)                                 # [N, 1, HC]
    m = jnp.where(m <= NEG_INF * 0.5, 0.0, m)         # guard isolated nodes
    # masked entries: exp(NEG_INF - m) underflows to exactly 0 in f32,
    # so no extra `* mask` multiply is needed.
    p = jnp.exp(e - m)                                                    # [N, N, HC]
    s = jnp.sum(p, axis=1)                                                # [N, HC]

    # out[i] = (sum_j p[i, j] * x_l[j]) / s[i]   (scatter-sum aggregation)
    num = jnp.sum(p * xl[None, :, :], axis=1)                             # [N, HC]
    out = num / jnp.where(s > 0.0, s, 1.0)

    # GNNStack: x = F.relu(conv(x, edge_index));  dropout p=0.0 is identity.
    return jnp.maximum(out, 0.0)


def gnn_stack_kernel(x_ref, adj_ref,
                     w1_ref, b1_ref, al1_ref, ar1_ref,
                     w2_ref, b2_ref, al2_ref, ar2_ref,
                     pw1_ref, pb1_ref, pw2_ref, pb2_ref,
                     o_ref, *, negative_slope):
    adj = adj_ref[...]                                                    # [N, N]

    # conv layer 1 (+ fused ReLU)
    h = _gat_layer(x_ref[...], w1_ref[...], b1_ref[...],
                   al1_ref[...], ar1_ref[...], adj, negative_slope)
    # conv layer 2 (+ fused ReLU); intermediate never leaves VMEM/vregs.
    h = _gat_layer(h, w2_ref[...], b2_ref[...],
                   al2_ref[...], ar2_ref[...], adj, negative_slope)

    # post_mp: Linear -> (Dropout p=0) -> Linear, then log_softmax(dim=1)
    h = jnp.dot(h, pw1_ref[...], preferred_element_type=jnp.float32) + pb1_ref[...]
    y = jnp.dot(h, pw2_ref[...], preferred_element_type=jnp.float32) + pb2_ref[...]
    m = jnp.max(y, axis=1, keepdims=True)
    lse = m + jnp.log(jnp.sum(jnp.exp(y - m), axis=1, keepdims=True))
    o_ref[...] = y - lse


def gnn_stack_forward(params, x, adj, negative_slope=0.2):
    n, fin = x.shape
    c1, c2 = params["convs"]
    hc = c1["w"].shape[1]
    hid = params["post_w1"].shape[1]
    out_dim = params["post_w2"].shape[1]

    def full(shape):
        # block == full array (allowed even when dims < (8, 128))
        return pl.BlockSpec(shape, lambda i: (0, 0))

    return pl.pallas_call(
        functools.partial(gnn_stack_kernel, negative_slope=negative_slope),
        out_shape=jax.ShapeDtypeStruct((n, out_dim), jnp.float32),
        grid=(1,),
        in_specs=[
            full((n, fin)),            # x
            full((n, n)),              # adj
            full((fin, hc)), full((1, hc)), full((1, hc)), full((1, hc)),   # conv1
            full((hc, hc)),  full((1, hc)), full((1, hc)), full((1, hc)),   # conv2
            full((hc, hid)), full((1, hid)),                                # post_mp L1
            full((hid, out_dim)), full((1, out_dim)),                       # post_mp L2
        ],
        out_specs=full((n, out_dim)),
        compiler_params=pltpu.CompilerParams(
            dimension_semantics=("arbitrary",)),
    )(x, adj,
      c1["w"], c1["b"], c1["att_l"], c1["att_r"],
      c2["w"], c2["b"], c2["att_l"], c2["att_r"],
      params["post_w1"], params["post_b1"],
      params["post_w2"], params["post_b2"])


# ----------------------------------------------------------------------------
# Pure-JAX reference (same math as the PyTorch module) for a sanity check.
# ----------------------------------------------------------------------------
def reference_forward(params, x, adj, negative_slope=0.2):
    for layer in params["convs"]:
        xl = x @ layer["w"] + layer["b"]
        al = xl * layer["att_l"]
        ar = xl * layer["att_r"]
        e = ar[:, None, :] + al[None, :, :]
        e = jnp.where(e >= 0.0, e, negative_slope * e)
        mask = adj[:, :, None]
        e_m = jnp.where(mask > 0.0, e, NEG_INF)
        m = jnp.max(e_m, axis=1, keepdims=True)
        m = jnp.where(m <= NEG_INF * 0.5, 0.0, m)
        p = jnp.exp(e_m - m) * mask
        s = jnp.sum(p, axis=1, keepdims=True)
        attn = p / jnp.where(s > 0.0, s, 1.0)
        x = jnp.maximum(jnp.sum(attn * xl[None, :, :], axis=1), 0.0)
    h = x @ params["post_w1"] + params["post_b1"]
    y = h @ params["post_w2"] + params["post_b2"]
    return jax.nn.log_softmax(y, axis=1)


def init_params(key, input_dim, hidden_dim, output_dim, heads, num_layers):
    params = {"convs": []}
    dims_in = [input_dim] + [heads * hidden_dim] * (num_layers - 1)
    for l in range(num_layers):
        key, k1, k2, k3, k4 = jax.random.split(key, 5)
        fin, hc = dims_in[l], heads * hidden_dim
        scale = (2.0 / (fin + hc)) ** 0.5
        params["convs"].append({
            "w": scale * jax.random.normal(k1, (fin, hc), jnp.float32),
            "b": 0.01 * jax.random.normal(k2, (1, hc), jnp.float32),
            "att_l": jax.random.normal(k3, (1, hc), jnp.float32) * 0.5,
            "att_r": jax.random.normal(k4, (1, hc), jnp.float32) * 0.5,
        })
    key, k1, k2, k3, k4 = jax.random.split(key, 5)
    hc = heads * hidden_dim
    params["post_w1"] = (2.0 / (hc + hidden_dim)) ** 0.5 * jax.random.normal(
        k1, (hc, hidden_dim), jnp.float32)
    params["post_b1"] = 0.01 * jax.random.normal(k2, (1, hidden_dim), jnp.float32)
    params["post_w2"] = (2.0 / (hidden_dim + output_dim)) ** 0.5 * jax.random.normal(
        k3, (hidden_dim, output_dim), jnp.float32)
    params["post_b2"] = 0.01 * jax.random.normal(k4, (1, output_dim), jnp.float32)
    return params


if __name__ == "__main__":
    N = 16            # nodes
    INPUT_DIM = 16
    HIDDEN_DIM = 32
    OUTPUT_DIM = 8
    HEADS = 2
    NUM_LAYERS = 2

    key = jax.random.PRNGKey(0)
    key, kx = jax.random.split(key)
    x = jax.random.normal(kx, (N, INPUT_DIM), jnp.float32)

    # Deterministic small graph: ring edges i -> (i+1) % N plus self-loops,
    # so every node has at least one incoming edge.
    src = jnp.concatenate([jnp.arange(N), jnp.arange(N)])
    dst = jnp.concatenate([(jnp.arange(N) + 1) % N, jnp.arange(N)])
    edge_index = jnp.stack([src, dst])                       # [2, E]
    adj = jnp.zeros((N, N), jnp.float32).at[edge_index[1], edge_index[0]].set(1.0)

    params = init_params(key, INPUT_DIM, HIDDEN_DIM, OUTPUT_DIM, HEADS, NUM_LAYERS)

    out = gnn_stack_forward(params, x, adj)
    out = jax.block_until_ready(out)

    ref = reference_forward(params, x, adj)
    assert out.shape == (N, OUTPUT_DIM)
    assert jnp.allclose(out, ref, rtol=1e-4, atol=1e-4), "mismatch vs JAX reference"

    print("KERNEL_OK")
</pallas_src>

<mosaic_0001>
module attributes {stable_mosaic.version = 11 : i64} {
  func.func @gnn_stack_kernel(%arg0: i32, %arg1: memref<16x16xf32, #tpu.memory_space<vmem>>, %arg2: memref<16x16xf32, #tpu.memory_space<vmem>>, %arg3: memref<16x64xf32, #tpu.memory_space<vmem>>, %arg4: memref<1x64xf32, #tpu.memory_space<vmem>>, %arg5: memref<1x64xf32, #tpu.memory_space<vmem>>, %arg6: memref<1x64xf32, #tpu.memory_space<vmem>>, %arg7: memref<64x64xf32, #tpu.memory_space<vmem>>, %arg8: memref<1x64xf32, #tpu.memory_space<vmem>>, %arg9: memref<1x64xf32, #tpu.memory_space<vmem>>, %arg10: memref<1x64xf32, #tpu.memory_space<vmem>>, %arg11: memref<64x32xf32, #tpu.memory_space<vmem>>, %arg12: memref<1x32xf32, #tpu.memory_space<vmem>>, %arg13: memref<32x8xf32, #tpu.memory_space<vmem>>, %arg14: memref<1x8xf32, #tpu.memory_space<vmem>>, %arg15: memref<16x8xf32, #tpu.memory_space<vmem>>) attributes {dimension_semantics = [#tpu.dimension_semantics<arbitrary>], iteration_bounds = array<i64: 1>, scalar_prefetch = 0 : i64, scratch_operands = 0 : i64, tpu.core_type = #tpu.core_type<tc>, window_params = [{pipeline_mode = #tpu.pipeline_mode<synchronous>, transform_indices = @transform_0, window_bounds = array<i64: 16, 16>}, {pipeline_mode = #tpu.pipeline_mode<synchronous>, transform_indices = @transform_1, window_bounds = array<i64: 16, 16>}, {pipeline_mode = #tpu.pipeline_mode<synchronous>, transform_indices = @transform_2, window_bounds = array<i64: 16, 64>}, {pipeline_mode = #tpu.pipeline_mode<synchronous>, transform_indices = @transform_3, window_bounds = array<i64: 1, 64>}, {pipeline_mode = #tpu.pipeline_mode<synchronous>, transform_indices = @transform_4, window_bounds = array<i64: 1, 64>}, {pipeline_mode = #tpu.pipeline_mode<synchronous>, transform_indices = @transform_5, window_bounds = array<i64: 1, 64>}, {pipeline_mode = #tpu.pipeline_mode<synchronous>, transform_indices = @transform_6, window_bounds = array<i64: 64, 64>}, {pipeline_mode = #tpu.pipeline_mode<synchronous>, transform_indices = @transform_7, window_bounds = array<i64: 1, 64>}, {pipeline_mode = #tpu.pipeline_mode<synchronous>, transform_indices = @transform_8, window_bounds = array<i64: 1, 64>}, {pipeline_mode = #tpu.pipeline_mode<synchronous>, transform_indices = @transform_9, window_bounds = array<i64: 1, 64>}, {pipeline_mode = #tpu.pipeline_mode<synchronous>, transform_indices = @transform_10, window_bounds = array<i64: 64, 32>}, {pipeline_mode = #tpu.pipeline_mode<synchronous>, transform_indices = @transform_11, window_bounds = array<i64: 1, 32>}, {pipeline_mode = #tpu.pipeline_mode<synchronous>, transform_indices = @transform_12, window_bounds = array<i64: 32, 8>}, {pipeline_mode = #tpu.pipeline_mode<synchronous>, transform_indices = @transform_13, window_bounds = array<i64: 1, 8>}, {pipeline_mode = #tpu.pipeline_mode<synchronous>, transform_indices = @transform_14, window_bounds = array<i64: 16, 8>}]} {
    %c0 = arith.constant 0 : index
    %c0_0 = arith.constant 0 : index
    %0 = vector.load %arg2[%c0, %c0_0] : memref<16x16xf32, #tpu.memory_space<vmem>>, vector<16x16xf32>
    %c0_1 = arith.constant 0 : index
    %c0_2 = arith.constant 0 : index
    %1 = vector.load %arg1[%c0_1, %c0_2] : memref<16x16xf32, #tpu.memory_space<vmem>>, vector<16x16xf32>
    %c0_3 = arith.constant 0 : index
    %c0_4 = arith.constant 0 : index
    %2 = vector.load %arg3[%c0_3, %c0_4] : memref<16x64xf32, #tpu.memory_space<vmem>>, vector<16x64xf32>
    %c0_5 = arith.constant 0 : index
    %c0_6 = arith.constant 0 : index
    %3 = vector.load %arg4[%c0_5, %c0_6] : memref<1x64xf32, #tpu.memory_space<vmem>>, vector<1x64xf32>
    %c0_7 = arith.constant 0 : index
    %c0_8 = arith.constant 0 : index
    %4 = vector.load %arg5[%c0_7, %c0_8] : memref<1x64xf32, #tpu.memory_space<vmem>>, vector<1x64xf32>
    %c0_9 = arith.constant 0 : index
    %c0_10 = arith.constant 0 : index
    %5 = vector.load %arg6[%c0_9, %c0_10] : memref<1x64xf32, #tpu.memory_space<vmem>>, vector<1x64xf32>
    %cst = arith.constant dense<0.000000e+00> : vector<16x64xf32>
    %6 = tpu.matmul %1, %2, %cst {dimension_numbers = #tpu.dot_dimension_numbers<[1], [0], [0], [1], [0, 0, 1, 1], [], []>} : vector<16x16xf32>, vector<16x64xf32>, vector<16x64xf32> -> vector<16x64xf32>
    %7 = vector.broadcast %3 : vector<1x64xf32> to vector<16x64xf32>
    %8 = arith.addf %6, %7 : vector<16x64xf32>
    %9 = vector.broadcast %4 : vector<1x64xf32> to vector<16x64xf32>
    %10 = arith.mulf %8, %9 : vector<16x64xf32>
    %11 = vector.broadcast %5 : vector<1x64xf32> to vector<16x64xf32>
    %12 = arith.mulf %8, %11 : vector<16x64xf32>
    %13 = vector.shape_cast %12 : vector<16x64xf32> to vector<16x1x64xf32>
    %14 = vector.shape_cast %10 : vector<16x64xf32> to vector<1x16x64xf32>
    %15 = vector.broadcast %13 : vector<16x1x64xf32> to vector<16x16x64xf32>
    %16 = vector.broadcast %14 : vector<1x16x64xf32> to vector<16x16x64xf32>
    %17 = arith.addf %15, %16 : vector<16x16x64xf32>
    %cst_11 = arith.constant 2.000000e-01 : f32
    %18 = vector.broadcast %cst_11 : f32 to vector<16x16x64xf32>
    %19 = arith.mulf %18, %17 : vector<16x16x64xf32>
    %20 = arith.maximumf %17, %19 : vector<16x16x64xf32>
    %21 = vector.shape_cast %0 : vector<16x16xf32> to vector<16x16x1xf32>
    %cst_12 = arith.constant 0.000000e+00 : f32
    %22 = vector.broadcast %cst_12 : f32 to vector<16x16x1xf32>
    %23 = arith.cmpf ogt, %21, %22 : vector<16x16x1xf32>
    %cst_13 = arith.constant -1.000000e+30 : f32
    %24 = vector.shape_cast %23 : vector<16x16x1xi1> to vector<16x16x1xi1>
    %25 = vector.broadcast %24 : vector<16x16x1xi1> to vector<16x16x64xi1>
    %26 = vector.broadcast %cst_13 : f32 to vector<16x16x64xf32>
    %27 = arith.select %25, %20, %26 : vector<16x16x64xi1>, vector<16x16x64xf32>
    %cst_14 = arith.constant dense<0xFF800000> : vector<16x64xf32>
    %28 = vector.multi_reduction <maximumf>, %27, %cst_14 [1] : vector<16x16x64xf32> to vector<16x64xf32>
    %29 = vector.shape_cast %28 : vector<16x64xf32> to vector<16x1x64xf32>
    %cst_15 = arith.constant -5.000000e+29 : f32
    %30 = vector.broadcast %cst_15 : f32 to vector<16x1x64xf32>
    %31 = arith.cmpf ole, %29, %30 : vector<16x1x64xf32>
    %cst_16 = arith.constant 0.000000e+00 : f32
    %32 = vector.broadcast %cst_16 : f32 to vector<16x1x64xf32>
    %33 = arith.select %31, %32, %29 : vector<16x1x64xi1>, vector<16x1x64xf32>
    %34 = vector.broadcast %33 : vector<16x1x64xf32> to vector<16x16x64xf32>
    %35 = arith.subf %27, %34 : vector<16x16x64xf32>
    %36 = math.exp %35 : vector<16x16x64xf32>
    %cst_17 = arith.constant dense<0.000000e+00> : vector<16x64xf32>
    %37 = vector.multi_reduction <add>, %36, %cst_17 [1] : vector<16x16x64xf32> to vector<16x64xf32>
    %38 = vector.shape_cast %8 : vector<16x64xf32> to vector<1x16x64xf32>
    %39 = vector.broadcast %38 : vector<1x16x64xf32> to vector<16x16x64xf32>
    %40 = arith.mulf %36, %39 : vector<16x16x64xf32>
    %cst_18 = arith.constant dense<0.000000e+00> : vector<16x64xf32>
    %41 = vector.multi_reduction <add>, %40, %cst_18 [1] : vector<16x16x64xf32> to vector<16x64xf32>
    %cst_19 = arith.constant 0.000000e+00 : f32
    %42 = vector.broadcast %cst_19 : f32 to vector<16x64xf32>
    %43 = arith.cmpf ogt, %37, %42 : vector<16x64xf32>
    %cst_20 = arith.constant 1.000000e+00 : f32
    %44 = vector.broadcast %cst_20 : f32 to vector<16x64xf32>
    %45 = arith.select %43, %37, %44 : vector<16x64xi1>, vector<16x64xf32>
    %46 = arith.divf %41, %45 : vector<16x64xf32>
    %cst_21 = arith.constant 0.000000e+00 : f32
    %47 = vector.broadcast %cst_21 : f32 to vector<16x64xf32>
    %48 = arith.maximumf %46, %47 : vector<16x64xf32>
    %c0_22 = arith.constant 0 : index
    %c0_23 = arith.constant 0 : index
    %49 = vector.load %arg7[%c0_22, %c0_23] : memref<64x64xf32, #tpu.memory_space<vmem>>, vector<64x64xf32>
    %c0_24 = arith.constant 0 : index
    %c0_25 = arith.constant 0 : index
    %50 = vector.load %arg8[%c0_24, %c0_25] : memref<1x64xf32, #tpu.memory_space<vmem>>, vector<1x64xf32>
    %c0_26 = arith.constant 0 : index
    %c0_27 = arith.constant 0 : index
    %51 = vector.load %arg9[%c0_26, %c0_27] : memref<1x64xf32, #tpu.memory_space<vmem>>, vector<1x64xf32>
    %c0_28 = arith.constant 0 : index
    %c0_29 = arith.constant 0 : index
    %52 = vector.load %arg10[%c0_28, %c0_29] : memref<1x64xf32, #tpu.memory_space<vmem>>, vector<1x64xf32>
    %cst_30 = arith.constant dense<0.000000e+00> : vector<16x64xf32>
    %53 = tpu.matmul %48, %49, %cst_30 {dimension_numbers = #tpu.dot_dimension_numbers<[1], [0], [0], [1], [0, 0, 1, 1], [], []>} : vector<16x64xf32>, vector<64x64xf32>, vector<16x64xf32> -> vector<16x64xf32>
    %54 = vector.broadcast %50 : vector<1x64xf32> to vector<16x64xf32>
    %55 = arith.addf %53, %54 : vector<16x64xf32>
    %56 = vector.broadcast %51 : vector<1x64xf32> to vector<16x64xf32>
    %57 = arith.mulf %55, %56 : vector<16x64xf32>
    %58 = vector.broadcast %52 : vector<1x64xf32> to vector<16x64xf32>
    %59 = arith.mulf %55, %58 : vector<16x64xf32>
    %60 = vector.shape_cast %59 : vector<16x64xf32> to vector<16x1x64xf32>
    %61 = vector.shape_cast %57 : vector<16x64xf32> to vector<1x16x64xf32>
    %62 = vector.broadcast %60 : vector<16x1x64xf32> to vector<16x16x64xf32>
    %63 = vector.broadcast %61 : vector<1x16x64xf32> to vector<16x16x64xf32>
    %64 = arith.addf %62, %63 : vector<16x16x64xf32>
    %cst_31 = arith.constant 2.000000e-01 : f32
    %65 = vector.broadcast %cst_31 : f32 to vector<16x16x64xf32>
    %66 = arith.mulf %65, %64 : vector<16x16x64xf32>
    %67 = arith.maximumf %64, %66 : vector<16x16x64xf32>
    %68 = vector.shape_cast %0 : vector<16x16xf32> to vector<16x16x1xf32>
    %cst_32 = arith.constant 0.000000e+00 : f32
    %69 = vector.broadcast %cst_32 : f32 to vector<16x16x1xf32>
    %70 = arith.cmpf ogt, %68, %69 : vector<16x16x1xf32>
    %cst_33 = arith.constant -1.000000e+30 : f32
    %71 = vector.shape_cast %70 : vector<16x16x1xi1> to vector<16x16x1xi1>
    %72 = vector.broadcast %71 : vector<16x16x1xi1> to vector<16x16x64xi1>
    %73 = vector.broadcast %cst_33 : f32 to vector<16x16x64xf32>
    %74 = arith.select %72, %67, %73 : vector<16x16x64xi1>, vector<16x16x64xf32>
    %cst_34 = arith.constant dense<0xFF800000> : vector<16x64xf32>
    %75 = vector.multi_reduction <maximumf>, %74, %cst_34 [1] : vector<16x16x64xf32> to vector<16x64xf32>
    %76 = vector.shape_cast %75 : vector<16x64xf32> to vector<16x1x64xf32>
    %cst_35 = arith.constant -5.000000e+29 : f32
    %77 = vector.broadcast %cst_35 : f32 to vector<16x1x64xf32>
    %78 = arith.cmpf ole, %76, %77 : vector<16x1x64xf32>
    %cst_36 = arith.constant 0.000000e+00 : f32
    %79 = vector.broadcast %cst_36 : f32 to vector<16x1x64xf32>
    %80 = arith.select %78, %79, %76 : vector<16x1x64xi1>, vector<16x1x64xf32>
    %81 = vector.broadcast %80 : vector<16x1x64xf32> to vector<16x16x64xf32>
    %82 = arith.subf %74, %81 : vector<16x16x64xf32>
    %83 = math.exp %82 : vector<16x16x64xf32>
    %cst_37 = arith.constant dense<0.000000e+00> : vector<16x64xf32>
    %84 = vector.multi_reduction <add>, %83, %cst_37 [1] : vector<16x16x64xf32> to vector<16x64xf32>
    %85 = vector.shape_cast %55 : vector<16x64xf32> to vector<1x16x64xf32>
    %86 = vector.broadcast %85 : vector<1x16x64xf32> to vector<16x16x64xf32>
    %87 = arith.mulf %83, %86 : vector<16x16x64xf32>
    %cst_38 = arith.constant dense<0.000000e+00> : vector<16x64xf32>
    %88 = vector.multi_reduction <add>, %87, %cst_38 [1] : vector<16x16x64xf32> to vector<16x64xf32>
    %cst_39 = arith.constant 0.000000e+00 : f32
    %89 = vector.broadcast %cst_39 : f32 to vector<16x64xf32>
    %90 = arith.cmpf ogt, %84, %89 : vector<16x64xf32>
    %cst_40 = arith.constant 1.000000e+00 : f32
    %91 = vector.broadcast %cst_40 : f32 to vector<16x64xf32>
    %92 = arith.select %90, %84, %91 : vector<16x64xi1>, vector<16x64xf32>
    %93 = arith.divf %88, %92 : vector<16x64xf32>
    %cst_41 = arith.constant 0.000000e+00 : f32
    %94 = vector.broadcast %cst_41 : f32 to vector<16x64xf32>
    %95 = arith.maximumf %93, %94 : vector<16x64xf32>
    %c0_42 = arith.constant 0 : index
    %c0_43 = arith.constant 0 : index
    %96 = vector.load %arg11[%c0_42, %c0_43] : memref<64x32xf32, #tpu.memory_space<vmem>>, vector<64x32xf32>
    %cst_44 = arith.constant dense<0.000000e+00> : vector<16x32xf32>
    %97 = tpu.matmul %95, %96, %cst_44 {dimension_numbers = #tpu.dot_dimension_numbers<[1], [0], [0], [1], [0, 0, 1, 1], [], []>} : vector<16x64xf32>, vector<64x32xf32>, vector<16x32xf32> -> vector<16x32xf32>
    %c0_45 = arith.constant 0 : index
    %c0_46 = arith.constant 0 : index
    %98 = vector.load %arg12[%c0_45, %c0_46] : memref<1x32xf32, #tpu.memory_space<vmem>>, vector<1x32xf32>
    %99 = vector.broadcast %98 : vector<1x32xf32> to vector<16x32xf32>
    %100 = arith.addf %97, %99 : vector<16x32xf32>
    %c0_47 = arith.constant 0 : index
    %c0_48 = arith.constant 0 : index
    %101 = vector.load %arg13[%c0_47, %c0_48] : memref<32x8xf32, #tpu.memory_space<vmem>>, vector<32x8xf32>
    %cst_49 = arith.constant dense<0.000000e+00> : vector<16x8xf32>
    %102 = tpu.matmul %100, %101, %cst_49 {dimension_numbers = #tpu.dot_dimension_numbers<[1], [0], [0], [1], [0, 0, 1, 1], [], []>} : vector<16x32xf32>, vector<32x8xf32>, vector<16x8xf32> -> vector<16x8xf32>
    %c0_50 = arith.constant 0 : index
    %c0_51 = arith.constant 0 : index
    %103 = vector.load %arg14[%c0_50, %c0_51] : memref<1x8xf32, #tpu.memory_space<vmem>>, vector<1x8xf32>
    %104 = vector.broadcast %103 : vector<1x8xf32> to vector<16x8xf32>
    %105 = arith.addf %102, %104 : vector<16x8xf32>
    %cst_52 = arith.constant dense<0xFF800000> : vector<16xf32>
    %106 = vector.multi_reduction <maximumf>, %105, %cst_52 [1] : vector<16x8xf32> to vector<16xf32>
    %107 = vector.shape_cast %106 : vector<16xf32> to vector<16x1xf32>
    %108 = vector.broadcast %107 : vector<16x1xf32> to vector<16x8xf32>
    %109 = arith.subf %105, %108 : vector<16x8xf32>
    %110 = math.exp %109 : vector<16x8xf32>
    %cst_53 = arith.constant dense<0.000000e+00> : vector<16xf32>
    %111 = vector.multi_reduction <add>, %110, %cst_53 [1] : vector<16x8xf32> to vector<16xf32>
    %112 = vector.shape_cast %111 : vector<16xf32> to vector<16x1xf32>
    %113 = math.log %112 : vector<16x1xf32>
    %114 = arith.addf %107, %113 : vector<16x1xf32>
    %115 = vector.broadcast %114 : vector<16x1xf32> to vector<16x8xf32>
    %116 = arith.subf %105, %115 : vector<16x8xf32>
    %c0_54 = arith.constant 0 : index
    %c0_55 = arith.constant 0 : index
    %117 = vector.load %arg15[%c0_54, %c0_55] : memref<16x8xf32, #tpu.memory_space<vmem>>, vector<16x8xf32>
    tpu.vector_store %arg15[%c0_54, %c0_55], %116 {strides = array<i32>} : memref<16x8xf32, #tpu.memory_space<vmem>>, vector<16x8xf32>,
    return
  }
  func.func @transform_0(%arg0: i32) -> (i32, i32) {
    %c0_i32 = arith.constant 0 : i32
    %c0_i32_0 = arith.constant 0 : i32
    %c0_i32_1 = arith.constant 0 : i32
    return %c0_i32, %c0_i32_0 : i32, i32
  }
  func.func @transform_1(%arg0: i32) -> (i32, i32) {
    %c0_i32 = arith.constant 0 : i32
    %c0_i32_0 = arith.constant 0 : i32
    %c0_i32_1 = arith.constant 0 : i32
    return %c0_i32, %c0_i32_0 : i32, i32
  }
  func.func @transform_2(%arg0: i32) -> (i32, i32) {
    %c0_i32 = arith.constant 0 : i32
    %c0_i32_0 = arith.constant 0 : i32
    %c0_i32_1 = arith.constant 0 : i32
    return %c0_i32, %c0_i32_0 : i32, i32
  }
  func.func @transform_3(%arg0: i32) -> (i32, i32) {
    %c0_i32 = arith.constant 0 : i32
    %c0_i32_0 = arith.constant 0 : i32
    %c0_i32_1 = arith.constant 0 : i32
    return %c0_i32, %c0_i32_0 : i32, i32
  }
  func.func @transform_4(%arg0: i32) -> (i32, i32) {
    %c0_i32 = arith.constant 0 : i32
    %c0_i32_0 = arith.constant 0 : i32
    %c0_i32_1 = arith.constant 0 : i32
    return %c0_i32, %c0_i32_0 : i32, i32
  }
  func.func @transform_5(%arg0: i32) -> (i32, i32) {
    %c0_i32 = arith.constant 0 : i32
    %c0_i32_0 = arith.constant 0 : i32
    %c0_i32_1 = arith.constant 0 : i32
    return %c0_i32, %c0_i32_0 : i32, i32
  }
  func.func @transform_6(%arg0: i32) -> (i32, i32) {
    %c0_i32 = arith.constant 0 : i32
    %c0_i32_0 = arith.constant 0 : i32
    %c0_i32_1 = arith.constant 0 : i32
    return %c0_i32, %c0_i32_0 : i32, i32
  }
  func.func @transform_7(%arg0: i32) -> (i32, i32) {
    %c0_i32 = arith.constant 0 : i32
    %c0_i32_0 = arith.constant 0 : i32
    %c0_i32_1 = arith.constant 0 : i32
    return %c0_i32, %c0_i32_0 : i32, i32
  }
  func.func @transform_8(%arg0: i32) -> (i32, i32) {
    %c0_i32 = arith.constant 0 : i32
    %c0_i32_0 = arith.constant 0 : i32
    %c0_i32_1 = arith.constant 0 : i32
    return %c0_i32, %c0_i32_0 : i32, i32
  }
  func.func @transform_9(%arg0: i32) -> (i32, i32) {
    %c0_i32 = arith.constant 0 : i32
    %c0_i32_0 = arith.constant 0 : i32
    %c0_i32_1 = arith.constant 0 : i32
    return %c0_i32, %c0_i32_0 : i32, i32
  }
  func.func @transform_10(%arg0: i32) -> (i32, i32) {
    %c0_i32 = arith.constant 0 : i32
    %c0_i32_0 = arith.constant 0 : i32
    %c0_i32_1 = arith.constant 0 : i32
    return %c0_i32, %c0_i32_0 : i32, i32
  }
  func.func @transform_11(%arg0: i32) -> (i32, i32) {
    %c0_i32 = arith.constant 0 : i32
    %c0_i32_0 = arith.constant 0 : i32
    %c0_i32_1 = arith.constant 0 : i32
    return %c0_i32, %c0_i32_0 : i32, i32
  }
  func.func @transform_12(%arg0: i32) -> (i32, i32) {
    %c0_i32 = arith.constant 0 : i32
    %c0_i32_0 = arith.constant 0 : i32
    %c0_i32_1 = arith.constant 0 : i32
    return %c0_i32, %c0_i32_0 : i32, i32
  }
  func.func @transform_13(%arg0: i32) -> (i32, i32) {
    %c0_i32 = arith.constant 0 : i32
    %c0_i32_0 = arith.constant 0 : i32
    %c0_i32_1 = arith.constant 0 : i32
    return %c0_i32, %c0_i32_0 : i32, i32
  }
  func.func @transform_14(%arg0: i32) -> (i32, i32) {
    %c0_i32 = arith.constant 0 : i32
    %c0_i32_0 = arith.constant 0 : i32
    %c0_i32_1 = arith.constant 0 : i32
    return %c0_i32, %c0_i32_0 : i32, i32
  }
}

</mosaic_0001>

<bundles_post_ra>
// kernel: tpu_custom_call.1
= control target key start
LH: loop header
LB: loop body
LE: loop exit
PB: predicated region body
PF: predicated region fallthrough
CT: control target
= control target key end

     0   :  { %vm62_vm0 = vcmask 130048   ;;  %v166_v0 = vlaneseq  ;;  %v3139_v44 = vmov 1966171168   ;;  %vm740_vm7 = vcmask 523264   ;;  %s4797_s2 = inlined_call_operand.vmem [shape: f32[16,64], index: 2, kind: input, shape index: {}]   ;;  %s4798_s0 = inlined_call_operand.vmem [shape: f32[16,16], index: 0, kind: input, shape index: {}]   ;;  %s4799_s1 = inlined_call_operand.vmem [shape: f32[16,16], index: 1, kind: input, shape index: {}]   ;;  %s4800_s3 = inlined_call_operand.vmem [shape: f32[1,64], index: 3, kind: input, shape index: {}]   ;;  %s4801_s5 = inlined_call_operand.vmem [shape: f32[1,64], index: 5, kind: input, shape index: {}]   ;;  %s4802_s4 = inlined_call_operand.vmem [shape: f32[1,64], index: 4, kind: input, shape index: {}]   ;;  %s4803_s6 = inlined_call_operand.vmem [shape: f32[64,64], index: 6, kind: input, shape index: {}]   ;;  %s4804_s10 = inlined_call_operand.vmem [shape: f32[64,32], index: 10, kind: input, shape index: {}]   ;;  %s4805_s7 = inlined_call_operand.vmem [shape: f32[1,64], index: 7, kind: input, shape index: {}]   ;;  %s4806_s9 = inlined_call_operand.vmem [shape: f32[1,64], index: 9, kind: input, shape index: {}]   ;;  %s4807_s8 = inlined_call_operand.vmem [shape: f32[1,64], index: 8, kind: input, shape index: {}]   ;;  %s4808_s12 = inlined_call_operand.vmem [shape: f32[32,8], index: 12, kind: input, shape index: {}]   ;;  %s4809_s11 = inlined_call_operand.vmem [shape: f32[1,32], index: 11, kind: input, shape index: {}]   ;;  %s4810_s13 = inlined_call_operand.vmem [shape: f32[1,8], index: 13, kind: input, shape index: {}]   ;;  %s4811_s14 = inlined_call_operand.vmem [shape: f32[16,8], index: 14, kind: output, shape index: {}]  }
   0x1   :  { %v51_v1 = vld [vmem:[%s4797_s2] sm:$0xff]  ;;  %v52_v2 = vld [vmem:[%s4797_s2 + $0x8] sm:$0xff]  ;;  %v164_v45 = vunpack.c.l.s4 %v3139_v44 }
   0x2   :  { %v49_v3 = vld [vmem:[%s4798_s0] sm:$0xff]  ;;  %v2894_v4 = vpack.c.bf16 %v52_v2, %v51_v1  ;;  %v3225_v5 = vshrl.u32 %v166_v0, 7  ;;  %v50_v9 = vld [vmem:[%s4798_s0 + $0x8] sm:$0xff] }
   0x3   :  { %2842 = vmatprep.mubr.msk.f32.mxu0 %vm62_vm0, %v49_v3  ;;  %v47_v6 = vld [vmem:[%s4799_s1] sm:$0xff]  ;;  %v48_v14 = vld [vmem:[%s4799_s1 + $0x8] sm:$0xff]  ;;  %v165_v48 = vunpack.c.0.s8 %v164_v45 }
   0x4   :  { %2895 = vmatprep.subr.bf16.mxu0 %v2894_v4  ;;  %v3231_v7 = vsub.s32 0, %v3225_v5  ;;  %v449_v8 = vsub.s32 1, %v3225_v5  ;;  %v460_v12 = vsub.s32 2, %v3225_v5  ;;  %v471_v17 = vsub.s32 3, %v3225_v5  ;;  %v2792_v49 = vld [vmem:[%s4800_s3] ss:$0 sm:$0xff] }
   0x5   :  { %2897 = vmatpush3.bf16.msra.mxu0 %v2894_v4  ;;  %v482_v20 = vsub.s32 4, %v3225_v5  ;;  %v493_v23 = vsub.s32 5, %v3225_v5  ;;  %v504_v26 = vsub.s32 6, %v3225_v5  ;;  %v515_v29 = vsub.s32 7, %v3225_v5  ;;  %v2796_v52 = vld [vmem:[%s4801_s5] ss:$0 sm:$0xff] }
   0x6   :  { %4891 = vst [vmem:[#allocation2_spill] sm:$0xff] %v3231_v7  ;;  %v450_v10 = vrot.slane %v47_v6, %v449_v8  ;;  %v439_v11 = vrot.slane %v47_v6, %v3231_v7  ;;  %v461_v13 = vrot.slane %v47_v6, %v460_v12  ;;  %v527_v15 = vrot.slane %v48_v14, %v3231_v7  ;;  %v2795_v1 = vld [vmem:[%s4802_s4] ss:$0 sm:$0xff] }
   0x7   :  { %v538_v16 = vrot.slane %v48_v14, %v449_v8  ;;  %v472_v18 = vrot.slane %v47_v6, %v471_v17  ;;  %v549_v19 = vrot.slane %v48_v14, %v460_v12  ;;  %v483_v21 = vrot.slane %v47_v6, %v482_v20 }
   0x8   :  { %2843 = vmatmul.mubr.msk.f32.vlgmr.msra.gmra.mrb[0].mxu0 %vm62_vm0, %v50_v9  ;;  %452 = vbcast.lane.b32.xlu1 %v450_v10, 256  ;;  %v560_v22 = vrot.slane %v48_v14, %v471_v17  ;;  %v494_v24 = vrot.slane %v47_v6, %v493_v23  ;;  %v571_v25 = vrot.slane %v48_v14, %v482_v20 }
   0x9   :  { %441 = vbcast.lane.b32.xlu0 %v439_v11, 256  ;;  %v505_v27 = vrot.slane %v47_v6, %v504_v26  ;;  %v582_v28 = vrot.slane %v48_v14, %v493_v23  ;;  %v516_v30 = vrot.slane %v47_v6, %v515_v29  ;;  %v593_v31 = vrot.slane %v48_v14, %v504_v26 }
   0xa   :  { %v604_v32 = vrot.slane %v48_v14, %v515_v29  ;;  %v3284_v53 = vsub.s32 %v165_v48, %v3225_v5 }
   0xc   :  { %456 = vbcast.lane.b32.xlu1 %v450_v10, 264 }
   0xd   :  { %445 = vbcast.lane.b32.xlu0 %v439_v11, 264 }
  0x10   :  { %467 = vbcast.lane.b32.xlu1 %v461_v13, 264 }
  0x11   :  { %463 = vbcast.lane.b32.xlu0 %v461_v13, 256 }
  0x14   :  { %533 = vbcast.lane.b32.xlu1 %v527_v15, 264 }
  0x15   :  { %529 = vbcast.lane.b32.xlu0 %v527_v15, 256 }
  0x18   :  { %544 = vbcast.lane.b32.xlu1 %v538_v16, 264 }
  0x19   :  { %540 = vbcast.lane.b32.xlu0 %v538_v16, 256 }
  0x1c   :  { %478 = vbcast.lane.b32.xlu1 %v472_v18, 264 }
  0x1d   :  { %474 = vbcast.lane.b32.xlu0 %v472_v18, 256 }
  0x20   :  { %555 = vbcast.lane.b32.xlu1 %v549_v19, 264 }
  0x21   :  { %551 = vbcast.lane.b32.xlu0 %v549_v19, 256 }
  0x24   :  { %489 = vbcast.lane.b32.xlu1 %v483_v21, 264 }
  0x25   :  { %485 = vbcast.lane.b32.xlu0 %v483_v21, 256 }
  0x28   :  { %566 = vbcast.lane.b32.xlu1 %v560_v22, 264 }
  0x29   :  { %562 = vbcast.lane.b32.xlu0 %v560_v22, 256 }
  0x2c   :  { %500 = vbcast.lane.b32.xlu1 %v494_v24, 264 }
  0x2d   :  { %496 = vbcast.lane.b32.xlu0 %v494_v24, 256 }
  0x30   :  { %577 = vbcast.lane.b32.xlu1 %v571_v25, 264 }
  0x31   :  { %573 = vbcast.lane.b32.xlu0 %v571_v25, 256 }
  0x34   :  { %511 = vbcast.lane.b32.xlu1 %v505_v27, 264 }
  0x35   :  { %507 = vbcast.lane.b32.xlu0 %v505_v27, 256 }
  0x38   :  { %588 = vbcast.lane.b32.xlu1 %v582_v28, 264 }
  0x39   :  { %584 = vbcast.lane.b32.xlu0 %v582_v28, 256 }
  0x3c   :  { %522 = vbcast.lane.b32.xlu1 %v516_v30, 264 }
  0x3d   :  { %518 = vbcast.lane.b32.xlu0 %v516_v30, 256 }
  0x40   :  { %599 = vbcast.lane.b32.xlu1 %v593_v31, 264 }
  0x41   :  { %595 = vbcast.lane.b32.xlu0 %v593_v31, 256 }
  0x44   :  { %610 = vbcast.lane.b32.xlu1 %v604_v32, 264 }
  0x45   :  { %606 = vbcast.lane.b32.xlu0 %v604_v32, 256 }
  0x7a   :  { %v3249_v33 = vpop.permute.xlu1 %452 }
  0x7b   :  { %4892 = vst [vmem:[#allocation3_spill] sm:$0xff] %v3249_v33  ;;  %v3251_v34 = vpop.permute.xlu0 %441  ;;  %vm614_vm1 = vcmp.gt.f32.partialorder %v3249_v33, 0.0 }
  0x7c   :  { %4893 = vst [vmem:[#allocation4_spill] sm:$0xff] %v3251_v34  ;;  %vm612_vm2 = vcmp.gt.f32.partialorder %v3251_v34, 0.0 }
  0x7e   :  { %v3253_v35 = vpop.permute.xlu1 %456 }
  0x7f   :  { %4894 = vst [vmem:[#allocation5_spill] sm:$0xff] %v3253_v35  ;;  %v3255_v36 = vpop.permute.xlu0 %445  ;;  %vm4888_vm4 = vcmp.gt.f32.partialorder %v3253_v35, 0.0 }
  0x80   :  { %4895 = vst [vmem:[#allocation6_spill] sm:$0xff] %v3255_v36  ;;  %vm613_vm3 = vcmp.gt.f32.partialorder %v3255_v36, 0.0 }
  0x82   :  { %v3257_v37 = vpop.permute.xlu1 %467 }
  0x83   :  { %4896 = vst [vmem:[#allocation7_spill] sm:$0xff] %v3257_v37  ;;  %v3259_v38 = vpop.permute.xlu0 %463  ;;  %vm4881_vm5 = vcmp.gt.f32.partialorder %v3257_v37, 0.0 }
  0x84   :  { %4897 = vst [vmem:[#allocation8_spill] sm:$0xff] %v3259_v38  ;;  %vm4882_vm6 = vcmp.gt.f32.partialorder %v3259_v38, 0.0 }
  0x86   :  { %v3261_v39 = vpop.permute.xlu1 %533 }
  0x87   :  { %4898 = vst [vmem:[#allocation9_spill] sm:$0xff] %v3261_v39  ;;  %v3263_v40 = vpop.permute.xlu0 %529  ;;  %vm4839_vm14 = vcmp.gt.f32.partialorder %v3261_v39, 0.0 }
  0x88   :  { %4899 = vst [vmem:[#allocation10_spill] sm:$0xff] %v3263_v40 }
  0x8a   :  { %v3265_v41 = vpop.permute.xlu1 %544 }
  0x8b   :  { %4900 = vst [vmem:[#allocation11_spill] sm:$0xff] %v3265_v41  ;;  %v3267_v42 = vpop.permute.xlu0 %540 }
  0x8c   :  { %4901 = vst [vmem:[#allocation12_spill] sm:$0xff] %v3267_v42 }
  0x8e   :  { %v3269_v43 = vpop.permute.xlu1 %478 }
  0x8f   :  { %4902 = vst [vmem:[#allocation13_spill] sm:$0xff] %v3269_v43  ;;  %v3271_v46 = vpop.permute.xlu0 %474  ;;  %vm4842_vm8 = vcmp.gt.f32.partialorder %v3269_v43, 0.0 }
  0x90   :  { %4903 = vst [vmem:[#allocation14_spill] sm:$0xff] %v3271_v46  ;;  %vm4880_vm9 = vcmp.gt.f32.partialorder %v3271_v46, 0.0 }
  0x92   :  { %v3273_v47 = vpop.permute.xlu1 %555 }
  0x93   :  { %4904 = vst [vmem:[#allocation15_spill] sm:$0xff] %v3273_v47  ;;  %v3278_v50 = vpop.permute.xlu0 %551 }
  0x94   :  { %4905 = vst [vmem:[#allocation16_spill] sm:$0xff] %v3278_v50 }
  0x96   :  { %v3288_v56 = vpop.permute.xlu1 %489 }
  0x97   :  { %4907 = vst [vmem:[#allocation18_spill] sm:$0xff] %v3288_v56  ;;  %v3295_v62 = vpop.permute.xlu0 %485  ;;  %vm4840_vm11 = vcmp.gt.f32.partialorder %v3288_v56, 0.0 }
  0x98   :  { %4909 = vst [vmem:[#allocation20_spill] sm:$0xff] %v3295_v62  ;;  %vm4841_vm10 = vcmp.gt.f32.partialorder %v3295_v62, 0.0 }
  0x9a   :  { %v3305_v5 = vpop.permute.xlu1 %566 }
  0x9b   :  { %4910 = vst [vmem:[#allocation21_spill] sm:$0xff] %v3305_v5  ;;  %v3335_v21 = vpop.permute.xlu0 %562 }
  0x9c   :  { %4916 = vst [vmem:[#allocation27_spill] sm:$0xff] %v3335_v21 }
  0x9e   :  { %v3356_v29 = vpop.permute.xlu1 %500 }
  0x9f   :  { %4918 = vst [vmem:[#allocation29_spill] sm:$0xff] %v3356_v29 }
  0xdb   :  { %v2844_v51 = vpop.f32.mrb[0].mxu0 }
  0xdc   :  { %v3286_v54 = vadd.f32 %v2844_v51, %v2792_v49  ;;  %v135_v55 = vpop.f32.mrb[1].mxu0 }
  0xdd   :  { %v3290_v57 = vadd.f32 %v2792_v49, %v135_v55 }
  0xde   :  { %4906 = vst [vmem:[#allocation17_spill] sm:$0xff] %v3286_v54  ;;  %v159_v58 = vmul.f32 %v2796_v52, %v3286_v54  ;;  %v3320_v14 = vmul.f32 %v2795_v1, %v3286_v54 }
  0xdf   :  { %4908 = vst [vmem:[#allocation19_spill] sm:$0xff] %v3290_v57  ;;  %v158_v59 = vmul.f32 %v2796_v52, %v3290_v57  ;;  %v3369_v49 = vmul.f32 %v2795_v1, %v3290_v57  ;;  %v3372_v52 = vpop.permute.xlu0 %496  ;;  %v3390_v1 = vpop.permute.xlu1 %577 }
  0xe0   :  { %v211_v60 = vcombine.high %v159_v58, %v159_v58  ;;  %v218_v61 = vrot.slane %v159_v58, %v3284_v53  ;;  %4919 = vst [vmem:[#allocation30_spill] sm:$0xff] %v3372_v52  ;;  %4920 = vst [vmem:[#allocation31_spill] sm:$0xff] %v3390_v1 }
  0xe1   :  { %v162_v63 = vcombine.high %v158_v59, %v158_v59  ;;  %v169_v0 = vrot.slane %v158_v59, %v3284_v53 }
  0xe2   :  { %v3302_v2 = vrot.slane %v211_v60, %v3284_v53  ;;  %v226_v3 = vcombine.high %v218_v61, %v218_v61  ;;  %v234_v4 = vrot.slane %v218_v61, %v3284_v53 }
  0xe3   :  { %v3308_v6 = vrot.slane %v162_v63, %v3284_v53  ;;  %v177_v8 = vcombine.high %v169_v0, %v169_v0  ;;  %v185_v9 = vrot.slane %v169_v0, %v3284_v53  ;;  %v3424_v50 = vpop.permute.xlu1 %511 }
  0xe4   :  { %v3313_v10 = vrot.slane %v3302_v2, %v3284_v53  ;;  %v248_v11 = vrot.slane %v226_v3, %v3284_v53  ;;  %v256_v12 = vcombine.high %v234_v4, %v234_v4  ;;  %v3317_v13 = vrot.slane %v234_v4, %v3231_v7  ;;  %v3420_v4 = vpop.permute.xlu0 %573  ;;  %4922 = vst [vmem:[#allocation33_spill] sm:$0xff] %v3424_v50 }
  0xe5   :  { %v192_v15 = vrot.slane %v3308_v6, %v3284_v53  ;;  %v199_v16 = vrot.slane %v177_v8, %v3284_v53  ;;  %v207_v23 = vcombine.high %v185_v9, %v185_v9  ;;  %v263_v32 = vrot.slane %v185_v9, %v3231_v7  ;;  %4921 = vst [vmem:[#allocation32_spill] sm:$0xff] %v3420_v4 }
  0xe6   :  { %4911 = vst [vmem:[#allocation22_spill] sm:$0xff] %v3313_v10  ;;  %4912 = vst [vmem:[#allocation23_spill] sm:$0xff] %v3317_v13  ;;  %v258_v17 = vcombine.high %v248_v11, %v248_v11  ;;  %v3326_v18 = vrot.slane %v248_v11, %v3231_v7  ;;  %v3329_v19 = vrot.slane %v256_v12, %v3231_v7  ;;  %vm4837_vm12 = vcmp.gt.f32.partialorder %v3424_v50, 0.0 }
  0xe7   :  { %v3333_v20 = vrot.slane %v3313_v10, %v3231_v7  ;;  %v3339_v22 = vadd.f32 %v3317_v13, %v3320_v14  ;;  %v209_v24 = vcombine.high %v199_v16, %v199_v16  ;;  %v208_v30 = vcombine.high %v192_v15, %v192_v15 }
  0xe8   :  { %4913 = vst [vmem:[#allocation24_spill] sm:$0xff] %v3326_v18  ;;  %4914 = vst [vmem:[#allocation25_spill] sm:$0xff] %v3329_v19  ;;  %v3342_v25 = vrot.slane %v258_v17, %v3231_v7  ;;  %v3346_v26 = vadd.f32 %v3326_v18, %v3320_v14  ;;  %v3350_v27 = vadd.f32 %v3329_v19, %v3320_v14 }
  0xe9   :  { %4915 = vst [vmem:[#allocation26_spill] sm:$0xff] %v3333_v20  ;;  %v3354_v28 = vadd.f32 %v3333_v20, %v3320_v14  ;;  %v267_v44 = vrot.slane %v199_v16, %v3231_v7  ;;  %v3365_v45 = vmul.f32 0.2, %v3339_v22  ;;  %v271_v48 = vrot.slane %v207_v23, %v3231_v7 }
  0xea   :  { %4917 = vst [vmem:[#allocation28_spill] sm:$0xff] %v3342_v25  ;;  %v3360_v31 = vadd.f32 %v3342_v25, %v3320_v14  ;;  %v275_v51 = vrot.slane %v209_v24, %v3231_v7  ;;  %v3375_v55 = vmul.f32 0.2, %v3346_v26  ;;  %v279_v58 = vrot.slane %v192_v15, %v3231_v7 }
  0xeb   :  { %v3379_v59 = vrot.slane %v208_v30, %v3231_v7  ;;  %v3382_v60 = vmul.f32 0.2, %v3350_v27  ;;  %v340_v61 = vadd.f32 %v263_v32, %v3369_v49  ;;  %v341_v63 = vadd.f32 %v263_v32, %v3320_v14 }
  0xec   :  { %v342_v0 = vadd.f32 %v267_v44, %v3369_v49  ;;  %v3393_v3 = vmul.f32 0.2, %v3354_v28  ;;  %v343_v8 = vadd.f32 %v267_v44, %v3320_v14  ;;  %v344_v9 = vadd.f32 %v271_v48, %v3369_v49 }
  0xed   :  { %v3403_v11 = vmul.f32 0.2, %v3360_v31  ;;  %v345_v12 = vadd.f32 %v271_v48, %v3320_v14  ;;  %v346_v15 = vadd.f32 %v275_v51, %v3369_v49  ;;  %v347_v16 = vadd.f32 %v275_v51, %v3320_v14 }
  0xee   :  { %v348_v23 = vadd.f32 %v279_v58, %v3369_v49  ;;  %v349_v24 = vadd.f32 %v279_v58, %v3320_v14  ;;  %v353_v30 = vadd.f32 %v3379_v59, %v3320_v14  ;;  %v372_v44 = vmul.f32 0.2, %v340_v61 }
  0xef   :  { %v373_v48 = vmul.f32 0.2, %v341_v63  ;;  %v374_v51 = vmul.f32 0.2, %v342_v0  ;;  %v375_v20 = vmul.f32 0.2, %v343_v8  ;;  %v227_v19 = vcombine.high %v3302_v2, %v3302_v2 }
  0xf0   :  { %v376_v25 = vmul.f32 0.2, %v344_v9  ;;  %v377_v17 = vmul.f32 0.2, %v345_v12  ;;  %v378_v58 = vmul.f32 0.2, %v346_v15  ;;  %v404_v21 = vmax.f32 %v340_v61, %v372_v44 }
  0xf1   :  { %v379_v18 = vmul.f32 0.2, %v347_v16  ;;  %v380_v13 = vmul.f32 0.2, %v348_v23  ;;  %v381_v42 = vmul.f32 0.2, %v349_v24  ;;  %v405_v32 = vmax.f32 %v341_v63, %v373_v48 }
  0xf2   :  { %v385_v40 = vmul.f32 0.2, %v353_v30  ;;  %v406_v54 = vmax.f32 %v342_v0, %v374_v51  ;;  %v407_v5 = vmax.f32 %v343_v8, %v375_v20  ;;  %v408_v57 = vmax.f32 %v344_v9, %v376_v25 }
  0xf3   :  { %v409_v1 = vmax.f32 %v345_v12, %v377_v17  ;;  %v410_v4 = vmax.f32 %v346_v15, %v378_v58  ;;  %v411_v2 = vmax.f32 %v347_v16, %v379_v18  ;;  %v412_v29 = vmax.f32 %v348_v23, %v380_v13 }
  0xf4   :  { %v413_v52 = vmax.f32 %v349_v24, %v381_v42  ;;  %v3431_v61 = vsel %vm612_vm2, %v404_v21, -1e+30  ;;  %v3435_v63 = vsel %vm613_vm3, %v405_v32, -1e+30  ;;  %v3439_v20 = vsel %vm614_vm1, %v406_v54, -1e+30  ;;  %v3456_v21 = vpop.permute.xlu0 %507 }
  0xf5   :  { %v3442_v25 = vrot.slane %v227_v19, %v3284_v53  ;;  %v3446_v18 = vsel %vm4888_vm4, %v407_v5, -1e+30  ;;  %v3450_v42 = vsel %vm4882_vm6, %v408_v57, -1e+30  ;;  %v3454_v13 = vsel %vm4881_vm5, %v409_v1, -1e+30 }
  0xf6   :  { %4923 = vst [vmem:[#allocation34_spill] sm:$0xff] %v3456_v21  ;;  %v352_v54 = vadd.f32 %v3379_v59, %v3369_v49  ;;  %v417_v0 = vmax.f32 %v353_v30, %v385_v40  ;;  %v3462_v19 = vsel %vm4880_vm9, %v410_v4, -1e+30  ;;  %v3466_v5 = vsel %vm4842_vm8, %v411_v2, -1e+30  ;;  %v3504_v2 = vpop.permute.xlu1 %588 }
  0xf7   :  { %v3470_v57 = vsel %vm4841_vm10, %v412_v29, -1e+30  ;;  %vm4838_vm13 = vcmp.gt.f32.partialorder %v3456_v21, 0.0  ;;  %v3475_v1 = vsel %vm4840_vm11, %v413_v52, -1e+30  ;;  %v741_v40 = vsel %vm740_vm7, %v3431_v61, -inf }
  0xf8   :  { %v742_v59 = vsel %vm740_vm7, %v3435_v63, -inf  ;;  %v315_v4 = vrot.slane %v3442_v25, %v3231_v7  ;;  %v750_v29 = vsel %vm740_vm7, %v3439_v20, -inf  ;;  %v751_v9 = vsel %vm740_vm7, %v3446_v18, -inf  ;;  %4924 = vst [vmem:[#allocation35_spill] sm:$0xff] %v3504_v2 }
  0xf9   :  { %v743_v8 = vmax.f32 %v741_v40, %v742_v59  ;;  %v759_v52 = vsel %vm740_vm7, %v3450_v42, -inf  ;;  %v752_v12 = vmax.f32 %v750_v29, %v751_v9  ;;  %v760_v15 = vsel %vm740_vm7, %v3454_v13, -inf }
  0xfa   :  { %v768_v16 = vsel %vm740_vm7, %v3462_v19, -inf  ;;  %v769_v17 = vsel %vm740_vm7, %v3466_v5, -inf  ;;  %v761_v24 = vmax.f32 %v759_v52, %v760_v15  ;;  %v777_v32 = vsel %vm740_vm7, %v3470_v57, -inf }
  0xfb   :  { %v744_v23 = vrot.slane %v743_v8, 4  ;;  %v770_v30 = vmax.f32 %v768_v16, %v769_v17  ;;  %v3500_v44 = vsel %vm4837_vm12, %v417_v0, -1e+30  ;;  %v753_v48 = vrot.slane %v752_v12, 4  ;;  %v3508_v17 = vpop.permute.xlu0 %584 }
  0xfc   :  { %v778_v51 = vsel %vm740_vm7, %v3475_v1, -inf  ;;  %v384_v58 = vmul.f32 0.2, %v352_v54  ;;  %v762_v59 = vrot.slane %v761_v24, 4  ;;  %vm4843_vm15 = vcmp.gt.f32.partialorder %v3504_v2, 0.0  ;;  %4925 = vst [vmem:[#allocation36_spill] sm:$0xff] %v3508_v17 }
  0xfd   :  { %v745_v40 = vmax.f32 %v743_v8, %v744_v23  ;;  %v771_v29 = vrot.slane %v770_v30, 4  ;;  %v779_v9 = vmax.f32 %v777_v32, %v778_v51  ;;  %v754_v52 = vmax.f32 %v752_v12, %v753_v48  ;;  %v1415_v2 = vld [vmem:[%s4803_s6 + $0x10] sm:$0xff] }
  0xfe   :  { %v416_v15 = vmax.f32 %v352_v54, %v384_v58  ;;  %v367_v16 = vadd.f32 %v315_v4, %v3320_v14  ;;  %v366_v0 = vadd.f32 %v315_v4, %v3369_v49  ;;  %v763_v50 = vmax.f32 %v761_v24, %v762_v59 }
  0xff   :  { %v746_v10 = vrot.slane %v745_v40, 2  ;;  %v772_v56 = vmax.f32 %v770_v30, %v771_v29  ;;  %v780_v62 = vrot.slane %v779_v9, 4  ;;  %vm4844_vm0 = vcmp.gt.f32.partialorder %v3508_v17, 0.0 }
 0x100   :  { %v755_v8 = vrot.slane %v754_v52, 2  ;;  %v796_v23 = vsel %vm740_vm7, %v3500_v44, -inf  ;;  %v3516_v12 = vsel %vm4838_vm13, %v416_v15, -1e+30  ;;  %v399_v54 = vmul.f32 0.2, %v367_v16 }
 0x101   :  { %v747_v32 = vmax.f32 %v745_v40, %v746_v10  ;;  %v764_v48 = vrot.slane %v763_v50, 2  ;;  %v773_v51 = vrot.slane %v772_v56, 2  ;;  %v781_v58 = vmax.f32 %v779_v9, %v780_v62 }
 0x102   :  { %v756_v4 = vmax.f32 %v754_v52, %v755_v8  ;;  %v795_v24 = vsel %vm740_vm7, %v3516_v12, -inf  ;;  %v431_v30 = vmax.f32 %v367_v16, %v399_v54  ;;  %v398_v59 = vmul.f32 0.2, %v366_v0 }
 0x103   :  { %v748_v29 = vrot.slane %v747_v32, 1  ;;  %v765_v43 = vmax.f32 %v763_v50, %v764_v48  ;;  %v774_v46 = vmax.f32 %v772_v56, %v773_v51  ;;  %v782_v37 = vrot.slane %v781_v58, 2 }
 0x104   :  { %vm4846_vm12 = vcmp.gt.f32.partialorder %v3265_v41, 0.0  ;;  %v4926_v15 = vmax.f32 %v3339_v22, %v3365_v45  ;;  %v757_v62 = vrot.slane %v756_v4, 1  ;;  %v797_v40 = vmax.f32 %v795_v24, %v796_v23 }
 0x105   :  { %v430_v9 = vmax.f32 %v366_v0, %v398_v59  ;;  %v749_v52 = vmax.f32 %v747_v32, %v748_v29  ;;  %v766_v8 = vrot.slane %v765_v43, 1  ;;  %v775_v16 = vrot.slane %v774_v46, 1 }
 0x106   :  { %v3526_v10 = vsel %vm4839_vm14, %v4926_v15, -1e+30  ;;  %v783_v54 = vmax.f32 %v781_v58, %v782_v37  ;;  %vm4845_vm13 = vcmp.gt.f32.partialorder %v3273_v47, 0.0  ;;  %v758_v56 = vmax.f32 %v756_v4, %v757_v62 }
 0x107   :  { %v3533_v22 = vsel %vm4843_vm15, %v431_v30, -1e+30  ;;  %v178_v45 = vcombine.high %v3308_v6, %v3308_v6  ;;  %v767_v48 = vmax.f32 %v765_v43, %v766_v8  ;;  %v776_v23 = vmax.f32 %v774_v46, %v775_v16 }
 0x108   :  { %v784_v0 = vrot.slane %v783_v54, 1  ;;  %vm885_vm14 = vcmp.le.f32.partialorder %v749_v52, -5e+29  ;;  %vm886_vm11 = vcmp.le.f32.partialorder %v758_v56, -5e+29  ;;  %v798_v37 = vrot.slane %v797_v40, 4 }
 0x109   :  { %v901_v32 = vsel %vm885_vm14, 0.0, %v749_v52  ;;  %v3539_v51 = vsel %vm4844_vm0, %v430_v9, -1e+30  ;;  %vm887_vm10 = vcmp.le.f32.partialorder %v767_v48, -5e+29  ;;  %v902_v4 = vsel %vm886_vm11, 0.0, %v758_v56 }
 0x10a   :  { %v785_v58 = vmax.f32 %v783_v54, %v784_v0  ;;  %vm888_vm8 = vcmp.le.f32.partialorder %v776_v23, -5e+29  ;;  %v903_v24 = vsel %vm887_vm10, 0.0, %v767_v48  ;;  %v917_v30 = vsub.f32 %v3431_v61, %v901_v32  ;;  %v4930_v0 = vld [vmem:[#allocation29_spill] sm:$0xff] }
 0x10b   :  { %v918_v6 = vsub.f32 %v3435_v63, %v901_v32  ;;  %v859_v43 = vsel %vm740_vm7, %v3533_v22, -inf  ;;  %v904_v46 = vsel %vm888_vm8, 0.0, %v776_v23  ;;  %v919_v59 = vsub.f32 %v3439_v20, %v902_v4  ;;  %v3578_v32 = vpop.permute.xlu1 %522 }
 0x10c   :  { %vm889_vm15 = vcmp.le.f32.partialorder %v785_v58, -5e+29  ;;  %v858_v29 = vsel %vm740_vm7, %v3539_v51, -inf  ;;  %v920_v62 = vsub.f32 %v3446_v18, %v902_v4  ;;  %v921_v9 = vsub.f32 %v3450_v42, %v903_v24  ;;  %4931 = vst [vmem:[#allocation37_spill] sm:$0xff] %v3578_v32 }
 0x10d   :  { %v3548_v15 = vsel %vm889_vm15, 0.0, %v785_v58  ;;  %v799_v52 = vmax.f32 %v797_v40, %v798_v37  ;;  %v4927_v61 = vmax.f32 %v3346_v26, %v3375_v55  ;;  %v922_v8 = vsub.f32 %v3454_v13, %v903_v24 }
 0x10e   :  { %v949_v20 = vmul.f32 1.442695, %v917_v30  ;;  %v206_v16 = vrot.slane %v178_v45, %v3284_v53  ;;  %v923_v54 = vsub.f32 %v3462_v19, %v904_v46  ;;  %v924_v56 = vsub.f32 %v3466_v5, %v904_v46  ;;  %v4929_v45 = vld [vmem:[#allocation30_spill] sm:$0xff]  ;;  %v3586_v30 = vpop.permute.xlu0 %518 }
 0x10f   :  { %v3557_v63 = vsel %vm4846_vm12, %v4927_v61, -1e+30  ;;  %v951_v18 = vmul.f32 1.442695, %v918_v6  ;;  %v860_v48 = vmax.f32 %v858_v29, %v859_v43  ;;  %v4928_v42 = vmax.f32 %v3350_v27, %v3382_v60  ;;  %4932 = vst [vmem:[#allocation38_spill] sm:$0xff] %v3586_v30 }
 0x110   :  { %v925_v55 = vsub.f32 %v3470_v57, %v3548_v15  ;;  %v953_v40 = vmul.f32 1.442695, %v919_v59  ;;  %vm4879_vm8 = vcmp.gt.f32.partialorder %v4929_v45, 0.0  ;;  %2939 = vpow2.f32 %v949_v20 }
 0x111   :  { %v3568_v26 = vsel %vm4845_vm13, %v4928_v42, -1e+30  ;;  %v955_v19 = vmul.f32 1.442695, %v920_v62  ;;  %v957_v5 = vmul.f32 1.442695, %v921_v9  ;;  %v210_v37 = vcombine.high %v206_v16, %v206_v16 }
 0x112   :  { %v800_v23 = vrot.slane %v799_v52, 2  ;;  %vm4878_vm10 = vcmp.gt.f32.partialorder %v4930_v0, 0.0  ;;  %v3576_v27 = vmul.f32 1.442695, %v922_v8  ;;  %v861_v60 = vrot.slane %v860_v48, 4  ;;  %v4933_v9 = vld [vmem:[#allocation22_spill] sm:$0xff] }
 0x113   :  { %v283_v57 = vrot.slane %v206_v16, %v3231_v7  ;;  %2941 = vpow2.f32 %v951_v18  ;;  %v3581_v58 = vmul.f32 1.442695, %v923_v54  ;;  %v3583_v4 = vmul.f32 1.442695, %v924_v56 }
 0x114   :  { %v801_v24 = vmax.f32 %v799_v52, %v800_v23  ;;  %vm4853_vm11 = vcmp.gt.f32.partialorder %v3578_v32, 0.0  ;;  %v3588_v6 = vmul.f32 1.442695, %v925_v55  ;;  %v862_v43 = vmax.f32 %v860_v48, %v861_v60  ;;  %v3600_v60 = vpop.permute.xlu1 %599 }
 0x115   :  { %v291_v46 = vrot.slane %v210_v37, %v3231_v7  ;;  %v350_v59 = vadd.f32 %v283_v57, %v3369_v49  ;;  %2943 = vpow2.f32 %v953_v40  ;;  %v351_v62 = vadd.f32 %v283_v57, %v3320_v14  ;;  %4934 = vst [vmem:[#allocation22_spill] sm:$0xff] %v3600_v60  ;;  %v3603_v37 = vpop.permute.xlu0 %595 }
 0x116   :  { %v802_v29 = vrot.slane %v801_v24, 1  ;;  %vm4877_vm14 = vcmp.gt.f32.partialorder %v3586_v30, 0.0  ;;  %v257_v52 = vcombine.high %v4933_v9, %v4933_v9  ;;  %2945 = vpow2.f32 %v955_v19  ;;  %4935 = vst [vmem:[#allocation39_spill] sm:$0xff] %v3603_v37 }
 0x117   :  { %v863_v61 = vrot.slane %v862_v43, 2  ;;  %v355_v8 = vadd.f32 %v291_v46, %v3320_v14  ;;  %v382_v20 = vmul.f32 0.2, %v350_v59  ;;  %v383_v54 = vmul.f32 0.2, %v351_v62 }
 0x118   :  { %v803_v16 = vmax.f32 %v801_v24, %v802_v29  ;;  %v354_v56 = vadd.f32 %v291_v46, %v3369_v49  ;;  %v259_v18 = vcombine.high %v3442_v25, %v3442_v25  ;;  %2947 = vpow2.f32 %v957_v5 }
 0x119   :  { %v864_v48 = vmax.f32 %v862_v43, %v863_v61  ;;  %v387_v42 = vmul.f32 0.2, %v355_v8  ;;  %v414_v55 = vmax.f32 %v350_v59, %v382_v20  ;;  %v415_v40 = vmax.f32 %v351_v62, %v383_v54 }
 0x11a   :  { %vm891_vm15 = vcmp.le.f32.partialorder %v803_v16, -5e+29  ;;  %v386_v23 = vmul.f32 0.2, %v354_v56  ;;  %v319_v19 = vrot.slane %v257_v52, %v3231_v7  ;;  %vm4854_vm0 = vcmp.gt.f32.partialorder %v3600_v60, 0.0  ;;  %v3611_v25 = vpop.eup %2939 }
 0x11b   :  { %v907_v57 = vsel %vm891_vm15, 0.0, %v803_v16  ;;  %v865_v24 = vrot.slane %v864_v48, 1  ;;  %v419_v29 = vmax.f32 %v355_v8, %v387_v42  ;;  %v3607_v46 = vsel %vm4879_vm8, %v414_v55, -1e+30 }
 0x11c   :  { %vm4855_vm13 = vcmp.gt.f32.partialorder %v3603_v37, 0.0  ;;  %v929_v5 = vsub.f32 %v3516_v12, %v907_v57  ;;  %v930_v43 = vsub.f32 %v3500_v44, %v907_v57  ;;  %v3617_v59 = vsel %vm4878_vm10, %v415_v40, -1e+30 }
 0x11d   :  { %v786_v62 = vsel %vm740_vm7, %v3607_v46, -inf  ;;  %v866_v9 = vmax.f32 %v864_v48, %v865_v24  ;;  %v3623_v52 = vsel %vm4853_vm11, %v419_v29, -1e+30  ;;  %v787_v61 = vsel %vm740_vm7, %v3617_v59, -inf  ;;  %v3627_v20 = vpop.eup %2941  ;;  %v1413_v29 = vld [vmem:[%s4803_s6] sm:$0xff] }
 0x11e   :  { %v418_v8 = vmax.f32 %v354_v56, %v386_v23  ;;  %v973_v12 = vmul.f32 1.442695, %v929_v5  ;;  %v975_v44 = vmul.f32 1.442695, %v930_v43  ;;  %v788_v16 = vmax.f32 %v786_v62, %v787_v61  ;;  %v4936_v56 = vld [vmem:[#allocation31_spill] sm:$0xff]  ;;  %v3652_v61 = vpop.permute.xlu1 %610 }
 0x11f   :  { %v805_v54 = vsel %vm740_vm7, %v3623_v52, -inf  ;;  %vm898_vm15 = vcmp.le.f32.partialorder %v866_v9, -5e+29  ;;  %v369_v42 = vadd.f32 %v319_v19, %v3320_v14  ;;  %v368_v55 = vadd.f32 %v319_v19, %v3369_v49  ;;  %v3637_v40 = vpop.eup %2943  ;;  %v1414_v5 = vld [vmem:[%s4803_s6 + $0x8] sm:$0xff]  ;;  %4937 = vst [vmem:[#allocation40_spill] sm:$0xff] %v3652_v61 }
 0x120   :  { %v3633_v48 = vsel %vm4877_vm14, %v418_v8, -1e+30  ;;  %vm4875_vm12 = vcmp.gt.f32.partialorder %v4936_v56, 0.0  ;;  %2949 = vpow2.f32 %v973_v12  ;;  %v914_v23 = vsel %vm898_vm15, 0.0, %v866_v9  ;;  %v3648_v43 = vpop.eup %2945 }
 0x121   :  { %v789_v57 = vrot.slane %v788_v16, 4  ;;  %v804_v24 = vsel %vm740_vm7, %v3633_v48, -inf  ;;  %2951 = vpow2.f32 %v975_v44  ;;  %v943_v19 = vsub.f32 %v3539_v51, %v914_v23  ;;  %v1416_v44 = vld [vmem:[%s4803_s6 + $0x18] sm:$0xff] }
 0x122   :  { %v944_v62 = vsub.f32 %v3533_v22, %v914_v23  ;;  %v806_v9 = vmax.f32 %v804_v24, %v805_v54  ;;  %v401_v12 = vmul.f32 0.2, %v369_v42  ;;  %v400_v50 = vmul.f32 0.2, %v368_v55  ;;  %v3661_v17 = vpop.eup %2947 }
 0x123   :  { %v790_v8 = vmax.f32 %v788_v16, %v789_v57  ;;  %v323_v13 = vrot.slane %v259_v18, %v3231_v7  ;;  %v1001_v51 = vmul.f32 1.442695, %v943_v19  ;;  %v2898_v23 = vpack.c.bf16 %v1414_v5, %v1413_v29  ;;  %v3665_v18 = vpop.permute.xlu0 %606  ;;  %v1417_v29 = vld [vmem:[%s4803_s6 + $0x20] sm:$0xff] }
 0x124   :  { %v1003_v22 = vmul.f32 1.442695, %v944_v62  ;;  %v807_v54 = vrot.slane %v806_v9, 4  ;;  %v433_v16 = vmax.f32 %v369_v42, %v401_v12  ;;  %v432_v57 = vmax.f32 %v368_v55, %v400_v50  ;;  %4938 = vst [vmem:[#allocation41_spill] sm:$0xff] %v3665_v18  ;;  %v1418_v50 = vld [vmem:[%s4803_s6 + $0x28] sm:$0xff]  ;;  %v1419_v12 = vld [vmem:[%s4803_s6 + $0x30] sm:$0xff] }
 0x125   :  { %v791_v24 = vrot.slane %v790_v8, 2  ;;  %v371_v47 = vadd.f32 %v323_v13, %v3320_v14  ;;  %vm4868_vm15 = vcmp.gt.f32.partialorder %v3652_v61, 0.0  ;;  %2953 = vpow2.f32 %v1001_v51  ;;  %2899 = vmatprep.subr.bf16.mxu1 %v2898_v23 }
 0x126   :  { %v808_v41 = vmax.f32 %v806_v9, %v807_v54  ;;  %v3668_v39 = vadd.f32 %v323_v13, %v3369_v49  ;;  %v2902_v32 = vpack.c.bf16 %v1416_v44, %v1415_v2  ;;  %2955 = vpow2.f32 %v1003_v22  ;;  %2901 = vmatpush3.bf16.msra.mxu1 %v2898_v23  ;;  %v1420_v44 = vld [vmem:[%s4803_s6 + $0x38] sm:$0xff] }
 0x127   :  { %v792_v14 = vmax.f32 %v790_v8, %v791_v24  ;;  %v3678_v42 = vsel %vm4854_vm0, %v433_v16, -1e+30  ;;  %v3682_v13 = vsel %vm4855_vm13, %v432_v57, -1e+30  ;;  %v403_v19 = vmul.f32 0.2, %v371_v47 }
 0x128   :  { %v809_v2 = vrot.slane %v808_v41, 2  ;;  %v868_v55 = vsel %vm740_vm7, %v3678_v42, -inf  ;;  %v867_v5 = vsel %vm740_vm7, %v3682_v13, -inf  ;;  %vm4874_vm11 = vcmp.gt.f32.partialorder %v3665_v18, 0.0  ;;  %2903 = vmatprep.subr.bf16.mxu1 %v2902_v32 }
 0x129   :  { %2957 = vpow2.f32 %v3576_v27  ;;  %v793_v62 = vrot.slane %v792_v14, 1  ;;  %v869_v9 = vmax.f32 %v867_v5, %v868_v55  ;;  %v2906_v8 = vpack.c.bf16 %v1418_v50, %v1417_v29 }
 0x12a   :  { %v4939_v51 = vmax.f32 %v3354_v28, %v3393_v3  ;;  %2959 = vpow2.f32 %v3581_v58  ;;  %v4940_v27 = vsub.f32 %v3475_v1, %v3548_v15  ;;  %v810_v23 = vmax.f32 %v808_v41, %v809_v2  ;;  %v3707_v24 = vpop.eup %2949  ;;  %2905 = vmatpush3.bf16.msra.mxu1 %v2902_v32 }
 0x12b   :  { %2961 = vpow2.f32 %v3583_v4  ;;  %v794_v16 = vmax.f32 %v792_v14, %v793_v62  ;;  %v870_v57 = vrot.slane %v869_v9, 4  ;;  %v402_v29 = vmul.f32 0.2, %v3668_v39  ;;  %v3711_v28 = vpop.eup %2951  ;;  %2907 = vmatprep.subr.bf16.mxu1 %v2906_v8 }
 0x12c   :  { %v3701_v22 = vsel %vm4875_vm12, %v4939_v51, -1e+30  ;;  %v967_v54 = vmul.f32 1.442695, %v4940_v27  ;;  %2963 = vpow2.f32 %v3588_v6  ;;  %v811_v3 = vrot.slane %v810_v23, 1  ;;  %v4942_v51 = vld [vmem:[#allocation21_spill] sm:$0xff] }
 0x12d   :  { %v435_v58 = vmax.f32 %v371_v47, %v403_v19  ;;  %v2910_v50 = vpack.c.bf16 %v1420_v44, %v1419_v12  ;;  %v1067_v41 = vsel %vm740_vm7, %v3707_v24, 0.0  ;;  %v1068_v1 = vsel %vm740_vm7, %v3711_v28, 0.0  ;;  %v4941_v12 = vld [vmem:[#allocation19_spill] sm:$0xff] }
 0x12e   :  { %vm890_vm0 = vcmp.le.f32.partialorder %v794_v16, -5e+29  ;;  %v871_v15 = vmax.f32 %v869_v9, %v870_v57  ;;  %v3720_v4 = vsel %vm740_vm7, %v3526_v10, -inf  ;;  %2965 = vpow2.f32 %v967_v54  ;;  %2909 = vmatpush3.bf16.msra.mxu1 %v2906_v8  ;;  %v4943_v54 = vld [vmem:[#allocation17_spill] sm:$0xff] }
 0x12f   :  { %v906_v32 = vsel %vm890_vm0, 0.0, %v794_v16  ;;  %v812_v14 = vmax.f32 %v810_v23, %v811_v3  ;;  %v434_v2 = vmax.f32 %v3668_v39, %v402_v29  ;;  %v1013_v55 = vsel %vm740_vm7, %v3611_v25, 0.0  ;;  %v2954_v5 = vpop.eup %2953  ;;  %2911 = vmatprep.subr.bf16.mxu1 %v2910_v50 }
 0x130   :  { %v927_v6 = vsub.f32 %v3607_v46, %v906_v32  ;;  %v928_v47 = vsub.f32 %v3617_v59, %v906_v32  ;;  %v1069_v19 = vadd.f32 %v1068_v1, %v1067_v41  ;;  %v3729_v62 = vsel %vm4868_vm15, %v435_v58, -1e+30  ;;  %v2956_v46 = vpop.eup %2955 }
 0x131   :  { %vm892_vm13 = vcmp.le.f32.partialorder %v812_v14, -5e+29  ;;  %v1014_v9 = vsel %vm740_vm7, %v3627_v20, 0.0  ;;  %v1130_v59 = vsel %vm740_vm7, %v2954_v5, 0.0  ;;  %v1183_v39 = vmul.f32 %v2954_v5, %v4941_v12 }
 0x132   :  { %v969_v8 = vmul.f32 1.442695, %v927_v6  ;;  %v872_v44 = vrot.slane %v871_v15, 2  ;;  %vm4876_vm0 = vcmp.gt.f32.partialorder %v4942_v51, 0.0  ;;  %v1131_v27 = vsel %vm740_vm7, %v2956_v46, 0.0  ;;  %2913 = vmatpush3.bf16.msra.mxu1 %v2910_v50 }
 0x133   :  { %v1184_v23 = vmul.f32 %v2956_v46, %v4943_v54  ;;  %v971_v16 = vmul.f32 1.442695, %v928_v47  ;;  %v908_v57 = vsel %vm892_vm13, 0.0, %v812_v14  ;;  %v3738_v29 = vpop.eup %2957  ;;  %v1132_v3 = vadd.f32 %v1131_v27, %v1130_v59 }
 0x134   :  { %v1306_v58 = vsel %vm740_vm7, %v1183_v39, 0.0  ;;  %v931_v41 = vsub.f32 %v3633_v48, %v908_v57  ;;  %v3744_v1 = vsel %vm4874_vm11, %v434_v2, -1e+30  ;;  %v3746_v32 = vpop.eup %2959  ;;  %2967 = vpow2.f32 %v969_v8 }
 0x135   :  { %v1307_v6 = vsel %vm740_vm7, %v1184_v23, 0.0  ;;  %v932_v47 = vsub.f32 %v3623_v52, %v908_v57  ;;  %v877_v14 = vsel %vm740_vm7, %v3729_v62, -inf  ;;  %v3752_v5 = vpop.eup %2961  ;;  %v1133_v46 = vrot.slane %v1132_v3, 4 }
 0x136   :  { %v3754_v59 = vadd.f32 %v1307_v6, %v1306_v58  ;;  %v977_v48 = vmul.f32 1.442695, %v931_v41  ;;  %v873_v39 = vmax.f32 %v871_v15, %v872_v44  ;;  %v3756_v2 = vpop.eup %2963  ;;  %v1070_v50 = vrot.slane %v1069_v19, 4 }
 0x137   :  { %2969 = vpow2.f32 %v971_v16  ;;  %v979_v27 = vmul.f32 1.442695, %v932_v47  ;;  %v876_v8 = vsel %vm740_vm7, %v3744_v1, -inf  ;;  %v1134_v23 = vadd.f32 %v1133_v46, %v1132_v3 }
 0x138   :  { %2971 = vpow2.f32 %v977_v48  ;;  %v874_v52 = vrot.slane %v873_v39, 1  ;;  %v1015_v57 = vadd.f32 %v1014_v9, %v1013_v55  ;;  %v3760_v61 = vpop.eup %2965  ;;  %v3764_v58 = vsel %vm740_vm7, %v3557_v63, -inf }
 0x139   :  { %v3768_v15 = vsel %vm740_vm7, %v3568_v26, -inf  ;;  %2973 = vpow2.f32 %v979_v27  ;;  %v878_v44 = vmax.f32 %v876_v8, %v877_v14  ;;  %v1135_v16 = vrot.slane %v1134_v23, 2 }
 0x13a   :  { %v875_v41 = vmax.f32 %v873_v39, %v874_v52  ;;  %v1022_v3 = vsel %vm740_vm7, %v3637_v40, 0.0  ;;  %v1023_v55 = vsel %vm740_vm7, %v3648_v43, 0.0  ;;  %v1071_v9 = vadd.f32 %v1070_v50, %v1069_v19 }
 0x13b   :  { %v879_v6 = vrot.slane %v878_v44, 4  ;;  %v1024_v47 = vadd.f32 %v1023_v55, %v1022_v3  ;;  %v1031_v46 = vsel %vm740_vm7, %v3661_v17, 0.0  ;;  %v4944_v48 = vmax.f32 %v3360_v31, %v3403_v11 }
 0x13c   :  { %vm899_vm13 = vcmp.le.f32.partialorder %v875_v41, -5e+29  ;;  %v1016_v39 = vrot.slane %v1015_v57, 4  ;;  %v1032_v27 = vsel %vm740_vm7, %v3738_v29, 0.0  ;;  %v1136_v8 = vadd.f32 %v1135_v16, %v1134_v23 }
 0x13d   :  { %v3781_v14 = vsel %vm4876_vm0, %v4944_v48, -1e+30  ;;  %v915_v52 = vsel %vm899_vm13, 0.0, %v875_v41  ;;  %v880_v19 = vmax.f32 %v878_v44, %v879_v6  ;;  %v1040_v50 = vsel %vm740_vm7, %v3746_v32, 0.0 }
 0x13e   :  { %v945_v3 = vsub.f32 %v3682_v13, %v915_v52  ;;  %v946_v55 = vsub.f32 %v3678_v42, %v915_v52  ;;  %v1025_v31 = vrot.slane %v1024_v47, 4  ;;  %v1033_v11 = vadd.f32 %v1032_v27, %v1031_v46  ;;  %v3789_v18 = vpop.eup %2967 }
 0x13f   :  { %v3793_v48 = vsel %vm740_vm7, %v3701_v22, -inf  ;;  %v1072_v60 = vrot.slane %v1071_v9, 2  ;;  %v881_v37 = vrot.slane %v880_v19, 2  ;;  %v1041_v23 = vsel %vm740_vm7, %v3752_v5, 0.0 }
 0x140   :  { %v1005_v44 = vmul.f32 1.442695, %v945_v3  ;;  %v1007_v16 = vmul.f32 1.442695, %v946_v55  ;;  %v1017_v41 = vadd.f32 %v1016_v39, %v1015_v57  ;;  %v1034_v6 = vrot.slane %v1033_v11, 4 }
 0x141   :  { %v3797_v13 = vpop.eup %2969  ;;  %v3801_v42 = vsel %vm740_vm7, %v3781_v14, -inf  ;;  %v1137_v46 = vrot.slane %v1136_v8, 1  ;;  %v882_v27 = vmax.f32 %v880_v19, %v881_v37  ;;  %v1042_v52 = vadd.f32 %v1041_v23, %v1040_v50 }
 0x142   :  { %v3803_v56 = vpop.eup %2971  ;;  %v1169_v51 = vmul.f32 %v3707_v24, %v4941_v12  ;;  %v3809_v3 = vmul.f32 %v3711_v28, %v4943_v54  ;;  %2975 = vpow2.f32 %v1005_v44  ;;  %v1026_v57 = vadd.f32 %v1025_v31, %v1024_v47 }
 0x143   :  { %v3811_v39 = vpop.eup %2973  ;;  %v1076_v55 = vsel %vm740_vm7, %v3803_v56, 0.0  ;;  %2977 = vpow2.f32 %v1007_v16  ;;  %v1035_v30 = vadd.f32 %v1034_v6, %v1033_v11  ;;  %v1049_v37 = vsel %vm740_vm7, %v3756_v2, 0.0 }
 0x144   :  { %v3817_v19 = vadd.f32 %v1072_v60, %v1071_v9  ;;  %v1077_v24 = vsel %vm740_vm7, %v3811_v39, 0.0  ;;  %v883_v50 = vrot.slane %v882_v27, 1  ;;  %v1018_v28 = vrot.slane %v1017_v41, 2 }
 0x145   :  { %v1138_v23 = vadd.f32 %v1137_v46, %v1136_v8  ;;  %v1078_v44 = vadd.f32 %v1077_v24, %v1076_v55  ;;  %v1043_v47 = vrot.slane %v1042_v52, 4  ;;  %v1050_v31 = vsel %vm740_vm7, %v3760_v61, 0.0 }
 0x146   :  { %v884_v21 = vmax.f32 %v882_v27, %v883_v50  ;;  %v1027_v0 = vrot.slane %v1026_v57, 2  ;;  %v1051_v16 = vadd.f32 %v1050_v31, %v1049_v37  ;;  %v1058_v11 = vsel %vm740_vm7, %v3789_v18, 0.0 }
 0x147   :  { %v1079_v6 = vrot.slane %v1078_v44, 4  ;;  %v1036_v60 = vrot.slane %v1035_v30, 2  ;;  %v1044_v9 = vadd.f32 %v1043_v47, %v1042_v52  ;;  %v1059_v45 = vsel %vm740_vm7, %v3797_v13, 0.0 }
 0x148   :  { %v3828_v38 = vsel %vm740_vm7, %v1169_v51, 0.0  ;;  %vm900_vm13 = vcmp.le.f32.partialorder %v884_v21, -5e+29  ;;  %v1052_v8 = vrot.slane %v1051_v16, 4  ;;  %v1060_v46 = vadd.f32 %v1059_v45, %v1058_v11 }
 0x149   :  { %v1080_v27 = vadd.f32 %v1079_v6, %v1078_v44  ;;  %v916_v24 = vsel %vm900_vm13, 0.0, %v884_v21  ;;  %v1045_v37 = vrot.slane %v1044_v9, 2  ;;  %v1019_v35 = vadd.f32 %v1018_v28, %v1017_v41 }
 0x14a   :  { %v947_v50 = vsub.f32 %v3744_v1, %v916_v24  ;;  %v948_v31 = vsub.f32 %v3729_v62, %v916_v24  ;;  %v1053_v52 = vadd.f32 %v1052_v8, %v1051_v16  ;;  %v1074_v47 = vrot.slane %v3817_v19, 1 }
 0x14b   :  { %vm1346_vm15 = vcmp.gt.f32.partialorder %v1138_v23, 0.0  ;;  %v1028_v33 = vadd.f32 %v1027_v0, %v1026_v57  ;;  %v1037_v51 = vadd.f32 %v1036_v60, %v1035_v30  ;;  %v1081_v34 = vrot.slane %v1080_v27, 2 }
 0x14c   :  { %v2976_v36 = vpop.eup %2975  ;;  %v1009_v7 = vmul.f32 1.442695, %v947_v50  ;;  %v1011_v45 = vmul.f32 1.442695, %v948_v31  ;;  %v1061_v11 = vrot.slane %v1060_v46, 4  ;;  %v1046_v1 = vadd.f32 %v1045_v37, %v1044_v9 }
 0x14d   :  { %v2978_v55 = vpop.eup %2977  ;;  %v1139_v21 = vsel %vm740_vm7, %v2976_v36, 0.0  ;;  %v1185_v44 = vmul.f32 %v2976_v36, %v4941_v12  ;;  %v1054_v6 = vrot.slane %v1053_v52, 2  ;;  %v1020_v28 = vrot.slane %v1019_v35, 1 }
 0x14e   :  { %v1140_v62 = vsel %vm740_vm7, %v2978_v55, 0.0  ;;  %v1186_v41 = vmul.f32 %v2978_v55, %v4943_v54  ;;  %2979 = vpow2.f32 %v1009_v7  ;;  %v1029_v57 = vrot.slane %v1028_v33, 1 }
 0x14f   :  { %v3838_v0 = vadd.f32 %v1140_v62, %v1139_v21  ;;  %v1315_v30 = vsel %vm740_vm7, %v1185_v44, 0.0  ;;  %2981 = vpow2.f32 %v1011_v45  ;;  %v1362_v16 = vsel %vm1346_vm15, %v1138_v23, 1.0 }
 0x150   :  { %v1316_v60 = vsel %vm740_vm7, %v1186_v41, 0.0  ;;  %v1038_v8 = vrot.slane %v1037_v51, 1  ;;  %v1062_v36 = vadd.f32 %v1061_v11, %v1060_v46  ;;  %v3843_v9 = vadd.f32 %v1081_v34, %v1080_v27 }
 0x151   :  { %v3845_v24 = vadd.f32 %v1316_v60, %v1315_v30  ;;  %v1047_v37 = vrot.slane %v1046_v1, 1  ;;  %v1055_v55 = vadd.f32 %v1054_v6, %v1053_v52  ;;  %v3849_v7 = vmul.f32 %v3803_v56, %v4941_v12 }
 0x152   :  { %v3851_v50 = vadd.f32 %v1020_v28, %v1019_v35  ;;  %v1157_v31 = vmul.f32 %v3611_v25, %v4941_v12  ;;  %v1158_v23 = vmul.f32 %v3627_v20, %v4943_v54  ;;  %2983 = vrcp.f32 %v1362_v16 }
 0x153   :  { %v3857_v46 = vadd.f32 %v1029_v57, %v1028_v33  ;;  %v1159_v34 = vmul.f32 %v3637_v40, %v4941_v12  ;;  %v1160_v27 = vmul.f32 %v3648_v43, %v4943_v54  ;;  %v3863_v52 = vadd.f32 %v1038_v8, %v1037_v51 }
 0x154   :  { %v3866_v35 = vadd.f32 %v1074_v47, %v3817_v19  ;;  %v1161_v25 = vmul.f32 %v3661_v17, %v4941_v12  ;;  %v1162_v20 = vmul.f32 %v3738_v29, %v4943_v54  ;;  %v3872_v56 = vadd.f32 %v1047_v37, %v1046_v1 }
 0x155   :  { %v1056_v33 = vrot.slane %v1055_v55, 1  ;;  %v1063_v45 = vrot.slane %v1062_v36, 2  ;;  %v1083_v40 = vrot.slane %v3843_v9, 1  ;;  %v1142_v11 = vrot.slane %v3838_v0, 4 }
 0x156   :  { %v1163_v43 = vmul.f32 %v3746_v32, %v4941_v12  ;;  %v1189_v19 = vsel %vm740_vm7, %v1157_v31, 0.0  ;;  %v1190_v47 = vsel %vm740_vm7, %v1158_v23, 0.0  ;;  %v1164_v17 = vmul.f32 %v3752_v5, %v4943_v54 }
 0x157   :  { %v1191_v51 = vadd.f32 %v1190_v47, %v1189_v19  ;;  %v1198_v29 = vsel %vm740_vm7, %v1159_v34, 0.0  ;;  %v1199_v21 = vsel %vm740_vm7, %v1160_v27, 0.0  ;;  %v1165_v1 = vmul.f32 %v3756_v2, %v4941_v12 }
 0x158   :  { %v2980_v44 = vpop.eup %2979  ;;  %v1200_v6 = vadd.f32 %v1199_v21, %v1198_v29  ;;  %v1207_v62 = vsel %vm740_vm7, %v1161_v25, 0.0  ;;  %v1208_v32 = vsel %vm740_vm7, %v1162_v20, 0.0  ;;  %v1166_v5 = vmul.f32 %v3760_v61, %v4943_v54 }
 0x159   :  { %v2982_v41 = vpop.eup %2981  ;;  %v1148_v28 = vsel %vm740_vm7, %v2980_v44, 0.0  ;;  %v1167_v30 = vmul.f32 %v3789_v18, %v4941_v12  ;;  %v1192_v57 = vrot.slane %v1191_v51, 4  ;;  %v1209_v8 = vadd.f32 %v1208_v32, %v1207_v62 }
 0x15a   :  { %v1149_v16 = vsel %vm740_vm7, %v2982_v41, 0.0  ;;  %v1201_v60 = vrot.slane %v1200_v6, 4  ;;  %v1216_v2 = vsel %vm740_vm7, %v1163_v43, 0.0  ;;  %v1064_v31 = vadd.f32 %v1063_v45, %v1062_v36 }
 0x15b   :  { %v1150_v37 = vadd.f32 %v1149_v16, %v1148_v28  ;;  %v1168_v23 = vmul.f32 %v3797_v13, %v4943_v54  ;;  %v1193_v34 = vadd.f32 %v1192_v57, %v1191_v51  ;;  %v1210_v25 = vrot.slane %v1209_v8, 4 }
 0x15c   :  { %v1202_v27 = vadd.f32 %v1201_v60, %v1200_v6  ;;  %v1217_v61 = vsel %vm740_vm7, %v1164_v17, 0.0  ;;  %v1225_v20 = vsel %vm740_vm7, %v1165_v1, 0.0  ;;  %v3899_v18 = vpop.eup %2983  ;;  %v3901_v19 = vadd.f32 %v1056_v33, %v1055_v55 }
 0x15d   :  { %v1194_v47 = vrot.slane %v1193_v34, 2  ;;  %v1218_v29 = vadd.f32 %v1217_v61, %v1216_v2  ;;  %v1226_v43 = vsel %vm740_vm7, %v1166_v5, 0.0  ;;  %v1211_v36 = vadd.f32 %v1210_v25, %v1209_v8 }
 0x15e   :  { %v1203_v21 = vrot.slane %v1202_v27, 2  ;;  %v1227_v45 = vadd.f32 %v1226_v43, %v1225_v20  ;;  %v1234_v13 = vsel %vm740_vm7, %v1167_v30, 0.0  ;;  %v1143_v51 = vadd.f32 %v1142_v11, %v3838_v0 }
 0x15f   :  { %v1065_v6 = vrot.slane %v1064_v31, 1  ;;  %v1219_v62 = vrot.slane %v1218_v29, 4  ;;  %v1235_v17 = vsel %vm740_vm7, %v1168_v23, 0.0  ;;  %v1172_v1 = vmul.f32 %v3811_v39, %v4943_v54 }
 0x160   :  { %v1212_v55 = vrot.slane %v1211_v36, 2  ;;  %v1228_v33 = vrot.slane %v1227_v45, 4  ;;  %v1236_v32 = vadd.f32 %v1235_v17, %v1234_v13  ;;  %v1151_v28 = vrot.slane %v1150_v37, 4 }
 0x161   :  { %v1195_v57 = vadd.f32 %v1194_v47, %v1193_v34  ;;  %v1220_v5 = vadd.f32 %v1219_v62, %v1218_v29  ;;  %v1244_v16 = vsel %vm740_vm7, %v3809_v3, 0.0  ;;  %v1204_v60 = vadd.f32 %v1203_v21, %v1202_v27 }
 0x162   :  { %v1213_v30 = vadd.f32 %v1212_v55, %v1211_v36  ;;  %v1229_v8 = vadd.f32 %v1228_v33, %v1227_v45  ;;  %v1237_v0 = vrot.slane %v1236_v32, 4  ;;  %v1144_v11 = vrot.slane %v1143_v51, 2 }
 0x163   :  { %v1084_v2 = vadd.f32 %v1083_v40, %v3843_v9  ;;  %v1221_v23 = vrot.slane %v1220_v5, 2  ;;  %v1245_v25 = vadd.f32 %v1244_v16, %v3828_v38  ;;  %v1187_v39 = vmul.f32 %v2980_v44, %v4941_v12 }
 0x164   :  { %v1066_v61 = vadd.f32 %v1065_v6, %v1064_v31  ;;  %v1230_v20 = vrot.slane %v1229_v8, 2  ;;  %v1238_v43 = vadd.f32 %v1237_v0, %v1236_v32  ;;  %v3914_v34 = vadd.f32 %v1151_v28, %v1150_v37  ;;  %v4945_v0 = vld [vmem:[#allocation10_spill] sm:$0xff] }
 0x165   :  { %v1196_v47 = vrot.slane %v1195_v57, 1  ;;  %v1246_v29 = vrot.slane %v1245_v25, 4  ;;  %v1252_v3 = vsel %vm740_vm7, %v3849_v7, 0.0  ;;  %v1205_v27 = vrot.slane %v1204_v60, 1 }
 0x166   :  { %v1214_v21 = vrot.slane %v1213_v30, 1  ;;  %v1239_v36 = vrot.slane %v1238_v43, 2  ;;  %v1253_v9 = vsel %vm740_vm7, %v1172_v1, 0.0  ;;  %v3919_v40 = vadd.f32 %v1144_v11, %v1143_v51  ;;  %v4946_v11 = vld [vmem:[#allocation12_spill] sm:$0xff] }
 0x167   :  { %v1222_v38 = vadd.f32 %v1221_v23, %v1220_v5  ;;  %v1247_v45 = vadd.f32 %v1246_v29, %v1245_v25  ;;  %v1254_v44 = vadd.f32 %v1253_v9, %v1252_v3  ;;  %v3922_v31 = vmul.f32 %v2982_v41, %v4943_v54 }
 0x168   :  { %v3925_v37 = vsel %vm740_vm7, %v1187_v39, 0.0  ;;  %v1231_v13 = vadd.f32 %v1230_v20, %v1229_v8  ;;  %v1240_v6 = vadd.f32 %v1239_v36, %v1238_v43  ;;  %v1153_v7 = vrot.slane %v3914_v34, 2  ;;  %v4947_v39 = vld [vmem:[#allocation16_spill] sm:$0xff]  ;;  %v4948_v20 = vld [vmem:[#allocation27_spill] sm:$0xff] }
 0x169   :  { %v1248_v62 = vrot.slane %v1247_v45, 2  ;;  %v1255_v17 = vrot.slane %v1254_v44, 4  ;;  %vm1333_vm15 = vcmp.gt.f32.partialorder %v3851_v50, 0.0  ;;  %v3929_v1 = vadd.f32 %v1196_v47, %v1195_v57  ;;  %v4949_v47 = vld [vmem:[#allocation32_spill] sm:$0xff] }
 0x16a   :  { %v3931_v51 = vadd.f32 %v1205_v27, %v1204_v60  ;;  %v3933_v55 = vadd.f32 %v1214_v21, %v1213_v30  ;;  %vm1334_vm13 = vcmp.gt.f32.partialorder %v3857_v46, 0.0  ;;  %v1223_v41 = vrot.slane %v1222_v38, 1  ;;  %v4950_v21 = vld [vmem:[#allocation23_spill] sm:$0xff] }
 0x16b   :  { %v1249_v33 = vadd.f32 %v1248_v62, %v1247_v45  ;;  %v1256_v32 = vadd.f32 %v1255_v17, %v1254_v44  ;;  %vm1335_vm11 = vcmp.gt.f32.partialorder %v3863_v52, 0.0  ;;  %v1232_v28 = vrot.slane %v1231_v13, 1  ;;  %v4953_v44 = vld [vmem:[#allocation28_spill] sm:$0xff] }
 0x16c   :  { %v1241_v5 = vrot.slane %v1240_v6, 1  ;;  %vm1336_vm12 = vcmp.gt.f32.partialorder %v3872_v56, 0.0  ;;  %v1349_v16 = vsel %vm1333_vm15, %v3851_v50, 1.0  ;;  %vm1337_vm0 = vcmp.gt.f32.partialorder %v3901_v19, 0.0 }
 0x16d   :  { %v1257_v8 = vrot.slane %v1256_v32, 2  ;;  %vm1338_vm14 = vcmp.gt.f32.partialorder %v1066_v61, 0.0  ;;  %v1350_v57 = vsel %vm1334_vm13, %v3857_v46, 1.0  ;;  %v1250_v60 = vrot.slane %v1249_v33, 1 }
 0x16e   :  { %vm1339_vm10 = vcmp.gt.f32.partialorder %v3866_v35, 0.0  ;;  %vm1340_vm8 = vcmp.gt.f32.partialorder %v1084_v2, 0.0  ;;  %v1351_v30 = vsel %vm1335_vm11, %v3863_v52, 1.0  ;;  %vm4887_vm9 = vcmp.gt.f32.partialorder %v4945_v0, 0.0 }
 0x16f   :  { %vm4883_vm5 = vcmp.gt.f32.partialorder %v4946_v11, 0.0  ;;  %v3945_v23 = vadd.f32 %v1223_v41, %v1222_v38  ;;  %v1258_v25 = vadd.f32 %v1257_v8, %v1256_v32  ;;  %v1352_v50 = vsel %vm1336_vm12, %v3872_v56, 1.0 }
 0x170   :  { %2985 = vrcp.f32 %v1349_v16  ;;  %vm4886_vm15 = vcmp.gt.f32.partialorder %v4947_v39, 0.0  ;;  %vm4885_vm13 = vcmp.gt.f32.partialorder %v4948_v20, 0.0  ;;  %v3950_v46 = vadd.f32 %v1232_v28, %v1231_v13 }
 0x171   :  { %v3952_v43 = vadd.f32 %v1241_v5, %v1240_v6  ;;  %v1353_v52 = vsel %vm1337_vm0, %v3901_v19, 1.0  ;;  %2987 = vrcp.f32 %v1350_v57  ;;  %vm4884_vm11 = vcmp.gt.f32.partialorder %v4949_v47, 0.0  ;;  %v4951_v19 = vld [vmem:[#allocation24_spill] sm:$0xff] }
 0x172   :  { %v1354_v29 = vsel %vm1338_vm14, %v1066_v61, 1.0  ;;  %v1355_v56 = vsel %vm1339_vm10, %v3866_v35, 1.0  ;;  %v1356_v3 = vsel %vm1340_vm8, %v1084_v2, 1.0  ;;  %2989 = vrcp.f32 %v1351_v30  ;;  %v4952_v61 = vld [vmem:[#allocation25_spill] sm:$0xff]  ;;  %v4954_v2 = vld [vmem:[#allocation26_spill] sm:$0xff] }
 0x173   :  { %v3963_v27 = vadd.f32 %v1250_v60, %v1249_v33  ;;  %2991 = vrcp.f32 %v1352_v50  ;;  %v356_v36 = vadd.f32 %v4950_v21, %v3369_v49  ;;  %v358_v9 = vadd.f32 %v4951_v19, %v3369_v49 }
 0x174   :  { %v1259_v38 = vrot.slane %v1258_v25, 1  ;;  %2993 = vrcp.f32 %v1353_v52  ;;  %v360_v45 = vadd.f32 %v4952_v61, %v3369_v49  ;;  %v362_v35 = vadd.f32 %v4953_v44, %v3369_v49 }
 0x175   :  { %2995 = vrcp.f32 %v1354_v29  ;;  %vm1446_vm12 = vcmask 1041409   ;;  %v364_v13 = vadd.f32 %v4954_v2, %v3369_v49  ;;  %v388_v6 = vmul.f32 0.2, %v356_v36 }
 0x176   :  { %v390_v62 = vmul.f32 0.2, %v358_v9  ;;  %2997 = vrcp.f32 %v1355_v56  ;;  %vm1448_vm8 = vcmask 1042434   ;;  %v392_v17 = vmul.f32 0.2, %v360_v45 }
 0x177   :  { %v394_v41 = vmul.f32 0.2, %v362_v35  ;;  %v4955_v33 = vrot.slane %v3754_v59, 4  ;;  %2999 = vrcp.f32 %v1356_v3  ;;  %vm1450_vm10 = vcmask 1043459  }
 0x178   :  { %v396_v28 = vmul.f32 0.2, %v364_v13  ;;  %v420_v5 = vmax.f32 %v356_v36, %v388_v6  ;;  %v422_v16 = vmax.f32 %v358_v9, %v390_v62  ;;  %v1260_v8 = vadd.f32 %v1259_v38, %v1258_v25 }
 0x179   :  { %v3978_v32 = vadd.f32 %v4955_v33, %v3754_v59  ;;  %vm1452_vm14 = vcmask 1044484   ;;  %v424_v57 = vmax.f32 %v360_v45, %v392_v17  ;;  %v426_v49 = vmax.f32 %v362_v35, %v394_v41 }
 0x17a   :  { %vm1454_vm0 = vcmask 1045509   ;;  %v428_v30 = vmax.f32 %v364_v13, %v396_v28  ;;  %v3983_v50 = vsel %vm4887_vm9, %v420_v5, -1e+30  ;;  %v3987_v59 = vsel %vm4883_vm5, %v422_v16, -1e+30  ;;  %v2986_v25 = vpop.eup %2985 }
 0x17b   :  { %v1311_v60 = vrot.slane %v3978_v32, 2  ;;  %v3991_v52 = vsel %vm740_vm7, %v3922_v31, 0.0  ;;  %vm1456_vm6 = vcmask 1046534   ;;  %v3995_v29 = vsel %vm4886_vm15, %v424_v57, -1e+30  ;;  %v2988_v36 = vpop.eup %2987 }
 0x17c   :  { %v3999_v56 = vsel %vm4885_vm13, %v426_v49, -1e+30  ;;  %v813_v3 = vsel %vm740_vm7, %v3983_v50, -inf  ;;  %v822_v21 = vsel %vm740_vm7, %v3987_v59, -inf  ;;  %v1366_v31 = vmul.f32 %v2986_v25, %v3929_v1  ;;  %v2990_v61 = vpop.eup %2989 }
 0x17d   :  { %vm1458_vm5 = vcmask 1047559   ;;  %v4008_v19 = vsel %vm4884_vm11, %v428_v30, -1e+30  ;;  %v815_v9 = vmax.f32 %v813_v3, %v3720_v4  ;;  %v824_v38 = vmax.f32 %v822_v21, %v3764_v58  ;;  %v2992_v2 = vpop.eup %2991 }
 0x17e   :  { %v1368_v45 = vmul.f32 %v2988_v36, %v3931_v51  ;;  %v831_v44 = vsel %vm740_vm7, %v3995_v29, -inf  ;;  %v840_v35 = vsel %vm740_vm7, %v3999_v56, -inf  ;;  %v849_v1 = vsel %vm740_vm7, %v4008_v19, -inf  ;;  %v2994_v17 = vpop.eup %2993 }
 0x17f   :  { %v1370_v13 = vmul.f32 %v2990_v61, %v3933_v55  ;;  %v1397_v6 = vmax.f32 %v1366_v31, 0.0  ;;  %v816_v62 = vrot.slane %v815_v9, 4  ;;  %v825_v4 = vrot.slane %v824_v38, 4  ;;  %v2996_v28 = vpop.eup %2995 }
 0x180   :  { %v1372_v58 = vmul.f32 %v2992_v2, %v3945_v23  ;;  %v1398_v41 = vmax.f32 %v1368_v45, 0.0  ;;  %v833_v51 = vmax.f32 %v831_v44, %v3768_v15  ;;  %v842_v33 = vmax.f32 %v840_v35, %v3801_v42  ;;  %v2998_v30 = vpop.eup %2997 }
 0x181   :  { %v1374_v5 = vmul.f32 %v2994_v17, %v3950_v46  ;;  %v1399_v16 = vmax.f32 %v1370_v13, 0.0  ;;  %v817_v57 = vmax.f32 %v815_v9, %v816_v62  ;;  %v826_v49 = vmax.f32 %v824_v38, %v825_v4  ;;  %v3000_v36 = vpop.eup %2999 }
 0x182   :  { %v1376_v55 = vmul.f32 %v2996_v28, %v3952_v43  ;;  %v1400_v25 = vmax.f32 %v1372_v58, 0.0  ;;  %v1447_v3 = vsel %vm1446_vm12, %v1398_v41, %v1397_v6  ;;  %v834_v21 = vrot.slane %v833_v51, 4 }
 0x183   :  { %v1378_v23 = vmul.f32 %v2998_v30, %v3963_v27  ;;  %v1401_v31 = vmax.f32 %v1374_v5, 0.0  ;;  %v1449_v15 = vsel %vm1448_vm8, %v1399_v16, %v1447_v3  ;;  %v818_v42 = vrot.slane %v817_v57, 2 }
 0x184   :  { %v1380_v61 = vmul.f32 %v3000_v36, %v1260_v8  ;;  %v1402_v45 = vmax.f32 %v1376_v55, 0.0  ;;  %v1451_v46 = vsel %vm1450_vm10, %v1400_v25, %v1449_v15  ;;  %v827_v9 = vrot.slane %v826_v49, 2 }
 0x185   :  { %v1403_v38 = vmax.f32 %v1378_v23, 0.0  ;;  %v1453_v44 = vsel %vm1452_vm14, %v1401_v31, %v1451_v46  ;;  %v819_v43 = vmax.f32 %v817_v57, %v818_v42  ;;  %v835_v35 = vmax.f32 %v833_v51, %v834_v21 }
 0x186   :  { %v1404_v2 = vmax.f32 %v1380_v61, 0.0  ;;  %v1455_v13 = vsel %vm1454_vm0, %v1402_v45, %v1453_v44  ;;  %v828_v6 = vmax.f32 %v826_v49, %v827_v9  ;;  %v843_v62 = vrot.slane %v842_v33, 4 }
 0x187   :  { %v1457_v27 = vsel %vm1456_vm6, %v1403_v38, %v1455_v13  ;;  %v820_v4 = vrot.slane %v819_v43, 1  ;;  %v836_v17 = vrot.slane %v835_v35, 2  ;;  %v851_v8 = vmax.f32 %v849_v1, %v3793_v48 }
 0x188   :  { %v1459_v58 = vsel %vm1458_vm5, %v1404_v2, %v1457_v27  ;;  %v829_v41 = vrot.slane %v828_v6, 1  ;;  %v844_v28 = vmax.f32 %v842_v33, %v843_v62  ;;  %v1318_v5 = vrot.slane %v3845_v24, 4 }
 0x189   :  { %v1146_v16 = vrot.slane %v3919_v40, 1  ;;  %2861 = vmatprep.mubr.msk.f32.mxu1 %vm740_vm7, %v1459_v58  ;;  %v821_v51 = vmax.f32 %v819_v43, %v820_v4  ;;  %v837_v57 = vmax.f32 %v835_v35, %v836_v17  ;;  %v852_v49 = vrot.slane %v851_v8, 4 }
 0x18a   :  { %v4040_v30 = vadd.f32 %v1153_v7, %v3914_v34  ;;  %v830_v55 = vmax.f32 %v828_v6, %v829_v41  ;;  %v845_v48 = vrot.slane %v844_v28, 2  ;;  %v1326_v1 = vadd.f32 %v3991_v52, %v3925_v37 }
 0x18b   :  { %v838_v33 = vrot.slane %v837_v57, 1  ;;  %v853_v25 = vmax.f32 %v851_v8, %v852_v49  ;;  %vm893_vm11 = vcmp.le.f32.partialorder %v821_v51, -5e+29  ;;  %v1312_v3 = vadd.f32 %v1311_v60, %v3978_v32 }
 0x18c   :  { %v846_v21 = vmax.f32 %v844_v28, %v845_v48  ;;  %vm894_vm13 = vcmp.le.f32.partialorder %v830_v55, -5e+29  ;;  %v909_v36 = vsel %vm893_vm11, 0.0, %v821_v51  ;;  %v1319_v23 = vadd.f32 %v1318_v5, %v3845_v24 }
 0x18d   :  { %v839_v31 = vmax.f32 %v837_v57, %v838_v33  ;;  %v854_v34 = vrot.slane %v853_v25, 2  ;;  %v910_v7 = vsel %vm894_vm13, 0.0, %v830_v55  ;;  %v933_v15 = vsub.f32 %v3983_v50, %v909_v36 }
 0x18e   :  { %v847_v42 = vrot.slane %v846_v21, 1  ;;  %v934_v37 = vsub.f32 %v3526_v10, %v909_v36  ;;  %v935_v52 = vsub.f32 %v3987_v59, %v910_v7  ;;  %v936_v61 = vsub.f32 %v3557_v63, %v910_v7 }
 0x18f   :  { %v855_v45 = vmax.f32 %v853_v25, %v854_v34  ;;  %vm895_vm15 = vcmp.le.f32.partialorder %v839_v31, -5e+29  ;;  %v981_v32 = vmul.f32 1.442695, %v933_v15  ;;  %v1313_v60 = vrot.slane %v1312_v3, 1 }
 0x190   :  { %v848_v46 = vmax.f32 %v846_v21, %v847_v42  ;;  %v911_v9 = vsel %vm895_vm15, 0.0, %v839_v31  ;;  %v983_v38 = vmul.f32 1.442695, %v934_v37  ;;  %v985_v24 = vmul.f32 1.442695, %v935_v52 }
 0x191   :  { %v856_v44 = vrot.slane %v855_v45, 1  ;;  %v937_v43 = vsub.f32 %v3995_v29, %v911_v9  ;;  %v938_v50 = vsub.f32 %v3568_v26, %v911_v9  ;;  %3001 = vpow2.f32 %v981_v32 }
 0x192   :  { %vm896_vm13 = vcmp.le.f32.partialorder %v848_v46, -5e+29  ;;  %3003 = vpow2.f32 %v983_v38  ;;  %v987_v10 = vmul.f32 1.442695, %v936_v61  ;;  %v1320_v59 = vrot.slane %v1319_v23, 2 }
 0x193   :  { %v857_v35 = vmax.f32 %v855_v45, %v856_v44  ;;  %v912_v63 = vsel %vm896_vm13, 0.0, %v848_v46  ;;  %3005 = vpow2.f32 %v985_v24  ;;  %v989_v2 = vmul.f32 1.442695, %v937_v43 }
 0x194   :  { %v939_v13 = vsub.f32 %v3999_v56, %v912_v63  ;;  %v940_v6 = vsub.f32 %v3781_v14, %v912_v63  ;;  %3007 = vpow2.f32 %v987_v10  ;;  %v991_v62 = vmul.f32 1.442695, %v938_v50 }
 0x195   :  { %vm897_vm15 = vcmp.le.f32.partialorder %v857_v35, -5e+29  ;;  %3009 = vpow2.f32 %v989_v2  ;;  %v1314_v29 = vadd.f32 %v1313_v60, %v1312_v3  ;;  %v1327_v27 = vrot.slane %v1326_v1, 4 }
 0x196   :  { %v913_v26 = vsel %vm897_vm15, 0.0, %v857_v35  ;;  %3011 = vpow2.f32 %v991_v62  ;;  %v993_v4 = vmul.f32 1.442695, %v939_v13  ;;  %v995_v17 = vmul.f32 1.442695, %v940_v6 }
 0x197   :  { %v1155_v8 = vrot.slane %v4040_v30, 1  ;;  %v941_v58 = vsub.f32 %v4008_v19, %v913_v26  ;;  %v942_v41 = vsub.f32 %v3701_v22, %v913_v26  ;;  %v1147_v56 = vadd.f32 %v1146_v16, %v3919_v40 }
 0x198   :  { %3013 = vpow2.f32 %v993_v4  ;;  %v1321_v14 = vadd.f32 %v1320_v59, %v1319_v23  ;;  %v4061_v28 = vmul.f32 %v3899_v18, %v1314_v29  ;;  %v1328_v57 = vadd.f32 %v1327_v27, %v1326_v1 }
 0x199   :  { %3015 = vpow2.f32 %v995_v17  ;;  %v997_v5 = vmul.f32 1.442695, %v941_v58  ;;  %v999_v51 = vmul.f32 1.442695, %v942_v41  ;;  %v1156_v55 = vadd.f32 %v1155_v8, %v4040_v30 }
 0x19a   :  { %v1322_v40 = vrot.slane %v1321_v14, 1  ;;  %v1329_v25 = vrot.slane %v1328_v57, 2  ;;  %vm1347_vm11 = vcmp.gt.f32.partialorder %v1147_v56, 0.0 }
 0x19b   :  { %v3002_v49 = vpop.eup %3001  ;;  %3017 = vpow2.f32 %v997_v5  ;;  %vm1348_vm13 = vcmp.gt.f32.partialorder %v1156_v55, 0.0  ;;  %v1363_v61 = vsel %vm1347_vm11, %v1147_v56, 1.0 }
 0x19c   :  { %v3004_v48 = vpop.eup %3003  ;;  %3019 = vpow2.f32 %v999_v51  ;;  %v1085_v19 = vsel %vm740_vm7, %v3002_v49, 0.0  ;;  %v1173_v22 = vmul.f32 %v3002_v49, %v4941_v12  ;;  %v1330_v46 = vadd.f32 %v1329_v25, %v1328_v57 }
 0x19d   :  { %v3006_v16 = vpop.eup %3005  ;;  %v1086_v33 = vsel %vm740_vm7, %v3004_v48, 0.0  ;;  %v1174_v18 = vmul.f32 %v3004_v48, %v4943_v54  ;;  %v4079_v35 = vadd.f32 %v1322_v40, %v1321_v14  ;;  %v1364_v63 = vsel %vm1348_vm13, %v1156_v55, 1.0 }
 0x19e   :  { %v3008_v3 = vpop.eup %3007  ;;  %v1087_v1 = vadd.f32 %v1086_v33, %v1085_v19  ;;  %v1094_v21 = vsel %vm740_vm7, %v3006_v16, 0.0  ;;  %v1175_v30 = vmul.f32 %v3006_v16, %v4941_v12  ;;  %v1261_v36 = vsel %vm740_vm7, %v1173_v22, 0.0 }
 0x19f   :  { %v3010_v23 = vpop.eup %3009  ;;  %v1095_v31 = vsel %vm740_vm7, %v3008_v3, 0.0  ;;  %v1176_v34 = vmul.f32 %v3008_v3, %v4943_v54  ;;  %v1262_v7 = vsel %vm740_vm7, %v1174_v18, 0.0  ;;  %v1331_v4 = vrot.slane %v1330_v46, 1 }
 0x1a0   :  { %v3012_v15 = vpop.eup %3011  ;;  %v1088_v42 = vrot.slane %v1087_v1, 4  ;;  %v1096_v37 = vadd.f32 %v1095_v31, %v1094_v21  ;;  %v1103_v52 = vsel %vm740_vm7, %v3010_v23, 0.0  ;;  %v1263_v32 = vadd.f32 %v1262_v7, %v1261_v36 }
 0x1a1   :  { %v1104_v45 = vsel %vm740_vm7, %v3012_v15, 0.0  ;;  %v1270_v60 = vsel %vm740_vm7, %v1175_v30, 0.0  ;;  %v1271_v43 = vsel %vm740_vm7, %v1176_v34, 0.0  ;;  %v1177_v26 = vmul.f32 %v3010_v23, %v4941_v12 }
 0x1a2   :  { %v3014_v9 = vpop.eup %3013  ;;  %v1089_v38 = vadd.f32 %v1088_v42, %v1087_v1  ;;  %v1097_v24 = vrot.slane %v1096_v37, 4  ;;  %v1105_v44 = vadd.f32 %v1104_v45, %v1103_v52  ;;  %v1272_v59 = vadd.f32 %v1271_v43, %v1270_v60 }
 0x1a3   :  { %v3016_v50 = vpop.eup %3015  ;;  %v1112_v10 = vsel %vm740_vm7, %v3014_v9, 0.0  ;;  %3021 = vrcp.f32 %v1363_v61  ;;  %v1178_v51 = vmul.f32 %v3012_v15, %v4943_v54  ;;  %v1179_v48 = vmul.f32 %v3014_v9, %v4941_v12 }
 0x1a4   :  { %v1090_v2 = vrot.slane %v1089_v38, 2  ;;  %v1098_v13 = vadd.f32 %v1097_v24, %v1096_v37  ;;  %v1106_v6 = vrot.slane %v1105_v44, 4  ;;  %v1113_v62 = vsel %vm740_vm7, %v3016_v50, 0.0 }
 0x1a5   :  { %v3018_v29 = vpop.eup %3017  ;;  %v1114_v27 = vadd.f32 %v1113_v62, %v1112_v10  ;;  %3023 = vrcp.f32 %v1364_v63  ;;  %v1264_v40 = vrot.slane %v1263_v32, 4  ;;  %v1279_v16 = vsel %vm740_vm7, %v1177_v26, 0.0 }
 0x1a6   :  { %v3020_v17 = vpop.eup %3019  ;;  %v1091_v8 = vadd.f32 %v1090_v2, %v1089_v38  ;;  %v1099_v58 = vrot.slane %v1098_v13, 2  ;;  %v1107_v41 = vadd.f32 %v1106_v6, %v1105_v44  ;;  %v1121_v56 = vsel %vm740_vm7, %v3018_v29, 0.0 }
 0x1a7   :  { %v1115_v14 = vrot.slane %v1114_v27, 4  ;;  %v1122_v5 = vsel %vm740_vm7, %v3020_v17, 0.0  ;;  %v1180_v3 = vmul.f32 %v3016_v50, %v4943_v54  ;;  %v1181_v21 = vmul.f32 %v3018_v29, %v4941_v12 }
 0x1a8   :  { %v1100_v57 = vadd.f32 %v1099_v58, %v1098_v13  ;;  %v1108_v49 = vrot.slane %v1107_v41, 2  ;;  %v1123_v55 = vadd.f32 %v1122_v5, %v1121_v56  ;;  %v1092_v19 = vrot.slane %v1091_v8, 1 }
 0x1a9   :  { %v1116_v22 = vadd.f32 %v1115_v14, %v1114_v27  ;;  %v1273_v30 = vrot.slane %v1272_v59, 4  ;;  %v1280_v36 = vsel %vm740_vm7, %v1178_v51, 0.0  ;;  %v1182_v34 = vmul.f32 %v3020_v17, %v4943_v54 }
 0x1aa   :  { %v1101_v33 = vrot.slane %v1100_v57, 1  ;;  %v1109_v18 = vadd.f32 %v1108_v49, %v1107_v41  ;;  %v1124_v25 = vrot.slane %v1123_v55, 4  ;;  %v1281_v7 = vadd.f32 %v1280_v36, %v1279_v16 }
 0x1ab   :  { %v1117_v1 = vrot.slane %v1116_v22, 2  ;;  %v1093_v15 = vadd.f32 %v1092_v19, %v1091_v8  ;;  %v1265_v37 = vadd.f32 %v1264_v40, %v1263_v32  ;;  %v1288_v52 = vsel %vm740_vm7, %v1179_v48, 0.0 }
 0x1ac   :  { %v1110_v23 = vrot.slane %v1109_v18, 1  ;;  %v1125_v31 = vadd.f32 %v1124_v25, %v1123_v55  ;;  %v1102_v61 = vadd.f32 %v1101_v33, %v1100_v57  ;;  %v1282_v60 = vrot.slane %v1281_v7, 4 }
 0x1ad   :  { %v1118_v42 = vadd.f32 %v1117_v1, %v1116_v22  ;;  %v1289_v9 = vsel %vm740_vm7, %v1180_v3, 0.0  ;;  %v3022_v38 = vpop.eup %3021  ;;  %v1332_v43 = vadd.f32 %v1331_v4, %v1330_v46  ;;  %v1274_v10 = vadd.f32 %v1273_v30, %v1272_v59 }
 0x1ae   :  { %v1126_v45 = vrot.slane %v1125_v31, 2  ;;  %v1111_v12 = vadd.f32 %v1110_v23, %v1109_v18  ;;  %v1290_v44 = vadd.f32 %v1289_v9, %v1288_v52  ;;  %v1297_v54 = vsel %vm740_vm7, %v1181_v21, 0.0 }
 0x1af   :  { %v1119_v24 = vrot.slane %v1118_v42, 1  ;;  %v1298_v63 = vsel %vm740_vm7, %v1182_v34, 0.0  ;;  %v3024_v2 = vpop.eup %3023  ;;  %v1283_v13 = vadd.f32 %v1282_v60, %v1281_v7  ;;  %v1266_v27 = vrot.slane %v1265_v37, 2 }
 0x1b0   :  { %v1127_v50 = vadd.f32 %v1126_v45, %v1125_v31  ;;  %v1291_v6 = vrot.slane %v1290_v44, 4  ;;  %v1299_v62 = vadd.f32 %v1298_v63, %v1297_v54  ;;  %vm1341_vm15 = vcmp.gt.f32.partialorder %v1093_v15, 0.0 }
 0x1b1   :  { %v1120_v32 = vadd.f32 %v1119_v24, %v1118_v42  ;;  %vm1342_vm11 = vcmp.gt.f32.partialorder %v1102_v61, 0.0  ;;  %vm1343_vm13 = vcmp.gt.f32.partialorder %v1111_v12, 0.0  ;;  %v1275_v4 = vrot.slane %v1274_v10, 2 }
 0x1b2   :  { %v1128_v29 = vrot.slane %v1127_v50, 1  ;;  %v1292_v26 = vadd.f32 %v1291_v6, %v1290_v44  ;;  %v1300_v17 = vrot.slane %v1299_v62, 4  ;;  %v1357_v59 = vsel %vm1341_vm15, %v1093_v15, 1.0 }
 0x1b3   :  { %vm1344_vm9 = vcmp.gt.f32.partialorder %v1120_v32, 0.0  ;;  %v1358_v8 = vsel %vm1342_vm11, %v1102_v61, 1.0  ;;  %v1284_v58 = vrot.slane %v1283_v13, 2  ;;  %v1359_v14 = vsel %vm1343_vm13, %v1111_v12, 1.0 }
 0x1b4   :  { %v1129_v46 = vadd.f32 %v1128_v29, %v1127_v50  ;;  %v1293_v41 = vrot.slane %v1292_v26, 2  ;;  %v1301_v56 = vadd.f32 %v1300_v17, %v1299_v62  ;;  %v1360_v5 = vsel %vm1344_vm9, %v1120_v32, 1.0  ;;  %v2542_v29 = vld [vmem:[%s4804_s10] sm:$0xff]  ;;  %v2545_v17 = vld [vmem:[%s4804_s10 + $0x18] sm:$0xff] }
 0x1b5   :  { %3025 = vrcp.f32 %v1357_v59  ;;  %v1394_v51 = vmul.f32 %v3022_v38, %v4079_v35  ;;  %v1267_v57 = vadd.f32 %v1266_v27, %v1265_v37  ;;  %v1276_v48 = vadd.f32 %v1275_v4, %v1274_v10  ;;  %v2544_v27 = vld [vmem:[%s4804_s10 + $0x10] sm:$0xff]  ;;  %v2546_v4 = vld [vmem:[%s4804_s10 + $0x20] sm:$0xff]  ;;  %v2547_v59 = vld [vmem:[%s4804_s10 + $0x28] sm:$0xff] }
 0x1b6   :  { %vm1345_vm4 = vcmp.gt.f32.partialorder %v1129_v46, 0.0  ;;  %v1302_v49 = vrot.slane %v1301_v56, 2  ;;  %3027 = vrcp.f32 %v1358_v8  ;;  %v1396_v19 = vmul.f32 %v3024_v2, %v1332_v43 }
 0x1b7   :  { %v1361_v55 = vsel %vm1345_vm4, %v1129_v46, 1.0  ;;  %3029 = vrcp.f32 %v1359_v14  ;;  %v1285_v22 = vadd.f32 %v1284_v58, %v1283_v13  ;;  %v1294_v40 = vadd.f32 %v1293_v41, %v1292_v26  ;;  %v2548_v58 = vld [vmem:[%s4804_s10 + $0x30] sm:$0xff]  ;;  %v2549_v41 = vld [vmem:[%s4804_s10 + $0x38] sm:$0xff]  ;;  %v2797_v14 = vld [vmem:[%s4805_s7] ss:$0 sm:$0xff] }
 0x1b8   :  { %3031 = vrcp.f32 %v1360_v5  ;;  %v1268_v16 = vrot.slane %v1267_v57, 1  ;;  %v1303_v33 = vadd.f32 %v1302_v49, %v1301_v56  ;;  %v1277_v18 = vrot.slane %v1276_v48, 1 }
 0x1b9   :  { %3033 = vrcp.f32 %v1361_v55  ;;  %v1286_v25 = vrot.slane %v1285_v22, 1  ;;  %v1295_v3 = vrot.slane %v1294_v40, 1  ;;  %v1410_v10 = vmax.f32 %v4061_v28, 0.0  ;;  %v2543_v28 = vld [vmem:[%s4804_s10 + $0x8] sm:$0xff] }
 0x1ba   :  { %v1269_v1 = vadd.f32 %v1268_v16, %v1267_v57  ;;  %v1304_v21 = vrot.slane %v1303_v33, 1  ;;  %v1278_v35 = vadd.f32 %v1277_v18, %v1276_v48  ;;  %v1411_v63 = vmax.f32 %v1394_v51, 0.0  ;;  %v2801_v51 = vld [vmem:[%s4806_s9] ss:$0 sm:$0xff] }
 0x1bb   :  { %v1287_v23 = vadd.f32 %v1286_v25, %v1285_v22  ;;  %v1296_v7 = vadd.f32 %v1295_v3, %v1294_v40  ;;  %v1412_v32 = vmax.f32 %v1396_v19, 0.0  ;;  %v2914_v26 = vpack.c.bf16 %v2543_v28, %v2542_v29  ;;  %v2800_v19 = vld [vmem:[%s4807_s8] ss:$0 sm:$0xff] }
 0x1bc   :  { %v1305_v37 = vadd.f32 %v1304_v21, %v1303_v33  ;;  %v2918_v46 = vpack.c.bf16 %v2545_v17, %v2544_v27  ;;  %v2922_v8 = vpack.c.bf16 %v2547_v59, %v2546_v4  ;;  %v2926_v56 = vpack.c.bf16 %v2549_v41, %v2548_v58 }
 0x1bd   :  { %2915 = vmatprep.subr.bf16.mxu0 %v2914_v26 }
 0x1be   :  { %2917 = vmatpush3.bf16.msra.mxu0 %v2914_v26 }
 0x1bf   :  { %v3026_v30 = vpop.eup %3025  ;;  %2919 = vmatprep.subr.bf16.mxu0 %v2918_v46 }
 0x1c0   :  { %v3028_v36 = vpop.eup %3027  ;;  %v1382_v31 = vmul.f32 %v3026_v30, %v1269_v1 }
 0x1c1   :  { %v3030_v34 = vpop.eup %3029  ;;  %v1384_v15 = vmul.f32 %v3028_v36, %v1278_v35 }
 0x1c2   :  { %v3032_v42 = vpop.eup %3031  ;;  %v1386_v52 = vmul.f32 %v3030_v34, %v1287_v23  ;;  %v1405_v60 = vmax.f32 %v1382_v31, 0.0  ;;  %2921 = vmatpush3.bf16.msra.mxu0 %v2918_v46 }
 0x1c3   :  { %v3034_v61 = vpop.eup %3033  ;;  %v1388_v45 = vmul.f32 %v3032_v42, %v1296_v7  ;;  %v1406_v9 = vmax.f32 %v1384_v15, 0.0  ;;  %2923 = vmatprep.subr.bf16.mxu0 %v2922_v8 }
 0x1c4   :  { %v1390_v38 = vmul.f32 %v3034_v61, %v1305_v37  ;;  %v1407_v12 = vmax.f32 %v1386_v52, 0.0 }
 0x1c5   :  { %v1408_v24 = vmax.f32 %v1388_v45, 0.0  ;;  %v1460_v44 = vsel %vm1446_vm12, %v1406_v9, %v1405_v60  ;;  %v4956_v45 = vld [vmem:[#allocation2_spill] sm:$0xff] }
 0x1c6   :  { %v1409_v43 = vmax.f32 %v1390_v38, 0.0  ;;  %v1461_v50 = vsel %vm1448_vm8, %v1407_v12, %v1460_v44  ;;  %2925 = vmatpush3.bf16.msra.mxu0 %v2922_v8 }
 0x1c7   :  { %v1462_v54 = vsel %vm1450_vm10, %v1408_v24, %v1461_v50  ;;  %2927 = vmatprep.subr.bf16.mxu0 %v2926_v56 }
 0x1c8   :  { %v1463_v2 = vsel %vm1452_vm14, %v1409_v43, %v1462_v54 }
 0x1c9   :  { %v1464_v13 = vsel %vm1454_vm0, %v1410_v10, %v1463_v2 }
 0x1ca   :  { %v1465_v6 = vsel %vm1456_vm6, %v1411_v63, %v1464_v13  ;;  %2929 = vmatpush3.bf16.msra.mxu0 %v2926_v56 }
 0x1cb   :  { %v1466_v62 = vsel %vm1458_vm5, %v1412_v32, %v1465_v6 }
 0x1cc   :  { %2862 = vmatmul.mubr.msk.f32.vlgmr.msra.gmra.mrb[0].mxu1 %vm740_vm7, %v1466_v62 }
 0x29f   :  { %v2863_v5 = vpop.f32.mrb[0].mxu1 }
 0x2a0   :  { %v4137_v57 = vadd.f32 %v2863_v5, %v2797_v14  ;;  %v1537_v49 = vpop.f32.mrb[1].mxu1 }
 0x2a1   :  { %v4139_v55 = vadd.f32 %v2797_v14, %v1537_v49 }
 0x2a2   :  { %v1561_v48 = vmul.f32 %v2801_v51, %v4137_v57  ;;  %v4149_v25 = vmul.f32 %v2800_v19, %v4137_v57 }
 0x2a3   :  { %v1560_v22 = vmul.f32 %v2801_v51, %v4139_v55  ;;  %v4156_v30 = vmul.f32 %v2800_v19, %v4139_v55 }
 0x2a4   :  { %v1620_v40 = vrot.slane %v1561_v48, %v3284_v53  ;;  %v1613_v16 = vcombine.high %v1561_v48, %v1561_v48 }
 0x2a5   :  { %v1564_v33 = vcombine.high %v1560_v22, %v1560_v22  ;;  %v1571_v18 = vrot.slane %v1560_v22, %v3284_v53 }
 0x2a6   :  { %v1627_v3 = vrot.slane %v1613_v16, %v3284_v53  ;;  %v1628_v1 = vcombine.high %v1620_v40, %v1620_v40  ;;  %v4153_v21 = vrot.slane %v1620_v40, %v3284_v53 }
 0x2a7   :  { %v1578_v35 = vrot.slane %v1564_v33, %v3284_v53  ;;  %v1579_v36 = vcombine.high %v1571_v18, %v1571_v18  ;;  %v1587_v23 = vrot.slane %v1571_v18, %v3284_v53 }
 0x2a8   :  { %v1629_v31 = vcombine.high %v1627_v3, %v1627_v3  ;;  %v4161_v34 = vrot.slane %v1627_v3, %v3284_v53  ;;  %v4164_v7 = vrot.slane %v1628_v1, %v3284_v53  ;;  %v1658_v15 = vcombine.high %v4153_v21, %v4153_v21 }
 0x2a9   :  { %v1580_v42 = vcombine.high %v1578_v35, %v1578_v35  ;;  %v1594_v37 = vrot.slane %v1578_v35, %v3284_v53  ;;  %v1601_v52 = vrot.slane %v1579_v36, %v3284_v53  ;;  %v1609_v61 = vcombine.high %v1587_v23, %v1587_v23 }
 0x2aa   :  { %v1665_v60 = vrot.slane %v1587_v23, %v4956_v45  ;;  %v4172_v9 = vrot.slane %v1629_v31, %v3284_v53  ;;  %v1660_v12 = vcombine.high %v4164_v7, %v4164_v7 }
 0x2ab   :  { %v1608_v24 = vrot.slane %v1580_v42, %v3284_v53  ;;  %v1610_v44 = vcombine.high %v1594_v37, %v1594_v37  ;;  %v1611_v43 = vcombine.high %v1601_v52, %v1601_v52  ;;  %v1669_v50 = vrot.slane %v1601_v52, %v4956_v45 }
 0x2ac   :  { %v1673_v10 = vrot.slane %v1609_v61, %v4956_v45  ;;  %v1681_v54 = vrot.slane %v1594_v37, %v4956_v45  ;;  %v1742_v63 = vadd.f32 %v1665_v60, %v4156_v30  ;;  %v1743_v2 = vadd.f32 %v1665_v60, %v4149_v25 }
 0x2ad   :  { %v1612_v32 = vcombine.high %v1608_v24, %v1608_v24  ;;  %v1677_v13 = vrot.slane %v1611_v43, %v4956_v45  ;;  %v1685_v6 = vrot.slane %v1608_v24, %v4956_v45  ;;  %v1689_v62 = vrot.slane %v1610_v44, %v4956_v45 }
 0x2ae   :  { %v1744_v53 = vadd.f32 %v1669_v50, %v4156_v30  ;;  %v1745_v29 = vadd.f32 %v1669_v50, %v4149_v25  ;;  %v1746_v28 = vadd.f32 %v1673_v10, %v4156_v30  ;;  %v1747_v27 = vadd.f32 %v1673_v10, %v4149_v25 }
 0x2af   :  { %v1693_v26 = vrot.slane %v1612_v32, %v4956_v45  ;;  %v1748_v17 = vadd.f32 %v1677_v13, %v4156_v30  ;;  %v1749_v46 = vadd.f32 %v1677_v13, %v4149_v25  ;;  %v1750_v4 = vadd.f32 %v1681_v54, %v4156_v30 }
 0x2b0   :  { %v1751_v59 = vadd.f32 %v1681_v54, %v4149_v25  ;;  %v1752_v8 = vadd.f32 %v1685_v6, %v4156_v30  ;;  %v1753_v58 = vadd.f32 %v1685_v6, %v4149_v25  ;;  %v1754_v41 = vadd.f32 %v1689_v62, %v4156_v30 }
 0x2b1   :  { %v1755_v56 = vadd.f32 %v1689_v62, %v4149_v25  ;;  %v1756_v14 = vadd.f32 %v1693_v26, %v4156_v30  ;;  %v1757_v5 = vadd.f32 %v1693_v26, %v4149_v25  ;;  %v1774_v51 = vmul.f32 0.2, %v1742_v63 }
 0x2b2   :  { %v1775_v49 = vmul.f32 0.2, %v1743_v2  ;;  %v1776_v48 = vmul.f32 0.2, %v1744_v53  ;;  %v1777_v19 = vmul.f32 0.2, %v1745_v29 }
 0x2b3   :  { %v1778_v40 = vmul.f32 0.2, %v1746_v28  ;;  %v1779_v16 = vmul.f32 0.2, %v1747_v27  ;;  %v1780_v33 = vmul.f32 0.2, %v1748_v17  ;;  %v1806_v18 = vmax.f32 %v1742_v63, %v1774_v51 }
 0x2b4   :  { %v1781_v3 = vmul.f32 0.2, %v1749_v46  ;;  %v1782_v1 = vmul.f32 0.2, %v1750_v4  ;;  %v1783_v35 = vmul.f32 0.2, %v1751_v59  ;;  %v1807_v36 = vmax.f32 %v1743_v2, %v1775_v49 }
 0x2b5   :  { %v1784_v23 = vmul.f32 0.2, %v1752_v8  ;;  %v1785_v31 = vmul.f32 0.2, %v1753_v58  ;;  %v1786_v42 = vmul.f32 0.2, %v1754_v41  ;;  %v1808_v37 = vmax.f32 %v1744_v53, %v1776_v48 }
 0x2b6   :  { %v1787_v52 = vmul.f32 0.2, %v1755_v56  ;;  %v1788_v61 = vmul.f32 0.2, %v1756_v14  ;;  %v1789_v60 = vmul.f32 0.2, %v1757_v5  ;;  %v1809_v24 = vmax.f32 %v1745_v29, %v1777_v19 }
 0x2b7   :  { %v1810_v44 = vmax.f32 %v1746_v28, %v1778_v40  ;;  %v1811_v43 = vmax.f32 %v1747_v27, %v1779_v16  ;;  %v1812_v50 = vmax.f32 %v1748_v17, %v1780_v33  ;;  %v1813_v10 = vmax.f32 %v1749_v46, %v1781_v3  ;;  %v4960_v17 = vld [vmem:[#allocation5_spill] sm:$0xff]  ;;  %v4970_v40 = vld [vmem:[#allocation20_spill] sm:$0xff] }
 0x2b8   :  { %v1814_v54 = vmax.f32 %v1750_v4, %v1782_v1  ;;  %v1815_v32 = vmax.f32 %v1751_v59, %v1783_v35  ;;  %v1816_v13 = vmax.f32 %v1752_v8, %v1784_v23  ;;  %v1817_v63 = vmax.f32 %v1753_v58, %v1785_v31  ;;  %v4962_v4 = vld [vmem:[#allocation8_spill] sm:$0xff]  ;;  %v4964_v8 = vld [vmem:[#allocation7_spill] sm:$0xff]  ;;  %v4974_v1 = vld [vmem:[#allocation30_spill] sm:$0xff] }
 0x2b9   :  { %v1818_v6 = vmax.f32 %v1754_v41, %v1786_v42  ;;  %v1819_v62 = vmax.f32 %v1755_v56, %v1787_v52  ;;  %v1820_v26 = vmax.f32 %v1756_v14, %v1788_v61  ;;  %v1821_v2 = vmax.f32 %v1757_v5, %v1789_v60  ;;  %v4966_v56 = vld [vmem:[#allocation14_spill] sm:$0xff]  ;;  %v4968_v5 = vld [vmem:[#allocation13_spill] sm:$0xff] }
 0x2ba   :  { %v4206_v49 = vsel %vm612_vm2, %v1806_v18, -1e+30  ;;  %v4210_v48 = vsel %vm613_vm3, %v1807_v36, -1e+30  ;;  %v4214_v28 = vsel %vm614_vm1, %v1808_v37, -1e+30  ;;  %v4218_v27 = vrot.slane %v4153_v21, %v4956_v45 }
 0x2bb   :  { %vm4961_vm4 = vcmp.gt.f32.partialorder %v4960_v17, 0.0  ;;  %vm4963_vm9 = vcmp.gt.f32.partialorder %v4962_v4, 0.0  ;;  %vm4965_vm2 = vcmp.gt.f32.partialorder %v4964_v8, 0.0  ;;  %v4234_v41 = vrot.slane %v4164_v7, %v4956_v45  ;;  %v4972_v18 = vld [vmem:[#allocation18_spill] sm:$0xff]  ;;  %v4976_v36 = vld [vmem:[#allocation29_spill] sm:$0xff] }
 0x2bc   :  { %v4222_v46 = vsel %vm4961_vm4, %v1809_v24, -1e+30  ;;  %v4226_v59 = vsel %vm4963_vm9, %v1810_v44, -1e+30  ;;  %v4230_v58 = vsel %vm4965_vm2, %v1811_v43, -1e+30  ;;  %v4252_v33 = vrot.slane %v1658_v15, %v4956_v45 }
 0x2bd   :  { %vm4967_vm1 = vcmp.gt.f32.partialorder %v4966_v56, 0.0  ;;  %vm4969_vm3 = vcmp.gt.f32.partialorder %v4968_v5, 0.0  ;;  %vm4971_vm15 = vcmp.gt.f32.partialorder %v4970_v40, 0.0  ;;  %vm4973_vm11 = vcmp.gt.f32.partialorder %v4972_v18, 0.0  ;;  %v4978_v21 = vld [vmem:[#allocation34_spill] sm:$0xff]  ;;  %v4980_v42 = vld [vmem:[#allocation33_spill] sm:$0xff] }
 0x2be   :  { %v4238_v14 = vsel %vm4967_vm1, %v1812_v50, -1e+30  ;;  %v4242_v19 = vsel %vm4969_vm3, %v1813_v10, -1e+30  ;;  %v4246_v16 = vsel %vm4971_vm15, %v1814_v54, -1e+30  ;;  %v4270_v31 = vrot.slane %v1660_v12, %v4956_v45 }
 0x2bf   :  { %v4256_v3 = vsel %vm4973_vm11, %v1815_v32, -1e+30  ;;  %vm4975_vm13 = vcmp.gt.f32.partialorder %v4974_v1, 0.0  ;;  %vm4977_vm4 = vcmp.gt.f32.partialorder %v4976_v36, 0.0  ;;  %vm4979_vm9 = vcmp.gt.f32.partialorder %v4978_v21, 0.0  ;;  %v4982_v52 = vld [vmem:[#allocation38_spill] sm:$0xff] }
 0x2c0   :  { %v4260_v35 = vsel %vm4975_vm13, %v1816_v13, -1e+30  ;;  %v4264_v23 = vsel %vm4977_vm4, %v1817_v63, -1e+30  ;;  %v4274_v15 = vsel %vm4979_vm9, %v1818_v6, -1e+30  ;;  %v4286_v60 = vrot.slane %v4161_v34, %v4956_v45 }
 0x2c1   :  { %vm4981_vm2 = vcmp.gt.f32.partialorder %v4980_v42, 0.0  ;;  %vm4983_vm1 = vcmp.gt.f32.partialorder %v4982_v52, 0.0  ;;  %v4984_v24 = vld [vmem:[#allocation37_spill] sm:$0xff]  ;;  %v1870_v12 = vsel %vm740_vm7, %v4206_v49, -inf  ;;  %v1871_v44 = vsel %vm740_vm7, %v4210_v48, -inf }
 0x2c2   :  { %v4278_v37 = vsel %vm4981_vm2, %v1819_v62, -1e+30  ;;  %v4282_v61 = vsel %vm4983_vm1, %v1820_v26, -1e+30  ;;  %vm4985_vm3 = vcmp.gt.f32.partialorder %v4984_v24, 0.0  ;;  %v1879_v43 = vsel %vm740_vm7, %v4214_v28, -inf }
 0x2c3   :  { %v4290_v7 = vsel %vm4985_vm3, %v1821_v2, -1e+30  ;;  %v1872_v50 = vmax.f32 %v1870_v12, %v1871_v44  ;;  %v1880_v10 = vsel %vm740_vm7, %v4222_v46, -inf  ;;  %v1888_v54 = vsel %vm740_vm7, %v4226_v59, -inf }
 0x2c4   :  { %v1889_v32 = vsel %vm740_vm7, %v4230_v58, -inf  ;;  %v1881_v13 = vmax.f32 %v1879_v43, %v1880_v10  ;;  %v1897_v6 = vsel %vm740_vm7, %v4238_v14, -inf  ;;  %v1898_v62 = vsel %vm740_vm7, %v4242_v19, -inf }
 0x2c5   :  { %v1890_v63 = vmax.f32 %v1888_v54, %v1889_v32  ;;  %v1873_v26 = vrot.slane %v1872_v50, 4  ;;  %v1899_v2 = vmax.f32 %v1897_v6, %v1898_v62  ;;  %v1906_v51 = vsel %vm740_vm7, %v4246_v16, -inf }
 0x2c6   :  { %v1907_v53 = vsel %vm740_vm7, %v4256_v3, -inf  ;;  %v1882_v29 = vrot.slane %v1881_v13, 4  ;;  %v1915_v8 = vsel %vm740_vm7, %v4260_v35, -inf  ;;  %v1916_v40 = vsel %vm740_vm7, %v4264_v23, -inf }
 0x2c7   :  { %v1891_v17 = vrot.slane %v1890_v63, 4  ;;  %v1908_v4 = vmax.f32 %v1906_v51, %v1907_v53  ;;  %v1874_v56 = vmax.f32 %v1872_v50, %v1873_v26  ;;  %v1900_v5 = vrot.slane %v1899_v2, 4 }
 0x2c8   :  { %v1924_v18 = vsel %vm740_vm7, %v4274_v15, -inf  ;;  %v1883_v1 = vmax.f32 %v1881_v13, %v1882_v29  ;;  %v1917_v42 = vmax.f32 %v1915_v8, %v1916_v40  ;;  %v1925_v12 = vsel %vm740_vm7, %v4278_v37, -inf }
 0x2c9   :  { %v1892_v36 = vmax.f32 %v1890_v63, %v1891_v17  ;;  %v1909_v21 = vrot.slane %v1908_v4, 4  ;;  %v1875_v52 = vrot.slane %v1874_v56, 2  ;;  %v1901_v24 = vmax.f32 %v1899_v2, %v1900_v5 }
 0x2ca   :  { %v1933_v44 = vsel %vm740_vm7, %v4282_v61, -inf  ;;  %v1884_v43 = vrot.slane %v1883_v1, 2  ;;  %v1918_v54 = vrot.slane %v1917_v42, 4  ;;  %v1926_v62 = vmax.f32 %v1924_v18, %v1925_v12 }
 0x2cb   :  { %v1893_v50 = vrot.slane %v1892_v36, 2  ;;  %v1910_v10 = vmax.f32 %v1908_v4, %v1909_v21  ;;  %v1876_v32 = vmax.f32 %v1874_v56, %v1875_v52  ;;  %v1902_v6 = vrot.slane %v1901_v24, 2 }
 0x2cc   :  { %v1934_v13 = vsel %vm740_vm7, %v4290_v7, -inf  ;;  %v1885_v63 = vmax.f32 %v1883_v1, %v1884_v43  ;;  %v1919_v2 = vmax.f32 %v1917_v42, %v1918_v54  ;;  %v1927_v17 = vrot.slane %v1926_v62, 4 }
 0x2cd   :  { %v1894_v26 = vmax.f32 %v1892_v36, %v1893_v50  ;;  %v1911_v51 = vrot.slane %v1910_v10, 2  ;;  %v1877_v53 = vrot.slane %v1876_v32, 1  ;;  %v1903_v29 = vmax.f32 %v1901_v24, %v1902_v6 }
 0x2ce   :  { %v1935_v8 = vmax.f32 %v1933_v44, %v1934_v13  ;;  %v1886_v5 = vrot.slane %v1885_v63, 1  ;;  %v1920_v38 = vrot.slane %v1919_v2, 2  ;;  %v1928_v56 = vmax.f32 %v1926_v62, %v1927_v17 }
 0x2cf   :  { %v1895_v40 = vrot.slane %v1894_v26, 1  ;;  %v1912_v22 = vmax.f32 %v1910_v10, %v1911_v51  ;;  %v1878_v4 = vmax.f32 %v1876_v32, %v1877_v53  ;;  %v1904_v21 = vrot.slane %v1903_v29, 1 }
 0x2d0   :  { %v1936_v52 = vrot.slane %v1935_v8, 4  ;;  %v1887_v18 = vmax.f32 %v1885_v63, %v1886_v5  ;;  %v1921_v20 = vmax.f32 %v1919_v2, %v1920_v38  ;;  %v1929_v36 = vrot.slane %v1928_v56, 2 }
 0x2d1   :  { %v1896_v12 = vmax.f32 %v1894_v26, %v1895_v40  ;;  %v1913_v47 = vrot.slane %v1912_v22, 1  ;;  %v1905_v1 = vmax.f32 %v1903_v29, %v1904_v21  ;;  %vm2014_vm15 = vcmp.le.f32.partialorder %v1878_v4, -5e+29 }
 0x2d2   :  { %v1937_v43 = vmax.f32 %v1935_v8, %v1936_v52  ;;  %v1922_v24 = vrot.slane %v1921_v20, 1  ;;  %vm2015_vm11 = vcmp.le.f32.partialorder %v1887_v18, -5e+29  ;;  %v1930_v44 = vmax.f32 %v1928_v56, %v1929_v36 }
 0x2d3   :  { %v1914_v42 = vmax.f32 %v1912_v22, %v1913_v47  ;;  %vm2016_vm13 = vcmp.le.f32.partialorder %v1896_v12, -5e+29  ;;  %vm2017_vm4 = vcmp.le.f32.partialorder %v1905_v1, -5e+29  ;;  %v2030_v10 = vsel %vm2014_vm15, 0.0, %v1878_v4 }
 0x2d4   :  { %v1938_v50 = vrot.slane %v1937_v43, 2  ;;  %v1923_v54 = vmax.f32 %v1921_v20, %v1922_v24  ;;  %v2031_v32 = vsel %vm2015_vm11, 0.0, %v1887_v18  ;;  %v2032_v6 = vsel %vm2016_vm13, 0.0, %v1896_v12 }
 0x2d5   :  { %vm2018_vm9 = vcmp.le.f32.partialorder %v1914_v42, -5e+29  ;;  %v1931_v62 = vrot.slane %v1930_v44, 1  ;;  %v2033_v63 = vsel %vm2017_vm4, 0.0, %v1905_v1  ;;  %v2046_v26 = vsub.f32 %v4206_v49, %v2030_v10 }
 0x2d6   :  { %v1939_v13 = vmax.f32 %v1937_v43, %v1938_v50  ;;  %v2034_v38 = vsel %vm2018_vm9, 0.0, %v1914_v42  ;;  %vm2019_vm2 = vcmp.le.f32.partialorder %v1923_v54, -5e+29  ;;  %v2047_v47 = vsub.f32 %v4210_v48, %v2030_v10 }
 0x2d7   :  { %v2048_v22 = vsub.f32 %v4214_v28, %v2031_v32  ;;  %v1932_v51 = vmax.f32 %v1930_v44, %v1931_v62  ;;  %v2035_v53 = vsel %vm2019_vm2, 0.0, %v1923_v54  ;;  %v2049_v29 = vsub.f32 %v4222_v46, %v2031_v32 }
 0x2d8   :  { %v1940_v2 = vrot.slane %v1939_v13, 1  ;;  %v2050_v20 = vsub.f32 %v4226_v59, %v2032_v6  ;;  %v2051_v17 = vsub.f32 %v4230_v58, %v2032_v6  ;;  %v2052_v8 = vsub.f32 %v4238_v14, %v2033_v63 }
 0x2d9   :  { %v2053_v5 = vsub.f32 %v4242_v19, %v2033_v63  ;;  %vm2020_vm1 = vcmp.le.f32.partialorder %v1932_v51, -5e+29  ;;  %v2054_v49 = vsub.f32 %v4246_v16, %v2034_v38  ;;  %v2055_v48 = vsub.f32 %v4256_v3, %v2034_v38 }
 0x2da   :  { %v1941_v40 = vmax.f32 %v1939_v13, %v1940_v2  ;;  %v2036_v28 = vsel %vm2020_vm1, 0.0, %v1932_v51  ;;  %v2056_v4 = vsub.f32 %v4260_v35, %v2035_v53  ;;  %v2057_v21 = vsub.f32 %v4264_v23, %v2035_v53 }
 0x2db   :  { %v2078_v46 = vmul.f32 1.442695, %v2046_v26  ;;  %v2058_v59 = vsub.f32 %v4274_v15, %v2036_v28  ;;  %v2059_v58 = vsub.f32 %v4278_v37, %v2036_v28  ;;  %v2080_v14 = vmul.f32 1.442695, %v2047_v47 }
 0x2dc   :  { %vm2021_vm3 = vcmp.le.f32.partialorder %v1941_v40, -5e+29  ;;  %v2082_v19 = vmul.f32 1.442695, %v2048_v22  ;;  %v2084_v52 = vmul.f32 1.442695, %v2049_v29  ;;  %v4987_v10 = vcombine.high %v4172_v9, %v4172_v9 }
 0x2dd   :  { %v2037_v56 = vsel %vm2021_vm3, 0.0, %v1941_v40  ;;  %3035 = vpow2.f32 %v2078_v46  ;;  %v2086_v18 = vmul.f32 1.442695, %v2050_v20  ;;  %v2088_v35 = vmul.f32 1.442695, %v2051_v17 }
 0x2de   :  { %v2060_v16 = vsub.f32 %v4282_v61, %v2037_v56  ;;  %v2061_v3 = vsub.f32 %v4290_v7, %v2037_v56  ;;  %3037 = vpow2.f32 %v2080_v14  ;;  %v2090_v23 = vmul.f32 1.442695, %v2052_v8 }
 0x2df   :  { %3039 = vpow2.f32 %v2082_v19  ;;  %v2092_v12 = vmul.f32 1.442695, %v2053_v5  ;;  %v2094_v1 = vmul.f32 1.442695, %v2054_v49  ;;  %v2096_v15 = vmul.f32 1.442695, %v2055_v48 }
 0x2e0   :  { %3041 = vpow2.f32 %v2084_v52  ;;  %v2098_v36 = vmul.f32 1.442695, %v2056_v4  ;;  %v2100_v37 = vmul.f32 1.442695, %v2057_v21  ;;  %v2102_v43 = vmul.f32 1.442695, %v2058_v59 }
 0x2e1   :  { %3043 = vpow2.f32 %v2086_v18  ;;  %v2104_v42 = vmul.f32 1.442695, %v2059_v58  ;;  %v2106_v24 = vmul.f32 1.442695, %v2060_v16  ;;  %v2108_v44 = vmul.f32 1.442695, %v2061_v3 }
 0x2e2   :  { %3045 = vpow2.f32 %v2088_v35  ;;  %v1717_v61 = vrot.slane %v4172_v9, %v4956_v45  ;;  %v4986_v7 = vcombine.high %v4161_v34, %v4161_v34  ;;  %v4350_v54 = vrot.slane %v4987_v10, %v4956_v45 }
 0x2e3   :  { %3047 = vpow2.f32 %v2090_v23  ;;  %v4354_v32 = vadd.f32 %v4218_v27, %v4156_v30  ;;  %v4358_v6 = vadd.f32 %v4218_v27, %v4149_v25  ;;  %v4362_v62 = vadd.f32 %v4234_v41, %v4156_v30 }
 0x2e4   :  { %v1721_v50 = vrot.slane %v4986_v7, %v4956_v45  ;;  %3049 = vpow2.f32 %v2092_v12  ;;  %v4366_v34 = vadd.f32 %v4234_v41, %v4149_v25  ;;  %v4370_v45 = vadd.f32 %v4252_v33, %v4156_v30 }
 0x2e5   :  { %3051 = vpow2.f32 %v2094_v1  ;;  %v4374_v9 = vadd.f32 %v4252_v33, %v4149_v25  ;;  %v4378_v27 = vadd.f32 %v4270_v31, %v4156_v30  ;;  %v4382_v13 = vadd.f32 %v4270_v31, %v4149_v25 }
 0x2e6   :  { %3053 = vpow2.f32 %v2096_v15  ;;  %v4386_v41 = vadd.f32 %v4286_v60, %v4156_v30  ;;  %v4390_v63 = vadd.f32 %v4286_v60, %v4149_v25  ;;  %v4393_v33 = vadd.f32 %v1717_v61, %v4156_v30 }
 0x2e7   :  { %v3036_v38 = vpop.eup %3035  ;;  %3055 = vpow2.f32 %v2098_v36  ;;  %v4396_v26 = vadd.f32 %v1717_v61, %v4149_v25  ;;  %v4399_v47 = vadd.f32 %v1721_v50, %v4156_v30  ;;  %v4404_v60 = vadd.f32 %v1721_v50, %v4149_v25 }
 0x2e8   :  { %v3038_v31 = vpop.eup %3037  ;;  %3057 = vpow2.f32 %v2100_v37  ;;  %v2142_v22 = vsel %vm740_vm7, %v3036_v38, 0.0  ;;  %v2286_v51 = vmul.f32 %v3036_v38, %v4139_v55  ;;  %v4410_v20 = vadd.f32 %v4350_v54, %v4156_v30 }
 0x2e9   :  { %v3040_v2 = vpop.eup %3039  ;;  %3059 = vpow2.f32 %v2102_v43  ;;  %v2143_v53 = vsel %vm740_vm7, %v3038_v31, 0.0  ;;  %v2287_v29 = vmul.f32 %v3038_v31, %v4137_v57 }
 0x2ea   :  { %v3042_v17 = vpop.eup %3041  ;;  %3061 = vpow2.f32 %v2104_v42  ;;  %v2144_v8 = vadd.f32 %v2143_v53, %v2142_v22  ;;  %v2151_v5 = vsel %vm740_vm7, %v3040_v2, 0.0  ;;  %v4414_v40 = vmul.f32 %v3040_v2, %v4139_v55 }
 0x2eb   :  { %v3044_v49 = vpop.eup %3043  ;;  %3063 = vpow2.f32 %v2106_v24  ;;  %v2152_v48 = vsel %vm740_vm7, %v3042_v17, 0.0  ;;  %v4418_v28 = vmul.f32 %v3042_v17, %v4137_v57  ;;  %v2318_v4 = vsel %vm740_vm7, %v2286_v51, 0.0 }
 0x2ec   :  { %v3046_v21 = vpop.eup %3045  ;;  %3065 = vpow2.f32 %v2108_v44  ;;  %v2145_v30 = vrot.slane %v2144_v8, 4  ;;  %v2153_v46 = vadd.f32 %v2152_v48, %v2151_v5  ;;  %v2160_v59 = vsel %vm740_vm7, %v3044_v49, 0.0 }
 0x2ed   :  { %v3048_v58 = vpop.eup %3047  ;;  %v2161_v14 = vsel %vm740_vm7, %v3046_v21, 0.0  ;;  %v4424_v56 = vmul.f32 %v3044_v49, %v4139_v55  ;;  %v4427_v19 = vmul.f32 %v3046_v21, %v4137_v57  ;;  %v2319_v52 = vsel %vm740_vm7, %v2287_v29, 0.0 }
 0x2ee   :  { %v3050_v16 = vpop.eup %3049  ;;  %v2146_v3 = vadd.f32 %v2145_v30, %v2144_v8  ;;  %v2154_v18 = vrot.slane %v2153_v46, 4  ;;  %v2162_v35 = vadd.f32 %v2161_v14, %v2160_v59  ;;  %v2169_v23 = vsel %vm740_vm7, %v3048_v58, 0.0 }
 0x2ef   :  { %v3052_v12 = vpop.eup %3051  ;;  %v2170_v1 = vsel %vm740_vm7, %v3050_v16, 0.0  ;;  %v4433_v15 = vmul.f32 %v3048_v58, %v4139_v55  ;;  %v4436_v36 = vmul.f32 %v3050_v16, %v4137_v57  ;;  %v4438_v37 = vadd.f32 %v2319_v52, %v2318_v4 }
 0x2f0   :  { %v3054_v43 = vpop.eup %3053  ;;  %v2147_v42 = vrot.slane %v2146_v3, 2  ;;  %v2155_v24 = vadd.f32 %v2154_v18, %v2153_v46  ;;  %v2163_v44 = vrot.slane %v2162_v35, 4  ;;  %v2171_v61 = vadd.f32 %v2170_v1, %v2169_v23 }
 0x2f1   :  { %v3056_v7 = vpop.eup %3055  ;;  %v2178_v50 = vsel %vm740_vm7, %v3052_v12, 0.0  ;;  %v2179_v10 = vsel %vm740_vm7, %v3054_v43, 0.0  ;;  %v4443_v38 = vmul.f32 %v3052_v12, %v4139_v55  ;;  %v4446_v31 = vmul.f32 %v3054_v43, %v4137_v57 }
 0x2f2   :  { %v3058_v22 = vpop.eup %3057  ;;  %v2148_v51 = vadd.f32 %v2147_v42, %v2146_v3  ;;  %v2156_v2 = vrot.slane %v2155_v24, 2  ;;  %v2164_v53 = vadd.f32 %v2163_v44, %v2162_v35  ;;  %v2172_v29 = vrot.slane %v2171_v61, 4 }
 0x2f3   :  { %v3060_v17 = vpop.eup %3059  ;;  %v2180_v8 = vadd.f32 %v2179_v10, %v2178_v50  ;;  %v2187_v5 = vsel %vm740_vm7, %v3056_v7, 0.0  ;;  %v2188_v49 = vsel %vm740_vm7, %v3058_v22, 0.0  ;;  %v4451_v48 = vmul.f32 %v3056_v7, %v4139_v55 }
 0x2f4   :  { %v3062_v4 = vpop.eup %3061  ;;  %v2149_v21 = vrot.slane %v2148_v51, 1  ;;  %v2157_v30 = vadd.f32 %v2156_v2, %v2155_v24  ;;  %v2165_v46 = vrot.slane %v2164_v53, 2  ;;  %v2173_v59 = vadd.f32 %v2172_v29, %v2171_v61 }
 0x2f5   :  { %v3064_v58 = vpop.eup %3063  ;;  %v2181_v14 = vrot.slane %v2180_v8, 4  ;;  %v2189_v52 = vadd.f32 %v2188_v49, %v2187_v5  ;;  %v2196_v16 = vsel %vm740_vm7, %v3060_v17, 0.0  ;;  %v2197_v3 = vsel %vm740_vm7, %v3062_v4, 0.0 }
 0x2f6   :  { %v3066_v18 = vpop.eup %3065  ;;  %v4455_v35 = vadd.f32 %v2149_v21, %v2148_v51  ;;  %v2158_v23 = vrot.slane %v2157_v30, 1  ;;  %v2166_v12 = vadd.f32 %v2165_v46, %v2164_v53  ;;  %v2174_v1 = vrot.slane %v2173_v59, 2 }
 0x2f7   :  { %v2182_v43 = vadd.f32 %v2181_v14, %v2180_v8  ;;  %v2190_v42 = vrot.slane %v2189_v52, 4  ;;  %v2198_v44 = vadd.f32 %v2197_v3, %v2196_v16  ;;  %v2205_v24 = vsel %vm740_vm7, %v3064_v58, 0.0 }
 0x2f8   :  { %v4458_v7 = vadd.f32 %v2158_v23, %v2157_v30  ;;  %v2167_v61 = vrot.slane %v2166_v12, 1  ;;  %v2175_v50 = vadd.f32 %v2174_v1, %v2173_v59  ;;  %v2206_v10 = vsel %vm740_vm7, %v3066_v18, 0.0 }
 0x2f9   :  { %v2183_v2 = vrot.slane %v2182_v43, 2  ;;  %v2191_v29 = vadd.f32 %v2190_v42, %v2189_v52  ;;  %v2199_v5 = vrot.slane %v2198_v44, 4  ;;  %v2207_v49 = vadd.f32 %v2206_v10, %v2205_v24 }
 0x2fa   :  { %v4461_v51 = vadd.f32 %v2167_v61, %v2166_v12  ;;  %v2176_v21 = vrot.slane %v2175_v50, 1  ;;  %v2297_v53 = vmul.f32 %v3058_v22, %v4137_v57  ;;  %v2298_v8 = vmul.f32 %v3060_v17, %v4139_v55 }
 0x2fb   :  { %v2184_v46 = vadd.f32 %v2183_v2, %v2182_v43  ;;  %v2192_v14 = vrot.slane %v2191_v29, 2  ;;  %v2200_v16 = vadd.f32 %v2199_v5, %v2198_v44  ;;  %v2208_v30 = vrot.slane %v2207_v49, 4 }
 0x2fc   :  { %v4465_v3 = vadd.f32 %v2176_v21, %v2175_v50  ;;  %v2299_v59 = vmul.f32 %v3062_v4, %v4137_v57  ;;  %v2300_v23 = vmul.f32 %v3064_v58, %v4139_v55  ;;  %v2301_v52 = vmul.f32 %v3066_v18, %v4137_v57 }
 0x2fd   :  { %v2185_v1 = vrot.slane %v2184_v46, 1  ;;  %v2193_v12 = vadd.f32 %v2192_v14, %v2191_v29  ;;  %v2201_v42 = vrot.slane %v2200_v16, 2  ;;  %v2209_v24 = vadd.f32 %v2208_v30, %v2207_v49 }
 0x2fe   :  { %v2321_v22 = vrot.slane %v4438_v37, 4  ;;  %v2327_v17 = vsel %vm740_vm7, %v4414_v40, 0.0  ;;  %v2328_v43 = vsel %vm740_vm7, %v4418_v28, 0.0  ;;  %v2336_v44 = vsel %vm740_vm7, %v4424_v56, 0.0 }
 0x2ff   :  { %v4477_v4 = vadd.f32 %v2185_v1, %v2184_v46  ;;  %v2194_v58 = vrot.slane %v2193_v12, 1  ;;  %v2202_v61 = vadd.f32 %v2201_v42, %v2200_v16  ;;  %v2210_v18 = vrot.slane %v2209_v24, 2 }
 0x300   :  { %v2322_v50 = vadd.f32 %v2321_v22, %v4438_v37  ;;  %v2329_v10 = vadd.f32 %v2328_v43, %v2327_v17  ;;  %v2337_v2 = vsel %vm740_vm7, %v4427_v19, 0.0  ;;  %v2345_v40 = vsel %vm740_vm7, %v4433_v15, 0.0 }
 0x301   :  { %v4484_v29 = vadd.f32 %v2194_v58, %v2193_v12  ;;  %v2203_v28 = vrot.slane %v2202_v61, 1  ;;  %v2211_v5 = vadd.f32 %v2210_v18, %v2209_v24  ;;  %v2338_v49 = vadd.f32 %v2337_v2, %v2336_v44 }
 0x302   :  { %v2323_v56 = vrot.slane %v2322_v50, 2  ;;  %v2330_v21 = vrot.slane %v2329_v10, 4  ;;  %v2346_v46 = vsel %vm740_vm7, %v4436_v36, 0.0  ;;  %v2354_v37 = vsel %vm740_vm7, %v4443_v38, 0.0 }
 0x303   :  { %v4490_v14 = vadd.f32 %v2203_v28, %v2202_v61  ;;  %v2212_v16 = vrot.slane %v2211_v5, 1  ;;  %v2339_v19 = vrot.slane %v2338_v49, 4  ;;  %v2347_v30 = vadd.f32 %v2346_v46, %v2345_v40 }
 0x304   :  { %v2324_v1 = vadd.f32 %v2323_v56, %v2322_v50  ;;  %v2331_v15 = vadd.f32 %v2330_v21, %v2329_v10  ;;  %v2355_v12 = vsel %vm740_vm7, %v4446_v31, 0.0  ;;  %v2363_v42 = vsel %vm740_vm7, %v4451_v48, 0.0 }
 0x305   :  { %v4496_v24 = vadd.f32 %v2212_v16, %v2211_v5  ;;  %v2340_v22 = vadd.f32 %v2339_v19, %v2338_v49  ;;  %v2348_v36 = vrot.slane %v2347_v30, 4  ;;  %v2356_v17 = vadd.f32 %v2355_v12, %v2354_v37 }
 0x306   :  { %v2325_v43 = vrot.slane %v2324_v1, 1  ;;  %v2332_v38 = vrot.slane %v2331_v15, 2  ;;  %v2364_v44 = vsel %vm740_vm7, %v2297_v53, 0.0  ;;  %v2372_v58 = vsel %vm740_vm7, %v2298_v8, 0.0 }
 0x307   :  { %v2341_v61 = vrot.slane %v2340_v22, 2  ;;  %v2349_v18 = vadd.f32 %v2348_v36, %v2347_v30  ;;  %v2357_v50 = vrot.slane %v2356_v17, 4  ;;  %v2365_v10 = vadd.f32 %v2364_v44, %v2363_v42 }
 0x308   :  { %v4500_v2 = vadd.f32 %v2325_v43, %v2324_v1  ;;  %v2333_v31 = vadd.f32 %v2332_v38, %v2331_v15  ;;  %v2373_v48 = vsel %vm740_vm7, %v2299_v59, 0.0  ;;  %v2381_v40 = vsel %vm740_vm7, %v2300_v23, 0.0 }
 0x309   :  { %v2342_v28 = vadd.f32 %v2341_v61, %v2340_v22  ;;  %v2350_v5 = vrot.slane %v2349_v18, 2  ;;  %v2358_v49 = vadd.f32 %v2357_v50, %v2356_v17  ;;  %v2366_v56 = vrot.slane %v2365_v10, 4 }
 0x30a   :  { %v2334_v21 = vrot.slane %v2333_v31, 1  ;;  %v2374_v46 = vadd.f32 %v2373_v48, %v2372_v58  ;;  %v2382_v53 = vsel %vm740_vm7, %v2301_v52, 0.0  ;;  %vm2462_vm15 = vcmp.gt.f32.partialorder %v4455_v35, 0.0 }
 0x30b   :  { %v2343_v8 = vrot.slane %v2342_v28, 1  ;;  %v2351_v37 = vadd.f32 %v2350_v5, %v2349_v18  ;;  %v2359_v16 = vrot.slane %v2358_v49, 2  ;;  %v2367_v19 = vadd.f32 %v2366_v56, %v2365_v10 }
 0x30c   :  { %v4506_v30 = vadd.f32 %v2334_v21, %v2333_v31  ;;  %v2375_v1 = vrot.slane %v2374_v46, 4  ;;  %v2383_v59 = vadd.f32 %v2382_v53, %v2381_v40  ;;  %vm2463_vm11 = vcmp.gt.f32.partialorder %v4458_v7, 0.0 }
 0x30d   :  { %v4509_v23 = vadd.f32 %v2343_v8, %v2342_v28  ;;  %v2352_v15 = vrot.slane %v2351_v37, 1  ;;  %v2360_v12 = vadd.f32 %v2359_v16, %v2358_v49  ;;  %v2368_v42 = vrot.slane %v2367_v19, 2 }
 0x30e   :  { %v2376_v22 = vadd.f32 %v2375_v1, %v2374_v46  ;;  %v2384_v36 = vrot.slane %v2383_v59, 4  ;;  %vm2464_vm13 = vcmp.gt.f32.partialorder %v4461_v51, 0.0  ;;  %vm2465_vm4 = vcmp.gt.f32.partialorder %v4465_v3, 0.0 }
 0x30f   :  { %v4513_v52 = vadd.f32 %v2352_v15, %v2351_v37  ;;  %v2361_v17 = vrot.slane %v2360_v12, 1  ;;  %v2369_v43 = vadd.f32 %v2368_v42, %v2367_v19  ;;  %vm2466_vm9 = vcmp.gt.f32.partialorder %v4477_v4, 0.0 }
 0x310   :  { %v2377_v38 = vrot.slane %v2376_v22, 2  ;;  %v2385_v44 = vadd.f32 %v2384_v36, %v2383_v59  ;;  %vm2467_vm2 = vcmp.gt.f32.partialorder %v4484_v29, 0.0  ;;  %vm2468_vm1 = vcmp.gt.f32.partialorder %v4490_v14, 0.0 }
 0x311   :  { %v4518_v58 = vadd.f32 %v2361_v17, %v2360_v12  ;;  %v2370_v61 = vrot.slane %v2369_v43, 1  ;;  %vm2469_vm3 = vcmp.gt.f32.partialorder %v4496_v24, 0.0  ;;  %v2478_v18 = vsel %vm2462_vm15, %v4455_v35, 1.0 }
 0x312   :  { %v2378_v50 = vadd.f32 %v2377_v38, %v2376_v22  ;;  %v2386_v10 = vrot.slane %v2385_v44, 2  ;;  %v2479_v31 = vsel %vm2463_vm11, %v4458_v7, 1.0  ;;  %v2480_v48 = vsel %vm2464_vm13, %v4461_v51, 1.0 }
 0x313   :  { %v4530_v40 = vadd.f32 %v2370_v61, %v2369_v43  ;;  %v2481_v28 = vsel %vm2465_vm4, %v4465_v3, 1.0  ;;  %v2482_v5 = vsel %vm2466_vm9, %v4477_v4, 1.0  ;;  %v2483_v35 = vsel %vm2467_vm2, %v4484_v29, 1.0 }
 0x314   :  { %v2379_v49 = vrot.slane %v2378_v50, 1  ;;  %v2387_v56 = vadd.f32 %v2386_v10, %v2385_v44  ;;  %v2484_v21 = vsel %vm2468_vm1, %v4490_v14, 1.0  ;;  %v2485_v7 = vsel %vm2469_vm3, %v4496_v24, 1.0 }
 0x315   :  { %3067 = vrcp.f32 %v2478_v18  ;;  %v4541_v51 = vadd.f32 %v4350_v54, %v4149_v25  ;;  %v1790_v46 = vmul.f32 0.2, %v4354_v32  ;;  %v1791_v53 = vmul.f32 0.2, %v4358_v6 }
 0x316   :  { %v4545_v3 = vadd.f32 %v2379_v49, %v2378_v50  ;;  %v2388_v4 = vrot.slane %v2387_v56, 1  ;;  %3069 = vrcp.f32 %v2479_v31  ;;  %v1792_v29 = vmul.f32 0.2, %v4362_v62 }
 0x317   :  { %3071 = vrcp.f32 %v2480_v48  ;;  %v1793_v14 = vmul.f32 0.2, %v4366_v34  ;;  %v1794_v24 = vmul.f32 0.2, %v4370_v45  ;;  %v1795_v8 = vmul.f32 0.2, %v4374_v9 }
 0x318   :  { %v4551_v37 = vadd.f32 %v2388_v4, %v2387_v56  ;;  %3073 = vrcp.f32 %v2481_v28  ;;  %v1796_v25 = vmul.f32 0.2, %v4378_v27  ;;  %v1797_v54 = vmul.f32 0.2, %v4382_v13  ;;  %v4997_v56 = vld [vmem:[#allocation27_spill] sm:$0xff] }
 0x319   :  { %3075 = vrcp.f32 %v2482_v5  ;;  %v1798_v16 = vmul.f32 0.2, %v4386_v41  ;;  %v1799_v19 = vmul.f32 0.2, %v4390_v63  ;;  %v1800_v1 = vmul.f32 0.2, %v4393_v33 }
 0x31a   :  { %3077 = vrcp.f32 %v2483_v35  ;;  %v1801_v59 = vmul.f32 0.2, %v4396_v26  ;;  %v1802_v15 = vmul.f32 0.2, %v4399_v47  ;;  %v1803_v12 = vmul.f32 0.2, %v4404_v60 }
 0x31b   :  { %3079 = vrcp.f32 %v2484_v21  ;;  %v1804_v42 = vmul.f32 0.2, %v4410_v20  ;;  %v1805_v22 = vmul.f32 0.2, %v4541_v51  ;;  %v1822_v36 = vmax.f32 %v4354_v32, %v1790_v46 }
 0x31c   :  { %3081 = vrcp.f32 %v2485_v7  ;;  %v1823_v17 = vmax.f32 %v4358_v6, %v1791_v53  ;;  %v1824_v43 = vmax.f32 %v4362_v62, %v1792_v29  ;;  %v1825_v38 = vmax.f32 %v4366_v34, %v1793_v14  ;;  %v5001_v53 = vld [vmem:[#allocation32_spill] sm:$0xff]  ;;  %v5003_v29 = vld [vmem:[#allocation31_spill] sm:$0xff] }
 0x31d   :  { %v1826_v44 = vmax.f32 %v4370_v45, %v1794_v24  ;;  %v1827_v61 = vmax.f32 %v4374_v9, %v1795_v8  ;;  %v1828_v18 = vmax.f32 %v4378_v27, %v1796_v25  ;;  %v1829_v50 = vmax.f32 %v4382_v13, %v1797_v54  ;;  %v5005_v25 = vld [vmem:[#allocation36_spill] sm:$0xff] }
 0x31e   :  { %v1830_v10 = vmax.f32 %v4386_v41, %v1798_v16  ;;  %v1831_v31 = vmax.f32 %v4390_v63, %v1799_v19  ;;  %v1832_v32 = vmax.f32 %v4393_v33, %v1800_v1  ;;  %v1833_v6 = vmax.f32 %v4396_v26, %v1801_v59  ;;  %v4989_v63 = vld [vmem:[#allocation9_spill] sm:$0xff]  ;;  %v5007_v16 = vld [vmem:[#allocation35_spill] sm:$0xff] }
 0x31f   :  { %v3068_v48 = vpop.eup %3067  ;;  %v1834_v62 = vmax.f32 %v4399_v47, %v1802_v15  ;;  %v1835_v34 = vmax.f32 %v4404_v60, %v1803_v12  ;;  %v1836_v45 = vmax.f32 %v4410_v20, %v1804_v42  ;;  %v1837_v9 = vmax.f32 %v4541_v51, %v1805_v22  ;;  %v4992_v20 = vld [vmem:[#allocation11_spill] sm:$0xff] }
 0x320   :  { %v3070_v27 = vpop.eup %3069  ;;  %v2495_v13 = vmul.f32 %v3068_v48, %v4500_v2  ;;  %vm4988_vm15 = vcmp.gt.f32.partialorder %v4945_v0, 0.0  ;;  %vm4990_vm11 = vcmp.gt.f32.partialorder %v4989_v63, 0.0  ;;  %vm4991_vm13 = vcmp.gt.f32.partialorder %v4946_v11, 0.0  ;;  %v4995_v2 = vld [vmem:[#allocation15_spill] sm:$0xff] }
 0x321   :  { %v4582_v41 = vsel %vm4988_vm15, %v1822_v36, -1e+30  ;;  %v4586_v33 = vsel %vm4990_vm11, %v1823_v17, -1e+30  ;;  %v4590_v26 = vsel %vm4991_vm13, %v1824_v43, -1e+30  ;;  %v3072_v47 = vpop.eup %3071  ;;  %v2497_v60 = vmul.f32 %v3070_v27, %v4506_v30 }
 0x322   :  { %vm4993_vm4 = vcmp.gt.f32.partialorder %v4992_v20, 0.0  ;;  %vm4994_vm9 = vcmp.gt.f32.partialorder %v4947_v39, 0.0  ;;  %vm4996_vm2 = vcmp.gt.f32.partialorder %v4995_v2, 0.0  ;;  %v3074_v35 = vpop.eup %3073  ;;  %v2499_v11 = vmul.f32 %v3072_v47, %v4509_v23  ;;  %v4999_v30 = vld [vmem:[#allocation21_spill] sm:$0xff]  ;;  %v5009_v12 = vld [vmem:[#allocation39_spill] sm:$0xff]  ;;  %v5011_v43 = vld [vmem:[#allocation22_spill] sm:$0xff] }
 0x323   :  { %v4595_v28 = vsel %vm4993_vm4, %v1825_v38, -1e+30  ;;  %v4599_v0 = vsel %vm4994_vm9, %v1826_v44, -1e+30  ;;  %v4603_v5 = vsel %vm4996_vm2, %v1827_v61, -1e+30  ;;  %v3076_v51 = vpop.eup %3075  ;;  %v2501_v39 = vmul.f32 %v3074_v35, %v4513_v52 }
 0x324   :  { %v2526_v49 = vmax.f32 %v2495_v13, 0.0  ;;  %vm4998_vm1 = vcmp.gt.f32.partialorder %v4997_v56, 0.0  ;;  %vm5000_vm3 = vcmp.gt.f32.partialorder %v4999_v30, 0.0  ;;  %v2527_v46 = vmax.f32 %v2497_v60, 0.0  ;;  %v3078_v14 = vpop.eup %3077 }
 0x325   :  { %v4608_v21 = vsel %vm4998_vm1, %v1828_v18, -1e+30  ;;  %v4612_v7 = vsel %vm5000_vm3, %v1829_v50, -1e+30  ;;  %vm5002_vm15 = vcmp.gt.f32.partialorder %v5001_v53, 0.0  ;;  %vm5004_vm11 = vcmp.gt.f32.partialorder %v5003_v29, 0.0  ;;  %v3080_v19 = vpop.eup %3079 }
 0x326   :  { %v4617_v4 = vsel %vm5002_vm15, %v1830_v10, -1e+30  ;;  %v4621_v23 = vsel %vm5004_vm11, %v1831_v31, -1e+30  ;;  %v2503_v24 = vmul.f32 %v3076_v51, %v4518_v58  ;;  %v2528_v8 = vmax.f32 %v2499_v11, 0.0  ;;  %v3082_v58 = vpop.eup %3081  ;;  %v5013_v18 = vld [vmem:[#allocation41_spill] sm:$0xff] }
 0x327   :  { %vm5006_vm13 = vcmp.gt.f32.partialorder %v5005_v25, 0.0  ;;  %vm5008_vm4 = vcmp.gt.f32.partialorder %v5007_v16, 0.0  ;;  %v2505_v1 = vmul.f32 %v3078_v14, %v4530_v40  ;;  %v2529_v59 = vmax.f32 %v2501_v39, 0.0 }
 0x328   :  { %v4626_v54 = vsel %vm5006_vm13, %v1832_v32, -1e+30  ;;  %v4630_v52 = vsel %vm5008_vm4, %v1833_v6, -1e+30  ;;  %v2573_v15 = vsel %vm1446_vm12, %v2527_v46, %v2526_v49  ;;  %vm5010_vm9 = vcmp.gt.f32.partialorder %v5009_v12, 0.0 }
 0x329   :  { %v4636_v42 = vsel %vm5010_vm9, %v1834_v62, -1e+30  ;;  %v2507_v22 = vmul.f32 %v3080_v19, %v4545_v3  ;;  %v2530_v36 = vmax.f32 %v2503_v24, 0.0  ;;  %v2574_v17 = vsel %vm1448_vm8, %v2528_v8, %v2573_v15  ;;  %v5015_v3 = vld [vmem:[#allocation40_spill] sm:$0xff] }
 0x32a   :  { %vm5012_vm2 = vcmp.gt.f32.partialorder %v5011_v43, 0.0  ;;  %v2509_v44 = vmul.f32 %v3082_v58, %v4551_v37  ;;  %v2531_v40 = vmax.f32 %v2505_v1, 0.0  ;;  %v2575_v61 = vsel %vm1450_vm10, %v2529_v59, %v2574_v17 }
 0x32b   :  { %v4642_v38 = vsel %vm5012_vm2, %v1835_v34, -1e+30  ;;  %vm5014_vm1 = vcmp.gt.f32.partialorder %v5013_v18, 0.0  ;;  %v2532_v10 = vmax.f32 %v2507_v22, 0.0  ;;  %v2576_v31 = vsel %vm1452_vm14, %v2530_v36, %v2575_v61 }
 0x32c   :  { %v4648_v50 = vsel %vm5014_vm1, %v1836_v45, -1e+30  ;;  %vm5016_vm3 = vcmp.gt.f32.partialorder %v5015_v3, 0.0  ;;  %v1942_v6 = vsel %vm740_vm7, %v4582_v41, -inf  ;;  %v2533_v48 = vmax.f32 %v2509_v44, 0.0 }
 0x32d   :  { %v4653_v32 = vsel %vm5016_vm3, %v1837_v9, -1e+30  ;;  %v2577_v37 = vsel %vm1454_vm0, %v2531_v40, %v2576_v31  ;;  %v1943_v62 = vsel %vm740_vm7, %v4586_v33, -inf  ;;  %v1951_v34 = vsel %vm740_vm7, %v4590_v26, -inf }
 0x32e   :  { %v2578_v45 = vsel %vm1456_vm6, %v2532_v10, %v2577_v37  ;;  %v1944_v27 = vmax.f32 %v1942_v6, %v1943_v62  ;;  %v1952_v13 = vsel %vm740_vm7, %v4595_v28, -inf  ;;  %v1960_v9 = vsel %vm740_vm7, %v4599_v0, -inf }
 0x32f   :  { %v2579_v63 = vsel %vm1458_vm5, %v2533_v48, %v2578_v45  ;;  %v1953_v47 = vmax.f32 %v1951_v34, %v1952_v13  ;;  %v1961_v60 = vsel %vm740_vm7, %v4603_v5, -inf  ;;  %v1969_v20 = vsel %vm740_vm7, %v4608_v21, -inf }
 0x330   :  { %2880 = vmatprep.mubr.msk.f32.mxu0 %vm740_vm7, %v2579_v63  ;;  %v1945_v2 = vrot.slane %v1944_v27, 4  ;;  %v1962_v35 = vmax.f32 %v1960_v9, %v1961_v60  ;;  %v1970_v11 = vsel %vm740_vm7, %v4612_v7, -inf  ;;  %v1978_v49 = vsel %vm740_vm7, %v4617_v4, -inf }
 0x331   :  { %v1954_v56 = vrot.slane %v1953_v47, 4  ;;  %v1971_v30 = vmax.f32 %v1969_v20, %v1970_v11  ;;  %v1979_v51 = vsel %vm740_vm7, %v4621_v23, -inf  ;;  %v1987_v39 = vsel %vm740_vm7, %v4626_v54, -inf }
 0x332   :  { %v1946_v46 = vmax.f32 %v1944_v27, %v1945_v2  ;;  %v1963_v53 = vrot.slane %v1962_v35, 4  ;;  %v1980_v29 = vmax.f32 %v1978_v49, %v1979_v51  ;;  %v1988_v14 = vsel %vm740_vm7, %v4630_v52, -inf }
 0x333   :  { %v1955_v24 = vmax.f32 %v1953_v47, %v1954_v56  ;;  %v1972_v8 = vrot.slane %v1971_v30, 4  ;;  %v1989_v25 = vmax.f32 %v1987_v39, %v1988_v14  ;;  %v1996_v16 = vsel %vm740_vm7, %v4636_v42, -inf }
 0x334   :  { %v1947_v19 = vrot.slane %v1946_v46, 2  ;;  %v1964_v1 = vmax.f32 %v1962_v35, %v1963_v53  ;;  %v1981_v59 = vrot.slane %v1980_v29, 4  ;;  %v1997_v15 = vsel %vm740_vm7, %v4642_v38, -inf }
 0x335   :  { %v1956_v12 = vrot.slane %v1955_v24, 2  ;;  %v1973_v58 = vmax.f32 %v1971_v30, %v1972_v8  ;;  %v1990_v22 = vrot.slane %v1989_v25, 4  ;;  %v1998_v36 = vmax.f32 %v1996_v16, %v1997_v15 }
 0x336   :  { %v1948_v17 = vmax.f32 %v1946_v46, %v1947_v19  ;;  %v1965_v43 = vrot.slane %v1964_v1, 2  ;;  %v1982_v44 = vmax.f32 %v1980_v29, %v1981_v59  ;;  %v2005_v40 = vsel %vm740_vm7, %v4648_v50, -inf }
 0x337   :  { %v1957_v61 = vmax.f32 %v1955_v24, %v1956_v12  ;;  %v1974_v18 = vrot.slane %v1973_v58, 2  ;;  %v1991_v10 = vmax.f32 %v1989_v25, %v1990_v22  ;;  %v1999_v31 = vrot.slane %v1998_v36, 4 }
 0x338   :  { %v1949_v3 = vrot.slane %v1948_v17, 1  ;;  %v1966_v6 = vmax.f32 %v1964_v1, %v1965_v43  ;;  %v1983_v48 = vrot.slane %v1982_v44, 2  ;;  %v2006_v37 = vsel %vm740_vm7, %v4653_v32, -inf }
 0x339   :  { %v1958_v62 = vrot.slane %v1957_v61, 1  ;;  %v1975_v34 = vmax.f32 %v1973_v58, %v1974_v18  ;;  %v1992_v45 = vrot.slane %v1991_v10, 2  ;;  %v2000_v27 = vmax.f32 %v1998_v36, %v1999_v31 }
 0x33a   :  { %v1950_v13 = vmax.f32 %v1948_v17, %v1949_v3  ;;  %v1967_v9 = vrot.slane %v1966_v6, 1  ;;  %v1984_v63 = vmax.f32 %v1982_v44, %v1983_v48  ;;  %v2007_v47 = vmax.f32 %v2005_v40, %v2006_v37 }
 0x33b   :  { %v1959_v60 = vmax.f32 %v1957_v61, %v1958_v62  ;;  %v1976_v20 = vrot.slane %v1975_v34, 1  ;;  %v1993_v2 = vmax.f32 %v1991_v10, %v1992_v45  ;;  %v2001_v35 = vrot.slane %v2000_v27, 2 }
 0x33c   :  { %v1968_v11 = vmax.f32 %v1966_v6, %v1967_v9  ;;  %v1985_v49 = vrot.slane %v1984_v63, 1  ;;  %v2008_v56 = vrot.slane %v2007_v47, 4  ;;  %vm2022_vm15 = vcmp.le.f32.partialorder %v1950_v13, -5e+29 }
 0x33d   :  { %v1977_v30 = vmax.f32 %v1975_v34, %v1976_v20  ;;  %v1994_v51 = vrot.slane %v1993_v2, 1  ;;  %v2002_v39 = vmax.f32 %v2000_v27, %v2001_v35  ;;  %vm2023_vm11 = vcmp.le.f32.partialorder %v1959_v60, -5e+29 }
 0x33e   :  { %v1986_v46 = vmax.f32 %v1984_v63, %v1985_v49  ;;  %v2009_v53 = vmax.f32 %v2007_v47, %v2008_v56  ;;  %vm2024_vm13 = vcmp.le.f32.partialorder %v1968_v11, -5e+29  ;;  %v2038_v29 = vsel %vm2022_vm15, 0.0, %v1950_v13 }
 0x33f   :  { %v1995_v14 = vmax.f32 %v1993_v2, %v1994_v51  ;;  %v2003_v24 = vrot.slane %v2002_v39, 1  ;;  %vm2025_vm4 = vcmp.le.f32.partialorder %v1977_v30, -5e+29  ;;  %v2039_v8 = vsel %vm2023_vm11, 0.0, %v1959_v60 }
 0x340   :  { %v2010_v25 = vrot.slane %v2009_v53, 2  ;;  %vm2026_vm9 = vcmp.le.f32.partialorder %v1986_v46, -5e+29  ;;  %v2040_v16 = vsel %vm2024_vm13, 0.0, %v1968_v11  ;;  %v2041_v19 = vsel %vm2025_vm4, 0.0, %v1977_v30 }
 0x341   :  { %v2004_v1 = vmax.f32 %v2002_v39, %v2003_v24  ;;  %vm2027_vm2 = vcmp.le.f32.partialorder %v1995_v14, -5e+29  ;;  %v2042_v59 = vsel %vm2026_vm9, 0.0, %v1986_v46  ;;  %v2062_v15 = vsub.f32 %v4582_v41, %v2038_v29  ;;  %v2666_v41 = vld [vmem:[%s4808_s12] sm:$0xff] }
 0x342   :  { %v2011_v12 = vmax.f32 %v2009_v53, %v2010_v25  ;;  %v2043_v58 = vsel %vm2027_vm2, 0.0, %v1995_v14  ;;  %v2063_v22 = vsub.f32 %v4586_v33, %v2038_v29  ;;  %v2064_v36 = vsub.f32 %v4590_v26, %v2039_v8  ;;  %v2667_v33 = vld [vmem:[%s4808_s12 + $0x8] sm:$0xff] }
 0x343   :  { %vm2028_vm1 = vcmp.le.f32.partialorder %v2004_v1, -5e+29  ;;  %v2065_v17 = vsub.f32 %v4595_v28, %v2039_v8  ;;  %v2066_v43 = vsub.f32 %v4599_v0, %v2040_v16  ;;  %v2067_v44 = vsub.f32 %v4603_v5, %v2040_v16 }
 0x344   :  { %v2012_v40 = vrot.slane %v2011_v12, 1  ;;  %v2044_v61 = vsel %vm2028_vm1, 0.0, %v2004_v1  ;;  %v2068_v18 = vsub.f32 %v4608_v21, %v2041_v19  ;;  %v2069_v10 = vsub.f32 %v4612_v7, %v2041_v19 }
 0x345   :  { %v2070_v26 = vsub.f32 %v4617_v4, %v2042_v59  ;;  %v2071_v28 = vsub.f32 %v4621_v23, %v2042_v59  ;;  %v2072_v0 = vsub.f32 %v4626_v54, %v2043_v58  ;;  %v2073_v5 = vsub.f32 %v4630_v52, %v2043_v58 }
 0x346   :  { %v2013_v31 = vmax.f32 %v2011_v12, %v2012_v40  ;;  %v2074_v21 = vsub.f32 %v4636_v42, %v2044_v61  ;;  %v2075_v7 = vsub.f32 %v4642_v38, %v2044_v61  ;;  %v2110_v3 = vmul.f32 1.442695, %v2062_v15 }
 0x347   :  { %v2112_v6 = vmul.f32 1.442695, %v2063_v22  ;;  %v2114_v48 = vmul.f32 1.442695, %v2064_v36  ;;  %v2116_v37 = vmul.f32 1.442695, %v2065_v17  ;;  %v2930_v62 = vpack.c.bf16 %v2667_v33, %v2666_v41 }
 0x348   :  { %vm2029_vm3 = vcmp.le.f32.partialorder %v2013_v31, -5e+29  ;;  %3083 = vpow2.f32 %v2110_v3  ;;  %v2118_v34 = vmul.f32 1.442695, %v2066_v43  ;;  %v2120_v23 = vmul.f32 1.442695, %v2067_v44 }
 0x349   :  { %v2045_v4 = vsel %vm2029_vm3, 0.0, %v2013_v31  ;;  %3085 = vpow2.f32 %v2112_v6  ;;  %2931 = vmatprep.subr.bf16.mxu1 %v2930_v62  ;;  %v2122_v42 = vmul.f32 1.442695, %v2068_v18  ;;  %v2124_v38 = vmul.f32 1.442695, %v2069_v10 }
 0x34a   :  { %v2076_v54 = vsub.f32 %v4648_v50, %v2045_v4  ;;  %v2077_v52 = vsub.f32 %v4653_v32, %v2045_v4  ;;  %3087 = vpow2.f32 %v2114_v48  ;;  %2933 = vmatpush3.bf16.msra.mxu1 %v2930_v62  ;;  %v2126_v45 = vmul.f32 1.442695, %v2070_v26 }
 0x34b   :  { %3089 = vpow2.f32 %v2116_v37  ;;  %v2128_v27 = vmul.f32 1.442695, %v2071_v28  ;;  %v2130_v13 = vmul.f32 1.442695, %v2072_v0  ;;  %v2132_v9 = vmul.f32 1.442695, %v2073_v5 }
 0x34c   :  { %3091 = vpow2.f32 %v2118_v34  ;;  %v2134_v63 = vmul.f32 1.442695, %v2074_v21  ;;  %v2136_v47 = vmul.f32 1.442695, %v2075_v7  ;;  %v2138_v32 = vmul.f32 1.442695, %v2076_v54 }
 0x34d   :  { %3093 = vpow2.f32 %v2120_v23  ;;  %v2140_v20 = vmul.f32 1.442695, %v2077_v52 }
 0x34e   :  { %3095 = vpow2.f32 %v2122_v42 }
 0x34f   :  { %3097 = vpow2.f32 %v2124_v38 }
 0x350   :  { %3099 = vpow2.f32 %v2126_v45 }
 0x351   :  { %3101 = vpow2.f32 %v2128_v27 }
 0x352   :  { %v3084_v50 = vpop.eup %3083  ;;  %3103 = vpow2.f32 %v2130_v13 }
 0x353   :  { %v3086_v60 = vpop.eup %3085  ;;  %3105 = vpow2.f32 %v2132_v9  ;;  %v2214_v2 = vsel %vm740_vm7, %v3084_v50, 0.0  ;;  %v2302_v35 = vmul.f32 %v3084_v50, %v4139_v55 }
 0x354   :  { %v3088_v11 = vpop.eup %3087  ;;  %3107 = vpow2.f32 %v2134_v63  ;;  %v2215_v49 = vsel %vm740_vm7, %v3086_v60, 0.0  ;;  %v2303_v56 = vmul.f32 %v3086_v60, %v4137_v57 }
 0x355   :  { %v3090_v30 = vpop.eup %3089  ;;  %3109 = vpow2.f32 %v2136_v47  ;;  %v2216_v51 = vadd.f32 %v2215_v49, %v2214_v2  ;;  %v2223_v39 = vsel %vm740_vm7, %v3088_v11, 0.0  ;;  %v2390_v8 = vsel %vm740_vm7, %v2302_v35, 0.0 }
 0x356   :  { %v3092_v46 = vpop.eup %3091  ;;  %3111 = vpow2.f32 %v2138_v32  ;;  %v2224_v53 = vsel %vm740_vm7, %v3090_v30, 0.0  ;;  %v2391_v19 = vsel %vm740_vm7, %v2303_v56, 0.0  ;;  %v2304_v38 = vmul.f32 %v3088_v11, %v4139_v55 }
 0x357   :  { %v3094_v29 = vpop.eup %3093  ;;  %3113 = vpow2.f32 %v2140_v20  ;;  %v2225_v14 = vadd.f32 %v2224_v53, %v2223_v39  ;;  %v2232_v24 = vsel %vm740_vm7, %v3092_v46, 0.0  ;;  %v4725_v22 = vadd.f32 %v2391_v19, %v2390_v8 }
 0x358   :  { %v3096_v25 = vpop.eup %3095  ;;  %v2233_v16 = vsel %vm740_vm7, %v3094_v29, 0.0  ;;  %v2217_v10 = vrot.slane %v2216_v51, 4  ;;  %v2305_v45 = vmul.f32 %v3090_v30, %v4137_v57  ;;  %v2306_v27 = vmul.f32 %v3092_v46, %v4139_v55 }
 0x359   :  { %v3098_v1 = vpop.eup %3097  ;;  %v2234_v59 = vadd.f32 %v2233_v16, %v2232_v24  ;;  %v2241_v15 = vsel %vm740_vm7, %v3096_v25, 0.0  ;;  %v2226_v0 = vrot.slane %v2225_v14, 4  ;;  %v2307_v47 = vmul.f32 %v3094_v29, %v4137_v57 }
 0x35a   :  { %v3100_v12 = vpop.eup %3099  ;;  %v2242_v58 = vsel %vm740_vm7, %v3098_v1, 0.0  ;;  %v2218_v48 = vadd.f32 %v2217_v10, %v2216_v51  ;;  %v2308_v32 = vmul.f32 %v3096_v25, %v4139_v55  ;;  %v2309_v60 = vmul.f32 %v3098_v1, %v4137_v57 }
 0x35b   :  { %v3102_v36 = vpop.eup %3101  ;;  %v2243_v17 = vadd.f32 %v2242_v58, %v2241_v15  ;;  %v2250_v44 = vsel %vm740_vm7, %v3100_v12, 0.0  ;;  %v2235_v31 = vrot.slane %v2234_v59, 4  ;;  %v2227_v23 = vadd.f32 %v2226_v0, %v2225_v14 }
 0x35c   :  { %v3104_v43 = vpop.eup %3103  ;;  %v2251_v40 = vsel %vm740_vm7, %v3102_v36, 0.0  ;;  %v2219_v13 = vrot.slane %v2218_v48, 2  ;;  %v2310_v20 = vmul.f32 %v3100_v12, %v4139_v55  ;;  %v2311_v11 = vmul.f32 %v3102_v36, %v4137_v57 }
 0x35d   :  { %v3106_v61 = vpop.eup %3105  ;;  %v2252_v41 = vadd.f32 %v2251_v40, %v2250_v44  ;;  %v2259_v33 = vsel %vm740_vm7, %v3104_v43, 0.0  ;;  %v2244_v37 = vrot.slane %v2243_v17, 4  ;;  %v2236_v54 = vadd.f32 %v2235_v31, %v2234_v59 }
 0x35e   :  { %v3108_v18 = vpop.eup %3107  ;;  %v2260_v26 = vsel %vm740_vm7, %v3106_v61, 0.0  ;;  %v2228_v2 = vrot.slane %v2227_v23, 2  ;;  %v2399_v30 = vsel %vm740_vm7, %v2304_v38, 0.0  ;;  %v2400_v51 = vsel %vm740_vm7, %v2305_v45, 0.0 }
 0x35f   :  { %v3110_v28 = vpop.eup %3109  ;;  %v2261_v21 = vadd.f32 %v2260_v26, %v2259_v33  ;;  %v2268_v7 = vsel %vm740_vm7, %v3108_v18, 0.0  ;;  %v2253_v42 = vrot.slane %v2252_v41, 4  ;;  %v2245_v9 = vadd.f32 %v2244_v37, %v2243_v17 }
 0x360   :  { %v3112_v5 = vpop.eup %3111  ;;  %v2269_v3 = vsel %vm740_vm7, %v3110_v28, 0.0  ;;  %v2237_v35 = vrot.slane %v2236_v54, 2  ;;  %v2408_v39 = vsel %vm740_vm7, %v2306_v27, 0.0  ;;  %v2220_v46 = vadd.f32 %v2219_v13, %v2218_v48 }
 0x361   :  { %v3114_v6 = vpop.eup %3113  ;;  %v2270_v62 = vadd.f32 %v2269_v3, %v2268_v7  ;;  %v2277_v34 = vsel %vm740_vm7, %v3112_v5, 0.0  ;;  %v2262_v63 = vrot.slane %v2261_v21, 4  ;;  %v2254_v56 = vadd.f32 %v2253_v42, %v2252_v41 }
 0x362   :  { %v2278_v4 = vsel %vm740_vm7, %v3114_v6, 0.0  ;;  %v2246_v53 = vrot.slane %v2245_v9, 2  ;;  %v2312_v14 = vmul.f32 %v3104_v43, %v4139_v55  ;;  %v2401_v8 = vadd.f32 %v2400_v51, %v2399_v30 }
 0x363   :  { %v2279_v52 = vadd.f32 %v2278_v4, %v2277_v34  ;;  %v2271_v50 = vrot.slane %v2270_v62, 4  ;;  %v2263_v29 = vadd.f32 %v2262_v63, %v2261_v21  ;;  %v2409_v25 = vsel %vm740_vm7, %v2307_v47, 0.0 }
 0x364   :  { %v2417_v16 = vsel %vm740_vm7, %v2308_v32, 0.0  ;;  %v2229_v19 = vadd.f32 %v2228_v2, %v2227_v23  ;;  %v2238_v1 = vadd.f32 %v2237_v35, %v2236_v54  ;;  %v2410_v15 = vadd.f32 %v2409_v25, %v2408_v39 }
 0x365   :  { %v2280_v49 = vrot.slane %v2279_v52, 4  ;;  %v2272_v24 = vadd.f32 %v2271_v50, %v2270_v62  ;;  %v2255_v12 = vrot.slane %v2254_v56, 2  ;;  %v2313_v58 = vmul.f32 %v3106_v61, %v4137_v57 }
 0x366   :  { %v2418_v36 = vsel %vm740_vm7, %v2309_v60, 0.0  ;;  %v2426_v17 = vsel %vm740_vm7, %v2310_v20, 0.0  ;;  %v2247_v44 = vadd.f32 %v2246_v53, %v2245_v9  ;;  %v2264_v40 = vrot.slane %v2263_v29, 2 }
 0x367   :  { %v2281_v59 = vadd.f32 %v2280_v49, %v2279_v52  ;;  %v2314_v43 = vmul.f32 %v3108_v18, %v4139_v55  ;;  %v2419_v10 = vadd.f32 %v2418_v36, %v2417_v16  ;;  %v2273_v41 = vrot.slane %v2272_v24, 2 }
 0x368   :  { %v2315_v33 = vmul.f32 %v3110_v28, %v4137_v57  ;;  %v2427_v26 = vsel %vm740_vm7, %v2311_v11, 0.0  ;;  %v2435_v0 = vsel %vm740_vm7, %v2312_v14, 0.0  ;;  %v2316_v21 = vmul.f32 %v3112_v5, %v4139_v55 }
 0x369   :  { %v2282_v31 = vrot.slane %v2281_v59, 2  ;;  %v2393_v61 = vrot.slane %v4725_v22, 4  ;;  %v2428_v7 = vadd.f32 %v2427_v26, %v2426_v17  ;;  %v2256_v3 = vadd.f32 %v2255_v12, %v2254_v56 }
 0x36a   :  { %v2317_v48 = vmul.f32 %v3114_v6, %v4137_v57  ;;  %v2436_v37 = vsel %vm740_vm7, %v2313_v58, 0.0  ;;  %v2221_v18 = vrot.slane %v2220_v46, 1  ;;  %v2265_v62 = vadd.f32 %v2264_v40, %v2263_v29 }
 0x36b   :  { %v2437_v34 = vadd.f32 %v2436_v37, %v2435_v0  ;;  %v2444_v28 = vsel %vm740_vm7, %v2314_v43, 0.0  ;;  %v2230_v4 = vrot.slane %v2229_v19, 1  ;;  %v2239_v23 = vrot.slane %v2238_v1, 1 }
 0x36c   :  { %v2274_v54 = vadd.f32 %v2273_v41, %v2272_v24  ;;  %v2445_v52 = vsel %vm740_vm7, %v2315_v33, 0.0  ;;  %v2248_v42 = vrot.slane %v2247_v44, 1  ;;  %v2283_v55 = vadd.f32 %v2282_v31, %v2281_v59 }
 0x36d   :  { %v2394_v5 = vadd.f32 %v2393_v61, %v4725_v22  ;;  %v2453_v38 = vsel %vm740_vm7, %v2316_v21, 0.0  ;;  %v2257_v45 = vrot.slane %v2256_v3, 1  ;;  %v2402_v57 = vrot.slane %v2401_v8, 4 }
 0x36e   :  { %v2446_v6 = vadd.f32 %v2445_v52, %v2444_v28  ;;  %v2454_v27 = vsel %vm740_vm7, %v2317_v48, 0.0  ;;  %v2222_v13 = vadd.f32 %v2221_v18, %v2220_v46  ;;  %v2266_v9 = vrot.slane %v2265_v62, 1 }
 0x36f   :  { %v2411_v63 = vrot.slane %v2410_v15, 4  ;;  %v2231_v47 = vadd.f32 %v2230_v4, %v2229_v19  ;;  %v2275_v50 = vrot.slane %v2274_v54, 1  ;;  %v2420_v32 = vrot.slane %v2419_v10, 4 }
 0x370   :  { %v2455_v60 = vadd.f32 %v2454_v27, %v2453_v38  ;;  %v2240_v20 = vadd.f32 %v2239_v23, %v2238_v1  ;;  %v2284_v2 = vrot.slane %v2283_v55, 1  ;;  %v2395_v35 = vrot.slane %v2394_v5, 2 }
 0x371   :  { %v2249_v49 = vadd.f32 %v2248_v42, %v2247_v44  ;;  %v2258_v11 = vadd.f32 %v2257_v45, %v2256_v3  ;;  %v2403_v22 = vadd.f32 %v2402_v57, %v2401_v8  ;;  %v2429_v56 = vrot.slane %v2428_v7, 4 }
 0x372   :  { %v2267_v30 = vadd.f32 %v2266_v9, %v2265_v62  ;;  %v2412_v51 = vadd.f32 %v2411_v63, %v2410_v15  ;;  %v2438_v39 = vrot.slane %v2437_v34, 4  ;;  %vm2470_vm15 = vcmp.gt.f32.partialorder %v2222_v13, 0.0 }
 0x373   :  { %v2276_v53 = vadd.f32 %v2275_v50, %v2274_v54  ;;  %v2421_v29 = vadd.f32 %v2420_v32, %v2419_v10  ;;  %v2447_v46 = vrot.slane %v2446_v6, 4  ;;  %vm2471_vm11 = vcmp.gt.f32.partialorder %v2231_v47, 0.0 }
 0x374   :  { %v2285_v14 = vadd.f32 %v2284_v2, %v2283_v55  ;;  %v2396_v24 = vadd.f32 %v2395_v35, %v2394_v5  ;;  %v2456_v25 = vrot.slane %v2455_v60, 4  ;;  %vm2472_vm13 = vcmp.gt.f32.partialorder %v2240_v20, 0.0 }
 0x375   :  { %v2404_v16 = vrot.slane %v2403_v22, 2  ;;  %v2430_v19 = vadd.f32 %v2429_v56, %v2428_v7  ;;  %vm2473_vm4 = vcmp.gt.f32.partialorder %v2249_v49, 0.0  ;;  %v2486_v1 = vsel %vm2470_vm15, %v2222_v13, 1.0 }
 0x376   :  { %v2413_v59 = vrot.slane %v2412_v51, 2  ;;  %v2439_v12 = vadd.f32 %v2438_v39, %v2437_v34  ;;  %vm2474_vm9 = vcmp.gt.f32.partialorder %v2258_v11, 0.0  ;;  %v2487_v8 = vsel %vm2471_vm11, %v2231_v47, 1.0 }
 0x377   :  { %v2422_v58 = vrot.slane %v2421_v29, 2  ;;  %v2448_v15 = vadd.f32 %v2447_v46, %v2446_v6  ;;  %vm2475_vm2 = vcmp.gt.f32.partialorder %v2267_v30, 0.0  ;;  %v2488_v36 = vsel %vm2472_vm13, %v2240_v20, 1.0 }
 0x378   :  { %v2457_v17 = vadd.f32 %v2456_v25, %v2455_v60  ;;  %vm2476_vm1 = vcmp.gt.f32.partialorder %v2276_v53, 0.0  ;;  %v2489_v44 = vsel %vm2473_vm4, %v2249_v49, 1.0  ;;  %3115 = vrcp.f32 %v2486_v1 }
 0x379   :  { %v2431_v40 = vrot.slane %v2430_v19, 2  ;;  %vm2477_vm3 = vcmp.gt.f32.partialorder %v2285_v14, 0.0  ;;  %v2490_v43 = vsel %vm2474_vm9, %v2258_v11, 1.0  ;;  %3117 = vrcp.f32 %v2487_v8 }
 0x37a   :  { %v2405_v10 = vadd.f32 %v2404_v16, %v2403_v22  ;;  %v2440_v41 = vrot.slane %v2439_v12, 2  ;;  %v2491_v33 = vsel %vm2475_vm2, %v2267_v30, 1.0  ;;  %3119 = vrcp.f32 %v2488_v36 }
 0x37b   :  { %v2414_v26 = vadd.f32 %v2413_v59, %v2412_v51  ;;  %v2449_v0 = vrot.slane %v2448_v15, 2  ;;  %v2492_v31 = vsel %vm2476_vm1, %v2276_v53, 1.0  ;;  %3121 = vrcp.f32 %v2489_v44  ;;  %v2669_v44 = vld [vmem:[%s4808_s12 + $0x18] sm:$0xff] }
 0x37c   :  { %v2423_v21 = vadd.f32 %v2422_v58, %v2421_v29  ;;  %v2458_v61 = vrot.slane %v2457_v17, 2  ;;  %v2493_v7 = vsel %vm2477_vm3, %v2285_v14, 1.0  ;;  %3123 = vrcp.f32 %v2490_v43  ;;  %v2802_v43 = vld [vmem:[%s4809_s11] ss:$0 sm:$0xff] }
 0x37d   :  { %v2397_v3 = vrot.slane %v2396_v24, 1  ;;  %v2432_v48 = vadd.f32 %v2431_v40, %v2430_v19  ;;  %3125 = vrcp.f32 %v2491_v33  ;;  %v2406_v37 = vrot.slane %v2405_v10, 1 }
 0x37e   :  { %v2441_v18 = vadd.f32 %v2440_v41, %v2439_v12  ;;  %3127 = vrcp.f32 %v2492_v31  ;;  %v2415_v62 = vrot.slane %v2414_v26, 1  ;;  %v2450_v34 = vadd.f32 %v2449_v0, %v2448_v15  ;;  %v2805_v0 = vld [vmem:[%s4810_s13] ss:$0 sm:$0xff] }
 0x37f   :  { %3129 = vrcp.f32 %v2493_v7  ;;  %v2424_v28 = vrot.slane %v2423_v21, 1  ;;  %v2459_v4 = vadd.f32 %v2458_v61, %v2457_v17  ;;  %v2398_v23 = vadd.f32 %v2397_v3, %v2396_v24  ;;  %v2668_v17 = vld [vmem:[%s4808_s12 + $0x10] sm:$0xff] }
 0x380   :  { %v2433_v54 = vrot.slane %v2432_v48, 1  ;;  %v2407_v42 = vadd.f32 %v2406_v37, %v2405_v10  ;;  %v2442_v55 = vrot.slane %v2441_v18, 1  ;;  %v2416_v38 = vadd.f32 %v2415_v62, %v2414_v26 }
 0x381   :  { %v2451_v45 = vrot.slane %v2450_v34, 1  ;;  %v2425_v27 = vadd.f32 %v2424_v28, %v2423_v21  ;;  %v2460_v13 = vrot.slane %v2459_v4, 1  ;;  %v2934_v40 = vpack.c.bf16 %v2669_v44, %v2668_v17 }
 0x382   :  { %v3116_v52 = vpop.eup %3115  ;;  %v2434_v47 = vadd.f32 %v2433_v54, %v2432_v48  ;;  %v2443_v60 = vadd.f32 %v2442_v55, %v2441_v18 }
 0x383   :  { %v3118_v5 = vpop.eup %3117  ;;  %v2511_v57 = vmul.f32 %v3116_v52, %v2398_v23  ;;  %v2452_v11 = vadd.f32 %v2451_v45, %v2450_v34  ;;  %v2461_v51 = vadd.f32 %v2460_v13, %v2459_v4  ;;  %2935 = vmatprep.subr.bf16.mxu1 %v2934_v40 }
 0x384   :  { %v3120_v6 = vpop.eup %3119  ;;  %v2513_v9 = vmul.f32 %v3118_v5, %v2407_v42  ;;  %2937 = vmatpush3.bf16.msra.mxu1 %v2934_v40 }
 0x385   :  { %v3122_v63 = vpop.eup %3121  ;;  %v2515_v50 = vmul.f32 %v3120_v6, %v2416_v38  ;;  %v2534_v2 = vmax.f32 %v2511_v57, 0.0 }
 0x386   :  { %v3124_v32 = vpop.eup %3123  ;;  %v2517_v20 = vmul.f32 %v3122_v63, %v2425_v27  ;;  %v2535_v35 = vmax.f32 %v2513_v9, 0.0 }
 0x387   :  { %v3126_v49 = vpop.eup %3125  ;;  %v2519_v22 = vmul.f32 %v3124_v32, %v2434_v47  ;;  %v2536_v56 = vmax.f32 %v2515_v50, 0.0 }
 0x388   :  { %v3128_v30 = vpop.eup %3127  ;;  %v2521_v39 = vmul.f32 %v3126_v49, %v2443_v60  ;;  %v2537_v53 = vmax.f32 %v2517_v20, 0.0  ;;  %v2580_v29 = vsel %vm1446_vm12, %v2535_v35, %v2534_v2 }
 0x389   :  { %v3130_v46 = vpop.eup %3129  ;;  %v2523_v14 = vmul.f32 %v3128_v30, %v2452_v11  ;;  %v2538_v24 = vmax.f32 %v2519_v22, 0.0  ;;  %v2581_v25 = vsel %vm1448_vm8, %v2536_v56, %v2580_v29 }
 0x38a   :  { %v2525_v16 = vmul.f32 %v3130_v46, %v2461_v51  ;;  %v2539_v19 = vmax.f32 %v2521_v39, 0.0  ;;  %v2582_v1 = vsel %vm1450_vm10, %v2537_v53, %v2581_v25 }
 0x38b   :  { %v2540_v59 = vmax.f32 %v2523_v14, 0.0  ;;  %v2583_v12 = vsel %vm1452_vm14, %v2538_v24, %v2582_v1 }
 0x38c   :  { %v2541_v8 = vmax.f32 %v2525_v16, 0.0  ;;  %v2584_v58 = vsel %vm1454_vm0, %v2539_v19, %v2583_v12 }
 0x38d   :  { %v2585_v15 = vsel %vm1456_vm6, %v2540_v59, %v2584_v58  ;;  %vm2759_vm6 = vcmask 64512  }
 0x38e   :  { %v2586_v36 = vsel %vm1458_vm5, %v2541_v8, %v2585_v15  ;;  %vm2677_vm5 = vcmask 261120  }
 0x38f   :  { %2881 = vmatmul.mubr.msk.f32.vlgmr.msra.gmra.mrb[2].mxu0 %vm740_vm7, %v2586_v36 }
 0x462   :  { %v2882_v10 = vpop.f32.mrb[2].mxu0 }
 0x463   :  { %v2657_v41 = vpop.f32.mrb[3].mxu0  ;;  %v2663_v26 = vadd.f32 %v2882_v10, %v2802_v43 }
 0x464   :  { %v2658_v33 = vadd.f32 %v2802_v43, %v2657_v41 }
 0x466   :  { %2891 = vmatprep.mubr.msk.f32.mxu1 %vm2677_vm5, %v2658_v33 }
 0x467   :  { %2892 = vmatmul.mubr.msk.f32.vlgmr.msra.gmra.mrb[2].mxu1 %vm2677_vm5, %v2663_v26 }
 0x53a   :  { %v2893_v31 = vpop.f32.mrb[2].mxu1 }
 0x53b   :  { %v2756_v21 = vadd.f32 %v2893_v31, %v2805_v0  ;;  %v2750_v61 = vpop.f32.mrb[3].mxu1 }
 0x53c   :  { %v2751_v7 = vadd.f32 %v2805_v0, %v2750_v61 }
 0x53d   :  { %v2763_v3 = vsel %vm2759_vm6, %v2756_v21, -inf }
 0x53e   :  { %2764 = vmax.xlane.f32.xlu1 %v2763_v3  ;;  %v2760_v48 = vsel %vm2759_vm6, %v2751_v7, -inf }
 0x53f   :  { %2761 = vmax.xlane.f32.xlu0 %v2760_v48 }
 0x5cb   :  { %v2765_v37 = vpop.xlane.xlu1 %2764 }
 0x5cc   :  { %v2767_v18 = vsub.f32 %v2756_v21, %v2765_v37  ;;  %v2762_v62 = vpop.xlane.xlu0 %2761 }
 0x5cd   :  { %v2766_v34 = vsub.f32 %v2751_v7, %v2762_v62 }
 0x5ce   :  { %v2770_v28 = vmul.f32 1.442695, %v2767_v18 }
 0x5cf   :  { %v2768_v4 = vmul.f32 1.442695, %v2766_v34 }
 0x5d1   :  { %3131 = vpow2.f32 %v2768_v4 }
 0x5d2   :  { %3133 = vpow2.f32 %v2770_v28 }
 0x5db   :  { %v3132_v23 = vpop.eup %3131 }
 0x5dc   :  { %v2772_v54 = vsel %vm2759_vm6, %v3132_v23, 0.0  ;;  %v3134_v52 = vpop.eup %3133 }
 0x5dd   :  { %2773 = vadd.xlane.f32.xlu0 %v2772_v54  ;;  %v2775_v42 = vsel %vm2759_vm6, %v3134_v52, 0.0 }
 0x5e1   :  { %2776 = vadd.xlane.f32.xlu0 %v2775_v42 }
 0x66a   :  { %v2774_v55 = vpop.xlane.xlu0 %2773 }
 0x66b   :  { %3135 = vlog2.f32 %v2774_v55 }
 0x66e   :  { %v2777_v5 = vpop.xlane.xlu0 %2776 }
 0x66f   :  { %3137 = vlog2.f32 %v2777_v5 }
 0x675   :  { %v3136_v38 = vpop.eup %3135 }
 0x676   :  { %v2779_v45 = vmul.f32 0.6931472, %v3136_v38 }
 0x678   :  { %v2782_v57 = vadd.f32 %v2779_v45, %v2762_v62 }
 0x679   :  { %v3138_v6 = vpop.eup %3137 }
 0x67a   :  { %v2784_v27 = vsub.f32 %v2751_v7, %v2782_v57  ;;  %v2781_v13 = vmul.f32 0.6931472, %v3138_v6 }
 0x67c   :  { %2786 = vst.msk [vmem:[%s4811_s14] sm:$0xff] %vm2759_vm6, %v2784_v27  ;;  %v2783_v9 = vadd.f32 %v2781_v13, %v2765_v37 }
 0x67e   :  { %v2785_v63 = vsub.f32 %v2756_v21, %v2783_v9 }
 0x680   :  { %2787 = vst.msk [vmem:[%s4811_s14 + $0x8] sm:$0xff] %vm2759_vm6, %v2785_v63 }

</bundles_post_ra>
